<compile_context>
chip_gen: v5e
topology: v5e:2x2
jax: 0.10.0
libtpu: 0.0.40
codegen_flags: <defaults>
</compile_context>

<pallas_src>
import functools

import jax
import jax.numpy as jnp
from jax.experimental import pallas as pl
from jax.experimental.pallas import tpu as pltpu

# --- model constants (match the PyTorch module) -------------------------------
NUM_UNITS = 400                     # num_units
NUM_UNITS_MUT = 10                  # num_units_branch_mut
NUM_UNITS_JOINED = NUM_UNITS + NUM_UNITS_MUT   # 410
SIGMOID_PARAMS = (5000.0, 1000.0)
LEAKY_SLOPE = 0.1

# --- padded (lane-friendly) kernel dims ---------------------------------------
D_MD = 96          # mutation_dist feature width (equals full dim)
H = 512            # 400 / 410 padded to 512 lanes
HB = 128           # 10-wide num_mut branch padded to one full vreg lane width
# layer2_2 outputs are written at lanes NM_LANE_OFF..NM_LANE_OFF+9 of the
# 128-wide branch so that a lane-aligned concat (zeros[TB,384] ++ g[TB,128])
# places them exactly at lanes 400..409 of the 512-wide joined vector.
NM_LANE_OFF = NUM_UNITS - (H - HB)   # = 16

# TB=1024 keeps peak live VMEM ~15 MiB: safe under v7x's 64 MiB/TC VMEM while
# amortizing the ~0.35 us per-grid-step overhead.  On v5e/v6e (128 MiB VMEM)
# block_batch can be swept to 2048 with a 64 MiB limit.
DEFAULT_BLOCK_BATCH = 1024
VMEM_LIMIT_BYTES = 48 * 1024 * 1024


def _round_up(x, m):
    return (x + m - 1) // m * m


def _leaky_relu(x):
    return jnp.where(x >= 0.0, x, LEAKY_SLOPE * x)


def _sigmoid_exact(x):
    return 1.0 / (1.0 + jnp.exp(-x))


# ------------------------------------------------------------------------------
# Kernel
# ------------------------------------------------------------------------------
def classifier_kernel(
    md_ref, nm_ref,
    w11_ref, b11_ref,        # layer1_1: 96  -> 512(=400 padded)   bf16 / f32
    w21_ref, b21_ref,        # layer2_1: 512 -> 512                bf16 / f32
    w12_ref, b12_ref,        # layer1_2: 1   -> 128(=10 padded)    f32 row (VPU)
    w22_ref, b22_ref,        # layer2_2: 128 -> 128 (out lanes 16..25) bf16 / f32
    wh1_ref, bh1_ref,        # hidden[0]: 512 -> 512 (full padded 410x410)
    wh2_ref, bh2_ref,        # hidden[1]: 512 -> 512
    wout_ref, bout_ref,      # output_layer as a [1, 512] f32 row + scalar
    out_ref,
):
    f32 = jnp.float32
    bf16 = jnp.bfloat16

    def sigmoid(x):
        # Exact: only applied to [TB,1] tensors, so an approx reciprocal buys
        # nothing and would perturb the returned probabilities.
        return 1.0 / (1.0 + jnp.exp(-x))

    # --- mutation_dist branch (MXU, bf16 operands, f32 accumulation) ----------
    md = md_ref[...].astype(bf16)                                      # [TB, 96]
    h = _leaky_relu(
        jnp.dot(md, w11_ref[...], preferred_element_type=f32) + b11_ref[...])
    h = _leaky_relu(
        jnp.dot(h.astype(bf16), w21_ref[...], preferred_element_type=f32)
        + b21_ref[...])                                                # [TB, 512] f32
    # Padded lanes 400..511 of h are exact zeros (zero weight cols / bias,
    # leaky_relu(0) = 0).

    # --- num_mut branch --------------------------------------------------------
    nm = sigmoid((nm_ref[...] - SIGMOID_PARAMS[0]) / SIGMOID_PARAMS[1])  # [TB, 1]
    # K=1 "matmul" done on the VPU as a lane broadcast multiply.
    g = _leaky_relu(nm * w12_ref[...] + b12_ref[...])                  # [TB, 128]
    g = _leaky_relu(
        jnp.dot(g.astype(bf16), w22_ref[...], preferred_element_type=f32)
        + b22_ref[...])                                                # [TB, 128]
    # Useful values live at lanes NM_LANE_OFF..NM_LANE_OFF+9; all other lanes 0.

    # --- joined path: lane-pack g into h's zero lanes, single wh1 matmul ------
    tb = h.shape[0]
    g_full = jnp.concatenate(
        [jnp.zeros((tb, H - HB), f32), g], axis=-1)                    # [TB, 512]
    packed = h + g_full   # lanes 0..399 = md branch, 400..409 = nm branch, rest 0

    c = _leaky_relu(
        jnp.dot(packed.astype(bf16), wh1_ref[...], preferred_element_type=f32)
        + bh1_ref[...])                                                # [TB, 512]
    c = _leaky_relu(
        jnp.dot(c.astype(bf16), wh2_ref[...], preferred_element_type=f32)
        + bh2_ref[...])                                                # [TB, 512]

    # --- output layer: N=1 -> VPU multiply + XLU lane reduction (no MXU pass) -
    logits = jnp.sum(c * wout_ref[...], axis=-1, keepdims=True) + bout_ref[...]
    out_ref[...] = sigmoid(logits)                                     # [TB, 1]


# ------------------------------------------------------------------------------
# Wrapper
# ------------------------------------------------------------------------------
@functools.partial(jax.jit, static_argnames=("block_batch",))
def classifier_forward(mutation_dist, num_mut, kernel_params,
                       block_batch=DEFAULT_BLOCK_BATCH):
    batch = mutation_dist.shape[0]

    # Split into >=2 tiles whenever batch > 8 so a single-block batch still
    # feeds both v7x TensorCores (no effect on 1-TC v5e/v6e).
    batch8 = _round_up(max(batch, 1), 8)
    half = _round_up(-(-batch8 // 2), 8)
    tb = max(8, min(block_batch, half))
    padded = _round_up(batch, tb)

    # Stream f32 and cast to bf16 in-kernel: avoids a separate wrapper-side
    # HBM cast pass; the extra streamed bytes are irrelevant (kernel is
    # heavily MXU-bound).
    md = mutation_dist.astype(jnp.float32)
    nm = num_mut.astype(jnp.float32)          # values ~5000 need f32 mantissa
    if padded != batch:
        md = jnp.pad(md, ((0, padded - batch), (0, 0)))
        nm = jnp.pad(nm, ((0, padded - batch), (0, 0)))

    kp = kernel_params
    args = (
        md, nm,
        kp["w11"], kp["b11"], kp["w21"], kp["b21"],
        kp["w12"], kp["b12"], kp["w22"], kp["b22"],
        kp["wh1"], kp["bh1"],
        kp["wh2"], kp["bh2"],
        kp["wout"], kp["bout"],
    )

    def resident_spec(x):
        # Full-array block, constant index_map -> DMA'd once, stays in VMEM.
        return pl.BlockSpec(x.shape, lambda i: (0,) * x.ndim)

    in_specs = [
        pl.BlockSpec((tb, D_MD), lambda i: (i, 0)),   # streamed activations
        pl.BlockSpec((tb, 1), lambda i: (i, 0)),
    ] + [resident_spec(a) for a in args[2:]]

    flops = 2 * padded * (
        96 * NUM_UNITS + NUM_UNITS * NUM_UNITS
        + NUM_UNITS_MUT + NUM_UNITS_MUT * NUM_UNITS_MUT
        + 2 * NUM_UNITS_JOINED * NUM_UNITS_JOINED + NUM_UNITS_JOINED)
    bytes_accessed = (
        md.size * 4 + nm.size * 4 + padded * 4
        + sum(int(a.size) * a.dtype.itemsize for a in args[2:]))
    cost = pl.CostEstimate(flops=int(flops), transcendentals=2 * padded,
                           bytes_accessed=int(bytes_accessed))

    out = pl.pallas_call(
        classifier_kernel,
        grid=(padded // tb,),
        in_specs=in_specs,
        out_specs=pl.BlockSpec((tb, 1), lambda i: (i, 0)),
        out_shape=jax.ShapeDtypeStruct((padded, 1), jnp.float32),
        compiler_params=pltpu.CompilerParams(
            dimension_semantics=("parallel",),      # megacore batch sharding on v7x
            vmem_limit_bytes=VMEM_LIMIT_BYTES),
        cost_estimate=cost,
    )(*args)
    return out[:batch]


# ------------------------------------------------------------------------------
# Parameter construction / preparation
# ------------------------------------------------------------------------------
def _init_linear(key, fan_in, fan_out):
    """PyTorch-style uniform(-1/sqrt(fan_in), 1/sqrt(fan_in)); weight as [in, out]."""
    kw, kb = jax.random.split(key)
    bound = 1.0 / jnp.sqrt(jnp.float32(fan_in))
    w = jax.random.uniform(kw, (fan_in, fan_out), jnp.float32, -bound, bound)
    b = jax.random.uniform(kb, (1, fan_out), jnp.float32, -bound, bound)
    return w, b


def make_params(key):
    """Unpadded f32 params in [in, out] layout (the 'PyTorch' parameters)."""
    keys = jax.random.split(key, 7)
    p = {}
    p["w11"], p["b11"] = _init_linear(keys[0], 96, NUM_UNITS)
    p["w12"], p["b12"] = _init_linear(keys[1], 1, NUM_UNITS_MUT)
    p["w21"], p["b21"] = _init_linear(keys[2], NUM_UNITS, NUM_UNITS)
    p["w22"], p["b22"] = _init_linear(keys[3], NUM_UNITS_MUT, NUM_UNITS_MUT)
    p["wh1"], p["bh1"] = _init_linear(keys[4], NUM_UNITS_JOINED, NUM_UNITS_JOINED)
    p["wh2"], p["bh2"] = _init_linear(keys[5], NUM_UNITS_JOINED, NUM_UNITS_JOINED)
    p["wout"], p["bout"] = _init_linear(keys[6], NUM_UNITS_JOINED, 1)
    return p


def prepare_params(p):
    """One-time host-side prep: zero-pad to lane-friendly widths, place the
    layer2_2 block at output lanes 16..25 so the joined concat becomes a single
    lane-aligned pack + one matmul against the full padded wh1, and cast matmul
    weights to bf16 (biases stay f32).  Zero padding is exact: padded lanes are
    zero through leaky_relu and contribute nothing to downstream matmuls."""
    def padw(w, rows, cols, dtype=jnp.bfloat16, row_off=0, col_off=0):
        out = jnp.zeros((rows, cols), dtype)
        return out.at[row_off:row_off + w.shape[0],
                      col_off:col_off + w.shape[1]].set(w.astype(dtype))

    def padb(b, cols, col_off=0):
        out = jnp.zeros((1, cols), jnp.float32)
        return out.at[:, col_off:col_off + b.shape[1]].set(b.astype(jnp.float32))

    return dict(
        w11=padw(p["w11"], D_MD, H),            b11=padb(p["b11"], H),
        w21=padw(p["w21"], H, H),               b21=padb(p["b21"], H),
        w12=padw(p["w12"], 1, HB, jnp.float32), b12=padb(p["b12"], HB),   # VPU row
        # layer2_2 outputs land at lanes 16..25 of the 128-wide branch so the
        # lane-aligned concat places them at lanes 400..409 of the joined path.
        w22=padw(p["w22"], HB, HB, col_off=NM_LANE_OFF),
        b22=padb(p["b22"], HB, col_off=NM_LANE_OFF),
        wh1=padw(p["wh1"], H, H),               bh1=padb(p["bh1"], H),    # full 410x410
        wh2=padw(p["wh2"], H, H),               bh2=padb(p["bh2"], H),
        wout=padw(p["wout"].T, 1, H, jnp.float32),                        # [1, 512]
        bout=p["bout"].astype(jnp.float32),                               # [1, 1]
    )


# ------------------------------------------------------------------------------
# Pure-JAX reference (f32, unpadded) — mirrors the PyTorch forward exactly
# ------------------------------------------------------------------------------
def reference_forward(mutation_dist, num_mut, params):
    md = _leaky_relu(mutation_dist @ params["w11"] + params["b11"])
    md = _leaky_relu(md @ params["w21"] + params["b21"])
    nm = _sigmoid_exact((num_mut - SIGMOID_PARAMS[0]) / SIGMOID_PARAMS[1])
    nm = _leaky_relu(nm @ params["w12"] + params["b12"])
    nm = _leaky_relu(nm @ params["w22"] + params["b22"])
    comb = jnp.concatenate([md, nm], axis=1)
    comb = _leaky_relu(comb @ params["wh1"] + params["bh1"])
    comb = _leaky_relu(comb @ params["wh2"] + params["bh2"])
    return _sigmoid_exact(comb @ params["wout"] + params["bout"])


if __name__ == "__main__":
    key = jax.random.PRNGKey(0)
    k_params, k_md, k_nm = jax.random.split(key, 3)

    batch = 8
    params = make_params(k_params)
    kernel_params = prepare_params(params)

    mutation_dist = jax.random.uniform(k_md, (batch, 96), jnp.float32)
    num_mut = jax.random.uniform(k_nm, (batch, 1), jnp.float32, 0.0, 10000.0)

    out = classifier_forward(mutation_dist, num_mut, kernel_params)
    out = jax.block_until_ready(out)

    ref = reference_forward(mutation_dist, num_mut, params)
    assert out.shape == (batch, 1)
    max_err = float(jnp.max(jnp.abs(out - ref)))
    # Exact sigmoids in-kernel; remaining error is bf16 matmul operands only.
    assert max_err < 2e-2, f"mismatch vs JAX reference: max_err={max_err}"

    print("KERNEL_OK")
</pallas_src>

<mosaic_0001>
module attributes {stable_mosaic.version = 11 : i64} {
  func.func @classifier_kernel(%arg0: i32, %arg1: memref<8x96xf32, #tpu.memory_space<vmem>>, %arg2: memref<8x1xf32, #tpu.memory_space<vmem>>, %arg3: memref<96x512xbf16, #tpu.memory_space<vmem>>, %arg4: memref<1x512xf32, #tpu.memory_space<vmem>>, %arg5: memref<512x512xbf16, #tpu.memory_space<vmem>>, %arg6: memref<1x512xf32, #tpu.memory_space<vmem>>, %arg7: memref<1x128xf32, #tpu.memory_space<vmem>>, %arg8: memref<1x128xf32, #tpu.memory_space<vmem>>, %arg9: memref<128x128xbf16, #tpu.memory_space<vmem>>, %arg10: memref<1x128xf32, #tpu.memory_space<vmem>>, %arg11: memref<512x512xbf16, #tpu.memory_space<vmem>>, %arg12: memref<1x512xf32, #tpu.memory_space<vmem>>, %arg13: memref<512x512xbf16, #tpu.memory_space<vmem>>, %arg14: memref<1x512xf32, #tpu.memory_space<vmem>>, %arg15: memref<1x512xf32, #tpu.memory_space<vmem>>, %arg16: memref<1x1xf32, #tpu.memory_space<vmem>>, %arg17: memref<8x1xf32, #tpu.memory_space<vmem>>) attributes {dimension_semantics = [#tpu.dimension_semantics<parallel>], iteration_bounds = array<i64: 1>, scalar_prefetch = 0 : i64, scratch_operands = 0 : i64, tpu.core_type = #tpu.core_type<tc>, window_params = [{transform_indices = @transform_0, window_bounds = array<i64: 8, 96>}, {transform_indices = @transform_1, window_bounds = array<i64: 8, 1>}, {pipeline_mode = #tpu.pipeline_mode<synchronous>, transform_indices = @transform_2, window_bounds = array<i64: 96, 512>}, {pipeline_mode = #tpu.pipeline_mode<synchronous>, transform_indices = @transform_3, window_bounds = array<i64: 1, 512>}, {pipeline_mode = #tpu.pipeline_mode<synchronous>, transform_indices = @transform_4, window_bounds = array<i64: 512, 512>}, {pipeline_mode = #tpu.pipeline_mode<synchronous>, transform_indices = @transform_5, window_bounds = array<i64: 1, 512>}, {pipeline_mode = #tpu.pipeline_mode<synchronous>, transform_indices = @transform_6, window_bounds = array<i64: 1, 128>}, {pipeline_mode = #tpu.pipeline_mode<synchronous>, transform_indices = @transform_7, window_bounds = array<i64: 1, 128>}, {pipeline_mode = #tpu.pipeline_mode<synchronous>, transform_indices = @transform_8, window_bounds = array<i64: 128, 128>}, {pipeline_mode = #tpu.pipeline_mode<synchronous>, transform_indices = @transform_9, window_bounds = array<i64: 1, 128>}, {pipeline_mode = #tpu.pipeline_mode<synchronous>, transform_indices = @transform_10, window_bounds = array<i64: 512, 512>}, {pipeline_mode = #tpu.pipeline_mode<synchronous>, transform_indices = @transform_11, window_bounds = array<i64: 1, 512>}, {pipeline_mode = #tpu.pipeline_mode<synchronous>, transform_indices = @transform_12, window_bounds = array<i64: 512, 512>}, {pipeline_mode = #tpu.pipeline_mode<synchronous>, transform_indices = @transform_13, window_bounds = array<i64: 1, 512>}, {pipeline_mode = #tpu.pipeline_mode<synchronous>, transform_indices = @transform_14, window_bounds = array<i64: 1, 512>}, {pipeline_mode = #tpu.pipeline_mode<synchronous>, transform_indices = @transform_15, window_bounds = array<i64: 1, 1>}, {transform_indices = @transform_16, window_bounds = array<i64: 8, 1>}]} {
    %c0 = arith.constant 0 : index
    %c0_0 = arith.constant 0 : index
    %0 = vector.load %arg1[%c0, %c0_0] : memref<8x96xf32, #tpu.memory_space<vmem>>, vector<8x96xf32>
    %1 = arith.truncf %0 : vector<8x96xf32> to vector<8x96xbf16>
    %c0_1 = arith.constant 0 : index
    %c0_2 = arith.constant 0 : index
    %2 = vector.load %arg3[%c0_1, %c0_2] : memref<96x512xbf16, #tpu.memory_space<vmem>>, vector<96x512xbf16>
    %cst = arith.constant dense<0.000000e+00> : vector<8x512xf32>
    %3 = tpu.matmul %1, %2, %cst {dimension_numbers = #tpu.dot_dimension_numbers<[1], [0], [0], [1], [0, 0, 1, 1], [], []>} : vector<8x96xbf16>, vector<96x512xbf16>, vector<8x512xf32> -> vector<8x512xf32>
    %c0_3 = arith.constant 0 : index
    %c0_4 = arith.constant 0 : index
    %4 = vector.load %arg4[%c0_3, %c0_4] : memref<1x512xf32, #tpu.memory_space<vmem>>, vector<1x512xf32>
    %5 = vector.broadcast %4 : vector<1x512xf32> to vector<8x512xf32>
    %6 = arith.addf %3, %5 : vector<8x512xf32>
    %cst_5 = arith.constant 0.000000e+00 : f32
    %7 = vector.broadcast %cst_5 : f32 to vector<8x512xf32>
    %8 = arith.cmpf oge, %6, %7 : vector<8x512xf32>
    %cst_6 = arith.constant 1.000000e-01 : f32
    %9 = vector.broadcast %cst_6 : f32 to vector<8x512xf32>
    %10 = arith.mulf %9, %6 : vector<8x512xf32>
    %11 = arith.select %8, %6, %10 : vector<8x512xi1>, vector<8x512xf32>
    %12 = arith.truncf %11 : vector<8x512xf32> to vector<8x512xbf16>
    %c0_7 = arith.constant 0 : index
    %c0_8 = arith.constant 0 : index
    %13 = vector.load %arg5[%c0_7, %c0_8] : memref<512x512xbf16, #tpu.memory_space<vmem>>, vector<512x512xbf16>
    %cst_9 = arith.constant dense<0.000000e+00> : vector<8x512xf32>
    %14 = tpu.matmul %12, %13, %cst_9 {dimension_numbers = #tpu.dot_dimension_numbers<[1], [0], [0], [1], [0, 0, 1, 1], [], []>} : vector<8x512xbf16>, vector<512x512xbf16>, vector<8x512xf32> -> vector<8x512xf32>
    %c0_10 = arith.constant 0 : index
    %c0_11 = arith.constant 0 : index
    %15 = vector.load %arg6[%c0_10, %c0_11] : memref<1x512xf32, #tpu.memory_space<vmem>>, vector<1x512xf32>
    %16 = vector.broadcast %15 : vector<1x512xf32> to vector<8x512xf32>
    %17 = arith.addf %14, %16 : vector<8x512xf32>
    %cst_12 = arith.constant 0.000000e+00 : f32
    %18 = vector.broadcast %cst_12 : f32 to vector<8x512xf32>
    %19 = arith.cmpf oge, %17, %18 : vector<8x512xf32>
    %cst_13 = arith.constant 1.000000e-01 : f32
    %20 = vector.broadcast %cst_13 : f32 to vector<8x512xf32>
    %21 = arith.mulf %20, %17 : vector<8x512xf32>
    %22 = arith.select %19, %17, %21 : vector<8x512xi1>, vector<8x512xf32>
    %c0_14 = arith.constant 0 : index
    %c0_15 = arith.constant 0 : index
    %23 = vector.load %arg2[%c0_14, %c0_15] : memref<8x1xf32, #tpu.memory_space<vmem>>, vector<8x1xf32>
    %cst_16 = arith.constant 5.000000e+03 : f32
    %24 = vector.broadcast %cst_16 : f32 to vector<8x1xf32>
    %25 = arith.subf %23, %24 : vector<8x1xf32>
    %cst_17 = arith.constant 1.000000e+03 : f32
    %26 = vector.broadcast %cst_17 : f32 to vector<8x1xf32>
    %27 = arith.divf %25, %26 : vector<8x1xf32>
    %cst_18 = arith.constant 0.000000e+00 : f32
    %28 = vector.broadcast %cst_18 : f32 to vector<8x1xf32>
    %29 = arith.subf %28, %27 : vector<8x1xf32>
    %30 = math.exp %29 : vector<8x1xf32>
    %cst_19 = arith.constant 1.000000e+00 : f32
    %31 = vector.broadcast %cst_19 : f32 to vector<8x1xf32>
    %32 = arith.addf %31, %30 : vector<8x1xf32>
    %cst_20 = arith.constant 1.000000e+00 : f32
    %33 = vector.broadcast %cst_20 : f32 to vector<8x1xf32>
    %34 = arith.divf %33, %32 : vector<8x1xf32>
    %c0_21 = arith.constant 0 : index
    %c0_22 = arith.constant 0 : index
    %35 = vector.load %arg7[%c0_21, %c0_22] : memref<1x128xf32, #tpu.memory_space<vmem>>, vector<1x128xf32>
    %36 = vector.broadcast %34 : vector<8x1xf32> to vector<8x128xf32>
    %37 = vector.broadcast %35 : vector<1x128xf32> to vector<8x128xf32>
    %38 = arith.mulf %36, %37 : vector<8x128xf32>
    %c0_23 = arith.constant 0 : index
    %c0_24 = arith.constant 0 : index
    %39 = vector.load %arg8[%c0_23, %c0_24] : memref<1x128xf32, #tpu.memory_space<vmem>>, vector<1x128xf32>
    %40 = vector.broadcast %39 : vector<1x128xf32> to vector<8x128xf32>
    %41 = arith.addf %38, %40 : vector<8x128xf32>
    %cst_25 = arith.constant 0.000000e+00 : f32
    %42 = vector.broadcast %cst_25 : f32 to vector<8x128xf32>
    %43 = arith.cmpf oge, %41, %42 : vector<8x128xf32>
    %cst_26 = arith.constant 1.000000e-01 : f32
    %44 = vector.broadcast %cst_26 : f32 to vector<8x128xf32>
    %45 = arith.mulf %44, %41 : vector<8x128xf32>
    %46 = arith.select %43, %41, %45 : vector<8x128xi1>, vector<8x128xf32>
    %47 = arith.truncf %46 : vector<8x128xf32> to vector<8x128xbf16>
    %c0_27 = arith.constant 0 : index
    %c0_28 = arith.constant 0 : index
    %48 = vector.load %arg9[%c0_27, %c0_28] : memref<128x128xbf16, #tpu.memory_space<vmem>>, vector<128x128xbf16>
    %cst_29 = arith.constant dense<0.000000e+00> : vector<8x128xf32>
    %49 = tpu.matmul %47, %48, %cst_29 {dimension_numbers = #tpu.dot_dimension_numbers<[1], [0], [0], [1], [0, 0, 1, 1], [], []>} : vector<8x128xbf16>, vector<128x128xbf16>, vector<8x128xf32> -> vector<8x128xf32>
    %c0_30 = arith.constant 0 : index
    %c0_31 = arith.constant 0 : index
    %50 = vector.load %arg10[%c0_30, %c0_31] : memref<1x128xf32, #tpu.memory_space<vmem>>, vector<1x128xf32>
    %51 = vector.broadcast %50 : vector<1x128xf32> to vector<8x128xf32>
    %52 = arith.addf %49, %51 : vector<8x128xf32>
    %cst_32 = arith.constant 0.000000e+00 : f32
    %53 = vector.broadcast %cst_32 : f32 to vector<8x128xf32>
    %54 = arith.cmpf oge, %52, %53 : vector<8x128xf32>
    %cst_33 = arith.constant 1.000000e-01 : f32
    %55 = vector.broadcast %cst_33 : f32 to vector<8x128xf32>
    %56 = arith.mulf %55, %52 : vector<8x128xf32>
    %57 = arith.select %54, %52, %56 : vector<8x128xi1>, vector<8x128xf32>
    %cst_34 = arith.constant 0.000000e+00 : f32
    %58 = vector.broadcast %cst_34 : f32 to vector<8x384xf32>
    %59 = tpu.concatenate %58, %57 in 1 : vector<8x384xf32>, vector<8x128xf32> -> vector<8x512xf32>
    %60 = arith.addf %22, %59 : vector<8x512xf32>
    %61 = arith.truncf %60 : vector<8x512xf32> to vector<8x512xbf16>
    %c0_35 = arith.constant 0 : index
    %c0_36 = arith.constant 0 : index
    %62 = vector.load %arg11[%c0_35, %c0_36] : memref<512x512xbf16, #tpu.memory_space<vmem>>, vector<512x512xbf16>
    %cst_37 = arith.constant dense<0.000000e+00> : vector<8x512xf32>
    %63 = tpu.matmul %61, %62, %cst_37 {dimension_numbers = #tpu.dot_dimension_numbers<[1], [0], [0], [1], [0, 0, 1, 1], [], []>} : vector<8x512xbf16>, vector<512x512xbf16>, vector<8x512xf32> -> vector<8x512xf32>
    %c0_38 = arith.constant 0 : index
    %c0_39 = arith.constant 0 : index
    %64 = vector.load %arg12[%c0_38, %c0_39] : memref<1x512xf32, #tpu.memory_space<vmem>>, vector<1x512xf32>
    %65 = vector.broadcast %64 : vector<1x512xf32> to vector<8x512xf32>
    %66 = arith.addf %63, %65 : vector<8x512xf32>
    %cst_40 = arith.constant 0.000000e+00 : f32
    %67 = vector.broadcast %cst_40 : f32 to vector<8x512xf32>
    %68 = arith.cmpf oge, %66, %67 : vector<8x512xf32>
    %cst_41 = arith.constant 1.000000e-01 : f32
    %69 = vector.broadcast %cst_41 : f32 to vector<8x512xf32>
    %70 = arith.mulf %69, %66 : vector<8x512xf32>
    %71 = arith.select %68, %66, %70 : vector<8x512xi1>, vector<8x512xf32>
    %72 = arith.truncf %71 : vector<8x512xf32> to vector<8x512xbf16>
    %c0_42 = arith.constant 0 : index
    %c0_43 = arith.constant 0 : index
    %73 = vector.load %arg13[%c0_42, %c0_43] : memref<512x512xbf16, #tpu.memory_space<vmem>>, vector<512x512xbf16>
    %cst_44 = arith.constant dense<0.000000e+00> : vector<8x512xf32>
    %74 = tpu.matmul %72, %73, %cst_44 {dimension_numbers = #tpu.dot_dimension_numbers<[1], [0], [0], [1], [0, 0, 1, 1], [], []>} : vector<8x512xbf16>, vector<512x512xbf16>, vector<8x512xf32> -> vector<8x512xf32>
    %c0_45 = arith.constant 0 : index
    %c0_46 = arith.constant 0 : index
    %75 = vector.load %arg14[%c0_45, %c0_46] : memref<1x512xf32, #tpu.memory_space<vmem>>, vector<1x512xf32>
    %76 = vector.broadcast %75 : vector<1x512xf32> to vector<8x512xf32>
    %77 = arith.addf %74, %76 : vector<8x512xf32>
    %cst_47 = arith.constant 0.000000e+00 : f32
    %78 = vector.broadcast %cst_47 : f32 to vector<8x512xf32>
    %79 = arith.cmpf oge, %77, %78 : vector<8x512xf32>
    %cst_48 = arith.constant 1.000000e-01 : f32
    %80 = vector.broadcast %cst_48 : f32 to vector<8x512xf32>
    %81 = arith.mulf %80, %77 : vector<8x512xf32>
    %82 = arith.select %79, %77, %81 : vector<8x512xi1>, vector<8x512xf32>
    %c0_49 = arith.constant 0 : index
    %c0_50 = arith.constant 0 : index
    %83 = vector.load %arg15[%c0_49, %c0_50] : memref<1x512xf32, #tpu.memory_space<vmem>>, vector<1x512xf32>
    %84 = vector.broadcast %83 : vector<1x512xf32> to vector<8x512xf32>
    %85 = arith.mulf %82, %84 : vector<8x512xf32>
    %cst_51 = arith.constant dense<0.000000e+00> : vector<8xf32>
    %86 = vector.multi_reduction <add>, %85, %cst_51 [1] : vector<8x512xf32> to vector<8xf32>
    %87 = vector.shape_cast %86 : vector<8xf32> to vector<8x1xf32>
    %c0_52 = arith.constant 0 : index
    %c0_53 = arith.constant 0 : index
    %88 = vector.load %arg16[%c0_52, %c0_53] : memref<1x1xf32, #tpu.memory_space<vmem>>, vector<1x1xf32>
    %89 = vector.broadcast %88 : vector<1x1xf32> to vector<8x1xf32>
    %90 = arith.addf %87, %89 : vector<8x1xf32>
    %cst_54 = arith.constant 0.000000e+00 : f32
    %91 = vector.broadcast %cst_54 : f32 to vector<8x1xf32>
    %92 = arith.subf %91, %90 : vector<8x1xf32>
    %93 = math.exp %92 : vector<8x1xf32>
    %cst_55 = arith.constant 1.000000e+00 : f32
    %94 = vector.broadcast %cst_55 : f32 to vector<8x1xf32>
    %95 = arith.addf %94, %93 : vector<8x1xf32>
    %cst_56 = arith.constant 1.000000e+00 : f32
    %96 = vector.broadcast %cst_56 : f32 to vector<8x1xf32>
    %97 = arith.divf %96, %95 : vector<8x1xf32>
    %c0_57 = arith.constant 0 : index
    %c0_58 = arith.constant 0 : index
    %98 = vector.load %arg17[%c0_57, %c0_58] : memref<8x1xf32, #tpu.memory_space<vmem>>, vector<8x1xf32>
    tpu.vector_store %arg17[%c0_57, %c0_58], %97 {strides = array<i32>} : memref<8x1xf32, #tpu.memory_space<vmem>>, vector<8x1xf32>,
    return
  }
  func.func @transform_0(%arg0: i32) -> (i32, i32) {
    %c0_i32 = arith.constant 0 : i32
    %c0_i32_0 = arith.constant 0 : i32
    return %arg0, %c0_i32 : i32, i32
  }
  func.func @transform_1(%arg0: i32) -> (i32, i32) {
    %c0_i32 = arith.constant 0 : i32
    %c0_i32_0 = arith.constant 0 : i32
    return %arg0, %c0_i32 : i32, i32
  }
  func.func @transform_2(%arg0: i32) -> (i32, i32) {
    %c0_i32 = arith.constant 0 : i32
    %c0_i32_0 = arith.constant 0 : i32
    %c0_i32_1 = arith.constant 0 : i32
    return %c0_i32, %c0_i32_0 : i32, i32
  }
  func.func @transform_3(%arg0: i32) -> (i32, i32) {
    %c0_i32 = arith.constant 0 : i32
    %c0_i32_0 = arith.constant 0 : i32
    %c0_i32_1 = arith.constant 0 : i32
    return %c0_i32, %c0_i32_0 : i32, i32
  }
  func.func @transform_4(%arg0: i32) -> (i32, i32) {
    %c0_i32 = arith.constant 0 : i32
    %c0_i32_0 = arith.constant 0 : i32
    %c0_i32_1 = arith.constant 0 : i32
    return %c0_i32, %c0_i32_0 : i32, i32
  }
  func.func @transform_5(%arg0: i32) -> (i32, i32) {
    %c0_i32 = arith.constant 0 : i32
    %c0_i32_0 = arith.constant 0 : i32
    %c0_i32_1 = arith.constant 0 : i32
    return %c0_i32, %c0_i32_0 : i32, i32
  }
  func.func @transform_6(%arg0: i32) -> (i32, i32) {
    %c0_i32 = arith.constant 0 : i32
    %c0_i32_0 = arith.constant 0 : i32
    %c0_i32_1 = arith.constant 0 : i32
    return %c0_i32, %c0_i32_0 : i32, i32
  }
  func.func @transform_7(%arg0: i32) -> (i32, i32) {
    %c0_i32 = arith.constant 0 : i32
    %c0_i32_0 = arith.constant 0 : i32
    %c0_i32_1 = arith.constant 0 : i32
    return %c0_i32, %c0_i32_0 : i32, i32
  }
  func.func @transform_8(%arg0: i32) -> (i32, i32) {
    %c0_i32 = arith.constant 0 : i32
    %c0_i32_0 = arith.constant 0 : i32
    %c0_i32_1 = arith.constant 0 : i32
    return %c0_i32, %c0_i32_0 : i32, i32
  }
  func.func @transform_9(%arg0: i32) -> (i32, i32) {
    %c0_i32 = arith.constant 0 : i32
    %c0_i32_0 = arith.constant 0 : i32
    %c0_i32_1 = arith.constant 0 : i32
    return %c0_i32, %c0_i32_0 : i32, i32
  }
  func.func @transform_10(%arg0: i32) -> (i32, i32) {
    %c0_i32 = arith.constant 0 : i32
    %c0_i32_0 = arith.constant 0 : i32
    %c0_i32_1 = arith.constant 0 : i32
    return %c0_i32, %c0_i32_0 : i32, i32
  }
  func.func @transform_11(%arg0: i32) -> (i32, i32) {
    %c0_i32 = arith.constant 0 : i32
    %c0_i32_0 = arith.constant 0 : i32
    %c0_i32_1 = arith.constant 0 : i32
    return %c0_i32, %c0_i32_0 : i32, i32
  }
  func.func @transform_12(%arg0: i32) -> (i32, i32) {
    %c0_i32 = arith.constant 0 : i32
    %c0_i32_0 = arith.constant 0 : i32
    %c0_i32_1 = arith.constant 0 : i32
    return %c0_i32, %c0_i32_0 : i32, i32
  }
  func.func @transform_13(%arg0: i32) -> (i32, i32) {
    %c0_i32 = arith.constant 0 : i32
    %c0_i32_0 = arith.constant 0 : i32
    %c0_i32_1 = arith.constant 0 : i32
    return %c0_i32, %c0_i32_0 : i32, i32
  }
  func.func @transform_14(%arg0: i32) -> (i32, i32) {
    %c0_i32 = arith.constant 0 : i32
    %c0_i32_0 = arith.constant 0 : i32
    %c0_i32_1 = arith.constant 0 : i32
    return %c0_i32, %c0_i32_0 : i32, i32
  }
  func.func @transform_15(%arg0: i32) -> (i32, i32) {
    %c0_i32 = arith.constant 0 : i32
    %c0_i32_0 = arith.constant 0 : i32
    %c0_i32_1 = arith.constant 0 : i32
    return %c0_i32, %c0_i32_0 : i32, i32
  }
  func.func @transform_16(%arg0: i32) -> (i32, i32) {
    %c0_i32 = arith.constant 0 : i32
    %c0_i32_0 = arith.constant 0 : i32
    return %arg0, %c0_i32 : i32, i32
  }
}

</mosaic_0001>

<bundles_post_ra>
// kernel: classifier_forward.1
= control target key start
LH: loop header
LB: loop body
LE: loop exit
PB: predicated region body
PF: predicated region fallthrough
CT: control target
= control target key end

     0   :  { %s6316_s0 = inlined_call_operand.vmem [shape: f32[8,96], index: 0, kind: input, shape index: {}]   ;;  %s6317_s1 = inlined_call_operand.vmem [shape: f32[8,1], index: 1, kind: input, shape index: {}]   ;;  %s6318_s2 = inlined_call_operand.hbm [shape: bf16[96,512], index: 2, kind: input, shape index: {}]   ;;  %s6319_s3 = inlined_call_operand.vmem [shape: f32[1,512], index: 3, kind: input, shape index: {}]   ;;  %s6320_s4 = inlined_call_operand.hbm [shape: bf16[512,512], index: 4, kind: input, shape index: {}]   ;;  %s6321_s5 = inlined_call_operand.hbm [shape: f32[1,512], index: 5, kind: input, shape index: {}]   ;;  %s6322_s6 = inlined_call_operand.hbm [shape: f32[1,128], index: 6, kind: input, shape index: {}]   ;;  %s6323_s7 = inlined_call_operand.hbm [shape: f32[1,128], index: 7, kind: input, shape index: {}]   ;;  %s6324_s8 = inlined_call_operand.hbm [shape: bf16[128,128], index: 8, kind: input, shape index: {}]   ;;  %s6325_s9 = inlined_call_operand.hbm [shape: f32[1,128], index: 9, kind: input, shape index: {}]   ;;  %s6326_s10 = inlined_call_operand.hbm [shape: bf16[512,512], index: 10, kind: input, shape index: {}]   ;;  %s6327_s11 = inlined_call_operand.vmem [shape: f32[1,512], index: 11, kind: input, shape index: {}]   ;;  %s6328_s12 = inlined_call_operand.hbm [shape: bf16[512,512], index: 12, kind: input, shape index: {}]   ;;  %s6329_s13 = inlined_call_operand.hbm [shape: f32[1,512], index: 13, kind: input, shape index: {}]   ;;  %s6330_s14 = inlined_call_operand.vmem [shape: f32[1,512], index: 14, kind: input, shape index: {}]   ;;  %s6331_s15 = inlined_call_operand.<no memory space> [shape: f32[1,1], index: 15, kind: input, shape index: {}]   ;;  %s6332_s16 = inlined_call_operand.vmem [shape: f32[8,1], index: 16, kind: output, shape index: {}]  }
   0x1   :  { %6333 = sst [smem:[#allocation25_spill]] %s6316_s0  ;;  %v21_v0 = vstv %s6331_s15 }
   0x2   :  { %22 = vst [vmem:[#allocation2] sm:$0x1] %v21_v0 }
   0x3   :  { %23 = vsyncpa [#allocation4], 0 }
   0x4   :  { %24 = vsyncpa [#allocation6], 0 }
   0x5   :  { %25 = vsyncpa [#allocation9], 0 }
   0x6   :  { %26 = vsyncpa [#allocation12], 0 }
   0x7   :  { %27 = vsyncpa [#allocation15], 0 }
   0x8   :  { %28 = vsyncpa [#allocation18], 0  ;;  %s52_s25 = sshll.u32 %s6320_s4, 4  ;;  %s5991_s26 = smov [#allocation5]   ;;  %s53_s25 = int_to_ptr.hbm [resolvable:$true] %s52_s25 }
   0x9   :  { %s54_s27 = sshll.u32 %s5991_s26, 4  ;;  %s77_s30 = sshll.u32 %s6322_s6, 4  ;;  %s55_s27 = int_to_ptr.vmem [resolvable:$true] %s54_s27  ;;  %s78_s30 = int_to_ptr.hbm [resolvable:$true] %s77_s30 }
   0xa   :  { %s5992_s15 = smov 256   ;;  %s5993_s0 = smov 16  }
   0xb   :  { %60 = dma.hbm_to_vmem [thread:$0]  %s53_s25, 16384, %s55_s27, [#allocation6], %s5992_s15, %s5992_s15, %s5993_s0  }
   0xc   :  { %s5994_s17 = smov [#allocation8]   ;;  %s98_s4 = sshll.u32 %s6324_s8, 4  ;;  %s99_s4 = int_to_ptr.hbm [resolvable:$true] %s98_s4 }
   0xd   :  { %s79_s18 = sshll.u32 %s5994_s17, 4  ;;  %s5995_s21 = smov [#allocation11]   ;;  %s80_s18 = int_to_ptr.vmem [resolvable:$true] %s79_s18 }
   0xe   :  { %82 = dma.hbm_to_vmem [thread:$0]  %s78_s30, 16, %s80_s18, [#allocation9]  }
   0xf   :  { %s100_s22 = sshll.u32 %s5995_s21, 4  ;;  %s122_s24 = sshll.u32 %s6326_s10, 4  ;;  %s101_s22 = int_to_ptr.vmem [resolvable:$true] %s100_s22  ;;  %s123_s24 = int_to_ptr.hbm [resolvable:$true] %s122_s24 }
  0x10   :  { %s5996_s26 = smov 64   ;;  %s5997_s28 = smov 4  }
  0x11   :  { %106 = dma.hbm_to_vmem [thread:$0]  %s99_s4, 1024, %s101_s22, [#allocation12], %s5996_s26, %s5996_s26, %s5997_s28  }
  0x12   :  { %s5998_s25 = smov [#allocation14]   ;;  %s37_s8 = sshll.u32 %s6318_s2, 4  ;;  %s38_s8 = int_to_ptr.hbm [resolvable:$true] %s37_s8 }
  0x13   :  { %s124_s27 = sshll.u32 %s5998_s25, 4  ;;  %s66_s10 = sshll.u32 %s6321_s5, 4  ;;  %s125_s27 = int_to_ptr.vmem [resolvable:$true] %s124_s27  ;;  %s67_s10 = int_to_ptr.hbm [resolvable:$true] %s66_s10 }
  0x14   :  { %130 = dma.hbm_to_vmem [thread:$0]  %s123_s24, 16384, %s125_s27, [#allocation15], %s5992_s15, %s5992_s15, %s5993_s0  }
  0x15   :  { %s5999_s19 = smov [#allocation3]   ;;  %s6000_s4 = smov [#allocation7]  }
  0x16   :  { %s39_s20 = sshll.u32 %s5999_s19, 4  ;;  %s68_s2 = sshll.u32 %s6000_s4, 4  ;;  %s40_s20 = int_to_ptr.vmem [resolvable:$true] %s39_s20  ;;  %s69_s2 = int_to_ptr.vmem [resolvable:$true] %s68_s2 }
  0x17   :  { %45 = dma.hbm_to_vmem [thread:$0]  %s38_s8, 3072, %s40_s20, [#allocation4], %s5992_s15, %s5992_s15, %s5993_s0  }
  0x18   :  { %s88_s6 = sshll.u32 %s6323_s7, 4  ;;  %s112_s5 = sshll.u32 %s6325_s9, 4  ;;  %s89_s6 = int_to_ptr.hbm [resolvable:$true] %s88_s6  ;;  %s113_s5 = int_to_ptr.hbm [resolvable:$true] %s112_s5 }
  0x19   :  { %71 = dma.hbm_to_vmem [thread:$0]  %s67_s10, 64, %s69_s2, [#allocation6]  }
  0x1a   :  { %s6001_s26 = smov [#allocation10]   ;;  %s6002_s25 = smov [#allocation13]  }
  0x1b   :  { %s90_s28 = sshll.u32 %s6001_s26, 4  ;;  %s114_s27 = sshll.u32 %s6002_s25, 4  ;;  %s91_s28 = int_to_ptr.vmem [resolvable:$true] %s90_s28  ;;  %s115_s27 = int_to_ptr.vmem [resolvable:$true] %s114_s27 }
  0x1c   :  { %93 = dma.hbm_to_vmem [thread:$0]  %s89_s6, 16, %s91_s28, [#allocation9]  }
  0x1d   :  { %s137_s8 = sshll.u32 %s6328_s12, 4  ;;  %s151_s18 = sshll.u32 %s6329_s13, 4  ;;  %s138_s8 = int_to_ptr.hbm [resolvable:$true] %s137_s8  ;;  %s152_s18 = int_to_ptr.hbm [resolvable:$true] %s151_s18 }
  0x1e   :  { %117 = dma.hbm_to_vmem [thread:$0]  %s113_s5, 16, %s115_s27, [#allocation12]  }
  0x1f   :  { %s6003_s10 = smov [#allocation16]   ;;  %s6004_s19 = smov [#allocation17]  }
  0x20   :  { %s139_s9 = sshll.u32 %s6003_s10, 4  ;;  %s153_s20 = sshll.u32 %s6004_s19, 4  ;;  %s140_s9 = int_to_ptr.vmem [resolvable:$true] %s139_s9  ;;  %s154_s20 = int_to_ptr.vmem [resolvable:$true] %s153_s20 }
  0x21   :  { %145 = dma.hbm_to_vmem [thread:$0]  %s138_s8, 16384, %s140_s9, [#allocation15], %s5992_s15, %s5992_s15, %s5993_s0  }
  0x22   :  { %156 = dma.hbm_to_vmem [thread:$0]  %s152_s18, 64, %s154_s20, [#allocation18]  }
  0x23   :  { %5979 = dma.done.wait [#allocation4], 3072  }
  0x24   :  { %5980 = vsyncadd [#allocation4], 4294964224 }
  0x25   :  { %5981 = dma.done.wait [#allocation6], 16448  }
  0x26   :  { %5982 = vsyncadd [#allocation6], 4294950848 }
  0x27   :  { %5983 = dma.done.wait [#allocation9], 32  }
  0x28   :  { %5984 = vsyncadd [#allocation9], 4294967264 }
  0x29   :  { %5985 = dma.done.wait [#allocation12], 1040  }
  0x2a   :  { %5986 = vsyncadd [#allocation12], 4294966256 }
  0x2b   :  { %5987 = dma.done.wait [#allocation15], 32768  }
  0x2c   :  { %5988 = vsyncadd [#allocation15], 4294934528 }
  0x2d   :  { %5989 = dma.done.wait [#allocation18], 64  }
  0x2e   :  { %5990 = vsyncadd [#allocation18], 4294967232  ;;  %v3705_v1 = vld [vmem:[#allocation3 + $0xa0] sm:$0xf]  ;;  %v5314_v2 = vld [vmem:[#allocation3 + $0xac] sm:$0xf0] }
  0x2f   :  { %v3713_v3 = vld [vmem:[#allocation3 + $0xa8] sm:$0xf]  ;;  %v3706_v4 = vor.u32 %v5314_v2, %v3705_v1  ;;  %v5315_v5 = vld [vmem:[#allocation3 + $0xb4] sm:$0xf0]  ;;  %v5313_v6 = vld [vmem:[#allocation3 + $0xac] sm:$0xf] }
  0x30   :  { %v3715_v7 = vld [vmem:[#allocation3 + $0xb8] sm:$0xf0]  ;;  %v3714_v8 = vor.u32 %v5315_v5, %v3713_v3  ;;  %v3689_v10 = vld [vmem:[#allocation3 + $0x80] sm:$0xf]  ;;  %v5310_v11 = vld [vmem:[#allocation3 + $0x8c] sm:$0xf0] }
  0x31   :  { %v3718_v9 = vor.u32 %v5313_v6, %v3715_v7  ;;  %v3697_v12 = vld [vmem:[#allocation3 + $0x88] sm:$0xf]  ;;  %364 = vmatpush.bf16.msra.mxu1 %v3706_v4  ;;  %v3690_v13 = vor.u32 %v5310_v11, %v3689_v10  ;;  %v5311_v14 = vld [vmem:[#allocation3 + $0x94] sm:$0xf0]  ;;  %v5309_v15 = vld [vmem:[#allocation3 + $0x8c] sm:$0xf] }
  0x32   :  { %v3699_v16 = vld [vmem:[#allocation3 + $0x98] sm:$0xf0]  ;;  %390 = vmatpush.bf16.msra.mxu2 %v3714_v8  ;;  %v3698_v17 = vor.u32 %v5311_v14, %v3697_v12  ;;  %v3673_v19 = vld [vmem:[#allocation3 + $0x60] sm:$0xf]  ;;  %v5306_v20 = vld [vmem:[#allocation3 + $0x6c] sm:$0xf0] }
  0x33   :  { %403 = vmatpush.bf16.msra.mxu3 %v3718_v9  ;;  %v3702_v18 = vor.u32 %v5309_v15, %v3699_v16  ;;  %v3681_v21 = vld [vmem:[#allocation3 + $0x68] sm:$0xf]  ;;  %v5307_v22 = vld [vmem:[#allocation3 + $0x74] sm:$0xf0]  ;;  %v5305_v23 = vld [vmem:[#allocation3 + $0x6c] sm:$0xf]  ;;  %v3674_v25 = vor.u32 %v5306_v20, %v3673_v19 }
  0x34   :  { %v3683_v24 = vld [vmem:[#allocation3 + $0x78] sm:$0xf0]  ;;  %v3682_v26 = vor.u32 %v5307_v22, %v3681_v21  ;;  %v3657_v28 = vld [vmem:[#allocation3 + $0x40] sm:$0xf]  ;;  %v5302_v29 = vld [vmem:[#allocation3 + $0x4c] sm:$0xf0] }
  0x35   :  { %365 = vmatpush.bf16.msra.mxu1 %v3690_v13  ;;  %v3686_v27 = vor.u32 %v5305_v23, %v3683_v24  ;;  %v3665_v30 = vld [vmem:[#allocation3 + $0x48] sm:$0xf]  ;;  %v5303_v31 = vld [vmem:[#allocation3 + $0x54] sm:$0xf0]  ;;  %v5301_v32 = vld [vmem:[#allocation3 + $0x4c] sm:$0xf]  ;;  %v3658_v34 = vor.u32 %v5302_v29, %v3657_v28 }
  0x36   :  { %391 = vmatpush.bf16.msra.mxu2 %v3698_v17  ;;  %v3667_v33 = vld [vmem:[#allocation3 + $0x58] sm:$0xf0]  ;;  %v3666_v35 = vor.u32 %v5303_v31, %v3665_v30  ;;  %v3641_v37 = vld [vmem:[#allocation3 + $0x20] sm:$0xf]  ;;  %v5298_v38 = vld [vmem:[#allocation3 + $0x2c] sm:$0xf0] }
  0x37   :  { %404 = vmatpush.bf16.msra.mxu3 %v3702_v18  ;;  %v3670_v36 = vor.u32 %v5301_v32, %v3667_v33  ;;  %v3649_v39 = vld [vmem:[#allocation3 + $0x28] sm:$0xf]  ;;  %v5299_v40 = vld [vmem:[#allocation3 + $0x34] sm:$0xf0]  ;;  %v5297_v41 = vld [vmem:[#allocation3 + $0x2c] sm:$0xf]  ;;  %v3642_v45 = vor.u32 %v5298_v38, %v3641_v37 }
  0x38   :  { %v3651_v42 = vld [vmem:[#allocation3 + $0x38] sm:$0xf0]  ;;  %v3625_v43 = vld [vmem:[#allocation3] sm:$0xf]  ;;  %v5294_v44 = vld [vmem:[#allocation3 + $0xc] sm:$0xf0]  ;;  %v3650_v49 = vor.u32 %v5299_v40, %v3649_v39 }
  0x39   :  { %366 = vmatpush.bf16.msra.mxu1 %v3674_v25  ;;  %v3633_v46 = vld [vmem:[#allocation3 + $0x8] sm:$0xf]  ;;  %v5295_v47 = vld [vmem:[#allocation3 + $0x14] sm:$0xf0]  ;;  %v5293_v48 = vld [vmem:[#allocation3 + $0xc] sm:$0xf]  ;;  %v3654_v50 = vor.u32 %v5297_v41, %v3651_v42  ;;  %v3626_v61 = vor.u32 %v5294_v44, %v3625_v43 }
  0x3a   :  { %392 = vmatpush.bf16.msra.mxu2 %v3682_v26  ;;  %v3635_v51 = vld [vmem:[#allocation3 + $0x18] sm:$0xf0]  ;;  %v3837_v52 = vld [vmem:[#allocation5 + $0xe0] sm:$0xf]  ;;  %v5346_v53 = vld [vmem:[#allocation5 + $0xec] sm:$0xf0]  ;;  %v3634_v2 = vor.u32 %v5295_v47, %v3633_v46 }
  0x3b   :  { %405 = vmatpush.bf16.msra.mxu3 %v3686_v27  ;;  %v5312_v54 = vld [vmem:[#allocation3 + $0xa4] sm:$0xf]  ;;  %v3838_v55 = vor.u32 %v5346_v53, %v3837_v52  ;;  %v3821_v56 = vld [vmem:[#allocation5 + $0xc0] sm:$0xf]  ;;  %v5342_v57 = vld [vmem:[#allocation5 + $0xcc] sm:$0xf0]  ;;  %v3638_v3 = vor.u32 %v5293_v48, %v3635_v51 }
  0x3c   :  { %v3707_v58 = vld [vmem:[#allocation3 + $0xb0] sm:$0xf0]  ;;  %v4093_v59 = vld [vmem:[#allocation5 + $0x2e0] sm:$0xf]  ;;  %v5410_v60 = vld [vmem:[#allocation5 + $0x2ec] sm:$0xf0]  ;;  %v3822_v63 = vor.u32 %v5342_v57, %v3821_v56 }
  0x3d   :  { %367 = vmatpush.bf16.msra.mxu1 %v3658_v34  ;;  %s6334_s15 = sld [smem:[#allocation25_spill]]  ;;  %1208 = vmatpush.bf16.msra.mxu0 %v3838_v55  ;;  %v4221_v0 = vld [vmem:[#allocation5 + $0x3e0] sm:$0xf]  ;;  %v5442_v1 = vld [vmem:[#allocation5 + $0x3ec] sm:$0xf0]  ;;  %v3710_v4 = vor.u32 %v5312_v54, %v3707_v58  ;;  %v4094_v6 = vor.u32 %v5410_v60, %v4093_v59  ;;  %vm358_vm0 = vcmask 785408  }
  0x3e   :  { %393 = vmatpush.bf16.msra.mxu2 %v3666_v35  ;;  %v5308_v5 = vld [vmem:[#allocation3 + $0x84] sm:$0xf]  ;;  %v3805_v7 = vld [vmem:[#allocation5 + $0xa0] sm:$0xf]  ;;  %v5338_v8 = vld [vmem:[#allocation5 + $0xac] sm:$0xf0]  ;;  %v4222_v11 = vor.u32 %v5442_v1, %v4221_v0 }
  0x3f   :  { %406 = vmatpush.bf16.msra.mxu3 %v3670_v36  ;;  %v3691_v10 = vld [vmem:[#allocation3 + $0x90] sm:$0xf0]  ;;  %v4077_v12 = vld [vmem:[#allocation5 + $0x2c0] sm:$0xf]  ;;  %v5406_v13 = vld [vmem:[#allocation5 + $0x2cc] sm:$0xf0]  ;;  %v3806_v18 = vor.u32 %v5338_v8, %v3805_v7 }
  0x40   :  { %v4205_v14 = vld [vmem:[#allocation5 + $0x3c0] sm:$0xf]  ;;  %v5438_v15 = vld [vmem:[#allocation5 + $0x3cc] sm:$0xf0]  ;;  %v5304_v16 = vld [vmem:[#allocation3 + $0x64] sm:$0xf]  ;;  %v3694_v22 = vor.u32 %v5308_v5, %v3691_v10  ;;  %v4078_v23 = vor.u32 %v5406_v13, %v4077_v12 }
  0x41   :  { %368 = vmatpush.bf16.msra.mxu1 %v3642_v45  ;;  %1209 = vmatpush.bf16.msra.mxu0 %v3822_v63  ;;  %v3675_v17 = vld [vmem:[#allocation3 + $0x70] sm:$0xf0]  ;;  %v3789_v19 = vld [vmem:[#allocation5 + $0x80] sm:$0xf]  ;;  %v5334_v20 = vld [vmem:[#allocation5 + $0x8c] sm:$0xf0]  ;;  %v4206_v26 = vor.u32 %v5438_v15, %v4205_v14 }
  0x42   :  { %394 = vmatpush.bf16.msra.mxu2 %v3650_v49  ;;  %v4061_v21 = vld [vmem:[#allocation5 + $0x2a0] sm:$0xf]  ;;  %v5402_v24 = vld [vmem:[#allocation5 + $0x2ac] sm:$0xf0]  ;;  %v6005_v28 = vmov 1000.0   ;;  %v3790_v29 = vor.u32 %v5334_v20, %v3789_v19  ;;  %v6006_v30 = vmov 0   ;;  %v3678_v31 = vor.u32 %v5304_v16, %v3675_v17 }
  0x43   :  { %v202_v62 = vld [vmem:[%s6334_s15] sm:$0xff]  ;;  %407 = vmatpush.bf16.msra.mxu3 %v3654_v50  ;;  %v5434_v27 = vld [vmem:[#allocation5 + $0x3ac] sm:$0xf0]  ;;  %5729 = vrcp.f32 %v6005_v28  ;;  %5724 = vset.pattern.permute.xlu0 %v6006_v30  ;;  %v4062_v33 = vor.u32 %v5402_v24, %v4061_v21  ;;  %v3659_v36 = vld [vmem:[#allocation3 + $0x50] sm:$0xf0] }
  0x44   :  { %v6140_v9 = vpack.c.bf16 %v202_v62, %v202_v62  ;;  %v4189_v25 = vld [vmem:[#allocation5 + $0x3a0] sm:$0xf]  ;;  %v5300_v32 = vld [vmem:[#allocation3 + $0x44] sm:$0xf]  ;;  %v5330_v35 = vld [vmem:[#allocation5 + $0x6c] sm:$0xf0] }
  0x45   :  { %369 = vmatpush.bf16.msra.mxu1 %v3626_v61  ;;  %1210 = vmatpush.bf16.msra.mxu0 %v3806_v18  ;;  %v3773_v34 = vld [vmem:[#allocation5 + $0x60] sm:$0xf]  ;;  %v4190_v37 = vor.u32 %v5434_v27, %v4189_v25  ;;  %v5398_v39 = vld [vmem:[#allocation5 + $0x28c] sm:$0xf0]  ;;  %v3662_v44 = vor.u32 %v5300_v32, %v3659_v36  ;;  %v5296_v48 = vld [vmem:[#allocation3 + $0x24] sm:$0xf] }
  0x46   :  { %395 = vmatpush.bf16.msra.mxu2 %v3634_v2  ;;  %v4045_v38 = vld [vmem:[#allocation5 + $0x280] sm:$0xf]  ;;  %v5430_v41 = vld [vmem:[#allocation5 + $0x38c] sm:$0xf0]  ;;  %v3774_v42 = vor.u32 %v5330_v35, %v3773_v34  ;;  %v3643_v49 = vld [vmem:[#allocation3 + $0x30] sm:$0xf0] }
  0x47   :  { %408 = vmatpush.bf16.msra.mxu3 %v3638_v3  ;;  %v4173_v40 = vld [vmem:[#allocation5 + $0x380] sm:$0xf]  ;;  %v4046_v45 = vor.u32 %v5398_v39, %v4045_v38  ;;  %v5326_v47 = vld [vmem:[#allocation5 + $0x4c] sm:$0xf0]  ;;  %v3646_v55 = vor.u32 %v5296_v48, %v3643_v49  ;;  %v5292_v56 = vld [vmem:[#allocation3 + $0x4] sm:$0xf] }
  0x48   :  { %3719 = vmatmul.msk.bf16.vlgmr.msra.gmra.mxu1 %vm358_vm0, %v6140_v9  ;;  %v3757_v46 = vld [vmem:[#allocation5 + $0x40] sm:$0xf]  ;;  %v4174_v50 = vor.u32 %v5430_v41, %v4173_v40  ;;  %v3627_v57 = vld [vmem:[#allocation3 + $0x10] sm:$0xf0]  ;;  %v5378_v1 = vld [vmem:[#allocation5 + $0x1ec] sm:$0xf0] }
  0x49   :  { %377 = vmatpush.bf16.msrb.mxu1 %v3710_v4  ;;  %3721 = vmatmul.msk.bf16.vlgmr.msra.gmra.mxu2 %vm358_vm0, %v6140_v9  ;;  %v5730_v43 = vpop.eup %5729  ;;  %v3758_v52 = vor.u32 %v5326_v47, %v3757_v46  ;;  %v1428_v53 = vld [vmem:[%s6317_s1] sm:$0xff]  ;;  %v3630_v61 = vor.u32 %v5292_v56, %v3627_v57  ;;  %v5394_v4 = vld [vmem:[#allocation5 + $0x26c] sm:$0xf0]  ;;  %v3823_v41 = vld [vmem:[#allocation5 + $0xd0] sm:$0xf0] }
  0x4a   :  { %1234 = vmatpush.bf16.msrb.mxu2 %v4094_v6  ;;  %3722 = vmatmul.msk.bf16.vlgmr.msra.gmra.mxu3 %vm358_vm0, %v6140_v9  ;;  %v1431_v51 = vmul.f32 1000.0, %v5730_v43  ;;  %v4235_v59 = vadd.f32 -5000.0, %v1428_v53  ;;  %vm1435_vm1 = vweird.f32 %v5730_v43  ;;  %v3965_v0 = vld [vmem:[#allocation5 + $0x1e0] sm:$0xf]  ;;  %v5426_v6 = vld [vmem:[#allocation5 + $0x36c] sm:$0xf0] }
  0x4b   :  { %1247 = vmatpush.bf16.msrb.mxu3 %v4222_v11  ;;  %1211 = vmatpush.bf16.msra.mxu0 %v3790_v29  ;;  %v4029_v2 = vld [vmem:[#allocation5 + $0x260] sm:$0xf]  ;;  %v3966_v3 = vor.u32 %v5378_v1, %v3965_v0  ;;  %v5322_v12 = vld [vmem:[#allocation5 + $0x2c] sm:$0xf0]  ;;  %v5344_v29 = vld [vmem:[#allocation5 + $0xe4] sm:$0xf] }
  0x4c   :  { %v1432_v54 = vsub.f32 1.0, %v1431_v51  ;;  %v4157_v5 = vld [vmem:[#allocation5 + $0x360] sm:$0xf]  ;;  %v4030_v8 = vor.u32 %v5394_v4, %v4029_v2  ;;  %v5374_v15 = vld [vmem:[#allocation5 + $0x1cc] sm:$0xf0] }
  0x4d   :  { %378 = vmatpush.bf16.msrb.mxu1 %v3694_v22  ;;  %v4158_v10 = vor.u32 %v5426_v6, %v4157_v5  ;;  %v3741_v11 = vld [vmem:[#allocation5 + $0x20] sm:$0xf]  ;;  %v5390_v19 = vld [vmem:[#allocation5 + $0x24c] sm:$0xf0]  ;;  %v5340_v40 = vld [vmem:[#allocation5 + $0xc4] sm:$0xf] }
  0x4e   :  { %1235 = vmatpush.bf16.msrb.mxu2 %v4078_v23  ;;  %v1433_v58 = vmul.f32 %v5730_v43, %v1432_v54  ;;  %v3742_v13 = vor.u32 %v5322_v12, %v3741_v11  ;;  %v3949_v14 = vld [vmem:[#allocation5 + $0x1c0] sm:$0xf]  ;;  %v5422_v22 = vld [vmem:[#allocation5 + $0x34c] sm:$0xf0]  ;;  %v5408_v48 = vld [vmem:[#allocation5 + $0x2e4] sm:$0xf] }
  0x4f   :  { %1248 = vmatpush.bf16.msrb.mxu3 %v4206_v26  ;;  %1212 = vmatpush.bf16.msra.mxu0 %v3774_v42  ;;  %v4013_v16 = vld [vmem:[#allocation5 + $0x240] sm:$0xf]  ;;  %v3950_v18 = vor.u32 %v5374_v15, %v3949_v14  ;;  %v5318_v24 = vld [vmem:[#allocation5 + $0xc] sm:$0xf0]  ;;  %v3826_v42 = vor.u32 %v5340_v40, %v3823_v41  ;;  %v4095_v49 = vld [vmem:[#allocation5 + $0x2f0] sm:$0xf0] }
  0x50   :  { %v1434_v60 = vadd.f32 %v5730_v43, %v1433_v58  ;;  %v4141_v20 = vld [vmem:[#allocation5 + $0x340] sm:$0xf]  ;;  %v4014_v21 = vor.u32 %v5390_v19, %v4013_v16  ;;  %v5370_v28 = vld [vmem:[#allocation5 + $0x1ac] sm:$0xf0]  ;;  %v5440_v53 = vld [vmem:[#allocation5 + $0x3e4] sm:$0xf]  ;;  %v4098_v57 = vor.u32 %v5408_v48, %v4095_v49 }
  0x51   :  { %379 = vmatpush.bf16.msrb.mxu1 %v3678_v31  ;;  %v3725_v23 = vld [vmem:[#allocation5] sm:$0xf]  ;;  %v4142_v25 = vor.u32 %v5422_v22, %v4141_v20  ;;  %v3839_v31 = vld [vmem:[#allocation5 + $0xf0] sm:$0xf0]  ;;  %v5418_v36 = vld [vmem:[#allocation5 + $0x32c] sm:$0xf0] }
  0x52   :  { %1236 = vmatpush.bf16.msrb.mxu2 %v4062_v33  ;;  %v1436_v62 = vsel %vm1435_vm1, %v5730_v43, %v1434_v60  ;;  %v3726_v26 = vor.u32 %v5318_v24, %v3725_v23  ;;  %v3933_v27 = vld [vmem:[#allocation5 + $0x1a0] sm:$0xf]  ;;  %v5386_v33 = vld [vmem:[#allocation5 + $0x22c] sm:$0xf0]  ;;  %v3842_v34 = vor.u32 %v5344_v29, %v3839_v31  ;;  %v4223_v54 = vld [vmem:[#allocation5 + $0x3f0] sm:$0xf0] }
  0x53   :  { %1249 = vmatpush.bf16.msrb.mxu3 %v4190_v37  ;;  %1213 = vmatpush.bf16.msra.mxu0 %v3758_v52  ;;  %v1437_v63 = vmul.f32 %v4235_v59, %v1436_v62  ;;  %v3934_v30 = vor.u32 %v5370_v28, %v3933_v27  ;;  %v3997_v32 = vld [vmem:[#allocation5 + $0x220] sm:$0xf]  ;;  %v5366_v39 = vld [vmem:[#allocation5 + $0x18c] sm:$0xf0]  ;;  %v4226_v58 = vor.u32 %v5440_v53, %v4223_v54  ;;  %v5336_v60 = vld [vmem:[#allocation5 + $0xa4] sm:$0xf] }
  0x54   :  { %v4125_v35 = vld [vmem:[#allocation5 + $0x320] sm:$0xf]  ;;  %v5414_v47 = vld [vmem:[#allocation5 + $0x30c] sm:$0xf0]  ;;  %v5404_v62 = vld [vmem:[#allocation5 + $0x2c4] sm:$0xf] }
  0x55   :  { %380 = vmatpush.bf16.msrb.mxu1 %v3662_v44  ;;  %v1438_v7 = vsub.f32 0.0, %v1437_v63  ;;  %v3917_v37 = vld [vmem:[#allocation5 + $0x180] sm:$0xf]  ;;  %v4126_v38 = vor.u32 %v5418_v36, %v4125_v35  ;;  %v5382_v44 = vld [vmem:[#allocation5 + $0x20c] sm:$0xf0] }
  0x56   :  { %1237 = vmatpush.bf16.msrb.mxu2 %v4046_v45  ;;  %v3981_v43 = vld [vmem:[#allocation5 + $0x200] sm:$0xf]  ;;  %v3918_v46 = vor.u32 %v5366_v39, %v3917_v37  ;;  %v5362_v59 = vld [vmem:[#allocation5 + $0x16c] sm:$0xf0]  ;;  %v4079_v63 = vld [vmem:[#allocation5 + $0x2d0] sm:$0xf0] }
  0x57   :  { %1250 = vmatpush.bf16.msrb.mxu3 %v4174_v50  ;;  %v1439_v17 = vmul.f32 1.442695, %v1438_v7  ;;  %1214 = vmatpush.bf16.msra.mxu0 %v3742_v13  ;;  %v4109_v45 = vld [vmem:[#allocation5 + $0x300] sm:$0xf]  ;;  %v3982_v51 = vor.u32 %v5382_v44, %v3981_v43  ;;  %v5436_v1 = vld [vmem:[#allocation5 + $0x3c4] sm:$0xf]  ;;  %v4082_v6 = vor.u32 %v5404_v62, %v4079_v63 }
  0x58   :  { %v4110_v52 = vor.u32 %v5414_v47, %v4109_v45  ;;  %v3885_v4 = vld [vmem:[#allocation5 + $0x140] sm:$0xf]  ;;  %v5358_v5 = vld [vmem:[#allocation5 + $0x14c] sm:$0xf0]  ;;  %v5400_v12 = vld [vmem:[#allocation5 + $0x2a4] sm:$0xf] }
  0x59   :  { %381 = vmatpush.bf16.msrb.mxu1 %v3646_v55  ;;  %5731 = vpow2.f32 %v1439_v17  ;;  %v3901_v55 = vld [vmem:[#allocation5 + $0x160] sm:$0xf]  ;;  %v4063_v13 = vld [vmem:[#allocation5 + $0x2b0] sm:$0xf0]  ;;  %v5432_v14 = vld [vmem:[#allocation5 + $0x3a4] sm:$0xf]  ;;  %v3886_v15 = vor.u32 %v5358_v5, %v3885_v4 }
  0x5a   :  { %1238 = vmatpush.bf16.msrb.mxu2 %v4030_v8  ;;  %v3902_v0 = vor.u32 %v5362_v59, %v3901_v55  ;;  %v5332_v8 = vld [vmem:[#allocation5 + $0x84] sm:$0xf]  ;;  %v4191_v16 = vld [vmem:[#allocation5 + $0x3b0] sm:$0xf0]  ;;  %v3869_v17 = vld [vmem:[#allocation5 + $0x120] sm:$0xf]  ;;  %v4066_v23 = vor.u32 %v5400_v12, %v4063_v13 }
  0x5b   :  { %1251 = vmatpush.bf16.msrb.mxu3 %v4158_v10  ;;  %1215 = vmatpush.bf16.msra.mxu0 %v3726_v26  ;;  %v3791_v10 = vld [vmem:[#allocation5 + $0x90] sm:$0xf0]  ;;  %v5328_v19 = vld [vmem:[#allocation5 + $0x64] sm:$0xf]  ;;  %v4194_v24 = vor.u32 %v5432_v14, %v4191_v16  ;;  %v3853_v35 = vld [vmem:[#allocation5 + $0x100] sm:$0xf] }
  0x5c   :  { %v3794_v11 = vor.u32 %v5332_v8, %v3791_v10  ;;  %v3775_v20 = vld [vmem:[#allocation5 + $0x70] sm:$0xf0]  ;;  %v5428_v29 = vld [vmem:[#allocation5 + $0x384] sm:$0xf]  ;;  %v5350_v36 = vld [vmem:[#allocation5 + $0x10c] sm:$0xf0] }
  0x5d   :  { %382 = vmatpush.bf16.msrb.mxu1 %v3630_v61  ;;  %v3807_v61 = vld [vmem:[#allocation5 + $0xb0] sm:$0xf0]  ;;  %v3778_v27 = vor.u32 %v5328_v19, %v3775_v20  ;;  %v5392_v49 = vld [vmem:[#allocation5 + $0x264] sm:$0xf] }
  0x5e   :  { %1239 = vmatpush.bf16.msrb.mxu2 %v4014_v21  ;;  %v3810_v2 = vor.u32 %v5336_v60, %v3807_v61  ;;  %v4047_v28 = vld [vmem:[#allocation5 + $0x290] sm:$0xf0]  ;;  %v5320_v55 = vld [vmem:[#allocation5 + $0x24] sm:$0xf] }
  0x5f   :  { %1252 = vmatpush.bf16.msrb.mxu3 %v4142_v25  ;;  %1260 = vmatpush.bf16.msrb.mxu0 %v3842_v34  ;;  %v5732_v50 = vpop.eup %5731  ;;  %v5396_v25 = vld [vmem:[#allocation5 + $0x284] sm:$0xf]  ;;  %v3759_v34 = vld [vmem:[#allocation5 + $0x50] sm:$0xf0] }
  0x60   :  { %3720 = vmatmul.msk.bf16.vlgmr.msrb.gmra.mxu1 %vm358_vm0, %v6140_v9  ;;  %v3998_v9 = vor.u32 %v5386_v33, %v3997_v32  ;;  %v6153_v56 = vadd.f32 1.0, %v5732_v50  ;;  %v5324_v33 = vld [vmem:[#allocation5 + $0x44] sm:$0xf]  ;;  %v4050_v37 = vor.u32 %v5396_v25, %v4047_v28  ;;  %v3967_v47 = vld [vmem:[#allocation5 + $0x1f0] sm:$0xf0] }
  0x61   :  { %1221 = vmatpush.bf16.msra.mxu1 %v3966_v3  ;;  %v4207_v3 = vld [vmem:[#allocation5 + $0x3d0] sm:$0xf0]  ;;  %v3762_v40 = vor.u32 %v5324_v33, %v3759_v34  ;;  %v5388_v61 = vld [vmem:[#allocation5 + $0x244] sm:$0xf]  ;;  %v6163_v34 = vld [vmem:[%s6319_s3] sm:$0xf] }
  0x62   :  { %1240 = vmatpush.bf16.msrb.mxu2 %v3998_v9  ;;  %5733 = vrcp.f32 %v6153_v56  ;;  %v4210_v7 = vor.u32 %v5436_v1, %v4207_v3  ;;  %v1451_v22 = vand.u32 2147483647, %v6153_v56  ;;  %v1453_v31 = vand.u32 2147483648, %v6153_v56  ;;  %v4031_v50 = vld [vmem:[#allocation5 + $0x270] sm:$0xf0] }
  0x63   :  { %1253 = vmatpush.bf16.msrb.mxu3 %v4126_v38  ;;  %1261 = vmatpush.bf16.msrb.mxu0 %v3826_v42  ;;  %vm1447_vm2 = vweird.f32 %v6153_v56  ;;  %v3854_v42 = vor.u32 %v5350_v36, %v3853_v35  ;;  %v4159_v53 = vld [vmem:[#allocation5 + $0x370] sm:$0xf0]  ;;  %v5420_v63 = vld [vmem:[#allocation5 + $0x344] sm:$0xf] }
  0x64   :  { %v1454_v41 = vor.u32 1.1754944e-38, %v1453_v31  ;;  %vm1452_vm5 = vcmp.eq.f32.partialorder %v1451_v22, 8.507059e+37  ;;  %v3951_v59 = vld [vmem:[#allocation5 + $0x1d0] sm:$0xf0]  ;;  %v5316_v3 = vld [vmem:[#allocation5 + $0x4] sm:$0xf] }
  0x65   :  { %1222 = vmatpush.bf16.msra.mxu1 %v3950_v18  ;;  %v5354_v18 = vld [vmem:[#allocation5 + $0x12c] sm:$0xf0]  ;;  %v4015_v62 = vld [vmem:[#allocation5 + $0x250] sm:$0xf0]  ;;  %v5384_v10 = vld [vmem:[#allocation5 + $0x224] sm:$0xf] }
  0x66   :  { %1241 = vmatpush.bf16.msrb.mxu2 %v3982_v51  ;;  %v3870_v32 = vor.u32 %v5354_v18, %v3869_v17  ;;  %v5424_v51 = vld [vmem:[#allocation5 + $0x364] sm:$0xf]  ;;  %v4143_v1 = vld [vmem:[#allocation5 + $0x350] sm:$0xf0] }
  0x67   :  { %1254 = vmatpush.bf16.msrb.mxu3 %v4110_v52  ;;  %1262 = vmatpush.bf16.msrb.mxu0 %v3810_v2  ;;  %v4034_v52 = vor.u32 %v5392_v49, %v4031_v50  ;;  %v4162_v54 = vor.u32 %v5424_v51, %v4159_v53  ;;  %v4146_v2 = vor.u32 %v5420_v63, %v4143_v1  ;;  %v3727_v4 = vld [vmem:[#allocation5 + $0x10] sm:$0xf0]  ;;  %v5416_v12 = vld [vmem:[#allocation5 + $0x324] sm:$0xf]  ;;  %v5343_v49 = vld [vmem:[#allocation5 + $0xd4] sm:$0xf0] }
  0x68   :  { %v5734_v21 = vpop.eup %5733  ;;  %v3730_v5 = vor.u32 %v5316_v3, %v3727_v4  ;;  %v4127_v13 = vld [vmem:[#allocation5 + $0x330] sm:$0xf0]  ;;  %v5364_v16 = vld [vmem:[#allocation5 + $0x184] sm:$0xf]  ;;  %v4085_v4 = vld [vmem:[#allocation5 + $0x2c8] sm:$0xf] }
  0x69   :  { %1223 = vmatpush.bf16.msra.mxu1 %v3934_v30  ;;  %v1443_v26 = vmul.f32 %v5734_v21, %v6153_v56  ;;  %v4175_v30 = vld [vmem:[#allocation5 + $0x390] sm:$0xf0]  ;;  %vm1448_vm3 = vweird.f32 %v5734_v21  ;;  %v5380_v19 = vld [vmem:[#allocation5 + $0x204] sm:$0xf] }
  0x6a   :  { %1286 = vmatpush.bf16.msra.mxu2 %v4098_v57  ;;  %v4178_v38 = vor.u32 %v5428_v29, %v4175_v30  ;;  %vm1449_vm4 = vmor %vm1447_vm2, %vm1448_vm3  ;;  %v3743_v56 = vld [vmem:[#allocation5 + $0x30] sm:$0xf0]  ;;  %v5412_v22 = vld [vmem:[#allocation5 + $0x304] sm:$0xf] }
  0x6b   :  { %1299 = vmatpush.bf16.msra.mxu3 %v4226_v58  ;;  %1263 = vmatpush.bf16.msrb.mxu0 %v3794_v11  ;;  %v1444_v9 = vsub.f32 1.0, %v1443_v26  ;;  %v3746_v57 = vor.u32 %v5320_v55, %v3743_v56  ;;  %v5372_v58 = vld [vmem:[#allocation5 + $0x1c4] sm:$0xf]  ;;  %v3999_v11 = vld [vmem:[#allocation5 + $0x230] sm:$0xf0] }
  0x6c   :  { %v3954_v60 = vor.u32 %v5372_v58, %v3951_v59  ;;  %v4002_v14 = vor.u32 %v5384_v10, %v3999_v11  ;;  %v3919_v17 = vld [vmem:[#allocation5 + $0x190] sm:$0xf0]  ;;  %v5360_v25 = vld [vmem:[#allocation5 + $0x164] sm:$0xf]  ;;  %v4101_v55 = vld [vmem:[#allocation5 + $0x2e8] sm:$0xf] }
  0x6d   :  { %1224 = vmatpush.bf16.msra.mxu1 %v3918_v46  ;;  %v1445_v39 = vmul.f32 %v5734_v21, %v1444_v9  ;;  %v5376_v46 = vld [vmem:[#allocation5 + $0x1e4] sm:$0xf]  ;;  %v3922_v18 = vor.u32 %v5364_v16, %v3919_v17  ;;  %v3983_v20 = vld [vmem:[#allocation5 + $0x210] sm:$0xf0]  ;;  %v5411_v56 = vld [vmem:[#allocation5 + $0x2f4] sm:$0xf0] }
  0x6e   :  { %1287 = vmatpush.bf16.msra.mxu2 %v4082_v6  ;;  %v3970_v48 = vor.u32 %v5376_v46, %v3967_v47  ;;  %v5368_v6 = vld [vmem:[#allocation5 + $0x1a4] sm:$0xf]  ;;  %v3903_v26 = vld [vmem:[#allocation5 + $0x170] sm:$0xf0]  ;;  %v5443_v59 = vld [vmem:[#allocation5 + $0x3f4] sm:$0xf0] }
  0x6f   :  { %1300 = vmatpush.bf16.msra.mxu3 %v4210_v7  ;;  %1264 = vmatpush.bf16.msrb.mxu0 %v3778_v27  ;;  %v1446_v43 = vadd.f32 %v5734_v21, %v1445_v39  ;;  %v3935_v7 = vld [vmem:[#allocation5 + $0x1b0] sm:$0xf0]  ;;  %v3906_v27 = vor.u32 %v5360_v25, %v3903_v26  ;;  %v5356_v28 = vld [vmem:[#allocation5 + $0x144] sm:$0xf]  ;;  %v4213_v10 = vld [vmem:[#allocation5 + $0x3c8] sm:$0xf] }
  0x70   :  { %v3938_v8 = vor.u32 %v5368_v6, %v3935_v7  ;;  %v3887_v29 = vld [vmem:[#allocation5 + $0x150] sm:$0xf0]  ;;  %v5352_v31 = vld [vmem:[#allocation5 + $0x124] sm:$0xf]  ;;  %v5439_v11 = vld [vmem:[#allocation5 + $0x3d4] sm:$0xf0] }
  0x71   :  { %1225 = vmatpush.bf16.msra.mxu1 %v3902_v0  ;;  %v1450_v44 = vsel %vm1449_vm4, %v5734_v21, %v1446_v43  ;;  %v4018_v0 = vor.u32 %v5388_v61, %v4015_v62  ;;  %v3986_v21 = vor.u32 %v5380_v19, %v3983_v20  ;;  %v3890_v30 = vor.u32 %v5356_v28, %v3887_v29  ;;  %v5348_v9 = vld [vmem:[#allocation5 + $0x104] sm:$0xf]  ;;  %v3855_v35 = vld [vmem:[#allocation5 + $0x110] sm:$0xf0]  ;;  %v5339_v61 = vld [vmem:[#allocation5 + $0xb4] sm:$0xf0] }
  0x72   :  { %1288 = vmatpush.bf16.msra.mxu2 %v4066_v23  ;;  %v1455_v45 = vsel %vm1452_vm5, %v1454_v41, %v1450_v44  ;;  %v4111_v23 = vld [vmem:[#allocation5 + $0x310] sm:$0xf0]  ;;  %v3858_v36 = vor.u32 %v5348_v9, %v3855_v35  ;;  %v5347_v41 = vld [vmem:[#allocation5 + $0xf4] sm:$0xf0]  ;;  %v232_v43 = vperm.slane %v6163_v34, 2  ;;  %v233_v44 = vperm.slane %v6163_v34, 3 }
  0x73   :  { %1301 = vmatpush.bf16.msra.mxu3 %v4194_v24  ;;  %1265 = vmatpush.bf16.msrb.mxu0 %v3762_v40  ;;  %v4114_v24 = vor.u32 %v5412_v22, %v4111_v23  ;;  %v3845_v40 = vld [vmem:[#allocation5 + $0xe8] sm:$0xf]  ;;  %v4214_v17 = vor.u32 %v5439_v11, %v4213_v10  ;;  %v5403_v20 = vld [vmem:[#allocation5 + $0x2b4] sm:$0xf0]  ;;  %v231_v23 = vperm.slane %v6163_v34, 1 }
  0x74   :  { %1460 = vperm.xlu0 %5724, %v1455_v45   ;;  %v3846_v46 = vor.u32 %v5347_v41, %v3845_v40  ;;  %v5435_v22 = vld [vmem:[#allocation5 + $0x3b4] sm:$0xf0]  ;;  %v4053_v28 = vld [vmem:[#allocation5 + $0x288] sm:$0xf] }
  0x75   :  { %1226 = vmatpush.bf16.msra.mxu1 %v3886_v15  ;;  %v4130_v15 = vor.u32 %v5416_v12, %v4127_v13  ;;  %v3797_v12 = vld [vmem:[#allocation5 + $0x88] sm:$0xf]  ;;  %v5335_v13 = vld [vmem:[#allocation5 + $0x94] sm:$0xf0] }
  0x76   :  { %1289 = vmatpush.bf16.msra.mxu2 %v4050_v37  ;;  %v230_v37 = vperm.slane %v6163_v34, 0  ;;  %v3798_v19 = vor.u32 %v5335_v13, %v3797_v12  ;;  %v5331_v25 = vld [vmem:[#allocation5 + $0x74] sm:$0xf0]  ;;  %v3765_v35 = vld [vmem:[#allocation5 + $0x48] sm:$0xf] }
  0x77   :  { %1302 = vmatpush.bf16.msra.mxu3 %v4178_v38  ;;  %1266 = vmatpush.bf16.msrb.mxu0 %v3746_v57  ;;  %v4229_v57 = vld [vmem:[#allocation5 + $0x3e8] sm:$0xf]  ;;  %v5399_v29 = vld [vmem:[#allocation5 + $0x294] sm:$0xf0] }
  0x78   :  { %v4230_v3 = vor.u32 %v5443_v59, %v4229_v57  ;;  %v4037_v40 = vld [vmem:[#allocation5 + $0x268] sm:$0xf]  ;;  %v5391_v57 = vld [vmem:[#allocation5 + $0x254] sm:$0xf0] }
  0x79   :  { %1227 = vmatpush.bf16.msra.mxu1 %v3870_v32  ;;  %v3871_v32 = vld [vmem:[#allocation5 + $0x130] sm:$0xf0]  ;;  %v4005_v10 = vld [vmem:[#allocation5 + $0x228] sm:$0xf]  ;;  %v5387_v11 = vld [vmem:[#allocation5 + $0x234] sm:$0xf0] }
  0x7a   :  { %1290 = vmatpush.bf16.msra.mxu2 %v4034_v52  ;;  %v3874_v33 = vor.u32 %v5352_v31, %v3871_v32  ;;  %v5431_v31 = vld [vmem:[#allocation5 + $0x394] sm:$0xf0]  ;;  %v4133_v13 = vld [vmem:[#allocation5 + $0x328] sm:$0xf] }
  0x7b   :  { %1303 = vmatpush.bf16.msra.mxu3 %v4162_v54  ;;  %1267 = vmatpush.bf16.msrb.mxu0 %v3730_v5 }
  0x7d   :  { %1228 = vmatpush.bf16.msra.mxu1 %v3854_v42 }
  0x7e   :  { %1291 = vmatpush.bf16.msra.mxu2 %v4018_v0 }
  0x7f   :  { %1304 = vmatpush.bf16.msra.mxu3 %v4146_v2  ;;  %v4102_v2 = vor.u32 %v5411_v56, %v4101_v55  ;;  %v4021_v56 = vld [vmem:[#allocation5 + $0x248] sm:$0xf] }
  0x81   :  { %1273 = vmatpush.bf16.msrb.mxu1 %v3970_v48  ;;  %v3829_v48 = vld [vmem:[#allocation5 + $0xc8] sm:$0xf] }
  0x82   :  { %1292 = vmatpush.bf16.msra.mxu2 %v4002_v14  ;;  %v3830_v58 = vor.u32 %v5343_v49, %v3829_v48  ;;  %v3749_v49 = vld [vmem:[#allocation5 + $0x28] sm:$0xf] }
  0x83   :  { %1305 = vmatpush.bf16.msra.mxu3 %v4130_v15 }
  0x85   :  { %1274 = vmatpush.bf16.msrb.mxu1 %v3954_v60  ;;  %v3813_v60 = vld [vmem:[#allocation5 + $0xa8] sm:$0xf] }
  0x86   :  { %1293 = vmatpush.bf16.msra.mxu2 %v3986_v21  ;;  %v3814_v7 = vor.u32 %v5339_v61, %v3813_v60  ;;  %v4197_v21 = vld [vmem:[#allocation5 + $0x3a8] sm:$0xf]  ;;  %v5423_v61 = vld [vmem:[#allocation5 + $0x354] sm:$0xf0] }
  0x87   :  { %1306 = vmatpush.bf16.msra.mxu3 %v4114_v24  ;;  %v3781_v24 = vld [vmem:[#allocation5 + $0x68] sm:$0xf] }
  0x88   :  { %v4149_v60 = vld [vmem:[#allocation5 + $0x348] sm:$0xf] }
  0x89   :  { %1275 = vmatpush.bf16.msrb.mxu1 %v3938_v8  ;;  %v5407_v8 = vld [vmem:[#allocation5 + $0x2d4] sm:$0xf0] }
  0x8a   :  { %v4086_v16 = vor.u32 %v5407_v8, %v4085_v4  ;;  %v5345_v4 = vld [vmem:[#allocation5 + $0xec] sm:$0xf]  ;;  %v4150_v8 = vor.u32 %v5423_v61, %v4149_v60  ;;  %v3877_v60 = vld [vmem:[#allocation5 + $0x128] sm:$0xf]  ;;  %v5355_v61 = vld [vmem:[#allocation5 + $0x134] sm:$0xf0] }
  0x8d   :  { %1276 = vmatpush.bf16.msrb.mxu1 %v3922_v18  ;;  %v4069_v18 = vld [vmem:[#allocation5 + $0x2a8] sm:$0xf] }
  0x8e   :  { %v4070_v26 = vor.u32 %v5403_v20, %v4069_v18  ;;  %v4006_v18 = vor.u32 %v5387_v11, %v4005_v10  ;;  %v5341_v20 = vld [vmem:[#allocation5 + $0xcc] sm:$0xf]  ;;  %v4183_v10 = vld [vmem:[#allocation5 + $0x398] sm:$0xf0]  ;;  %v3861_v11 = vld [vmem:[#allocation5 + $0x108] sm:$0xf] }
  0x91   :  { %1277 = vmatpush.bf16.msrb.mxu1 %v3906_v27  ;;  %v4198_v27 = vor.u32 %v5435_v22, %v4197_v21  ;;  %v3831_v21 = vld [vmem:[#allocation5 + $0xd8] sm:$0xf0] }
  0x95   :  { %1278 = vmatpush.bf16.msrb.mxu1 %v3890_v30  ;;  %v4181_v30 = vld [vmem:[#allocation5 + $0x388] sm:$0xf] }
  0x96   :  { %v4182_v34 = vor.u32 %v5431_v31, %v4181_v30  ;;  %v3834_v30 = vor.u32 %v5341_v20, %v3831_v21  ;;  %v5441_v31 = vld [vmem:[#allocation5 + $0x3ec] sm:$0xf]  ;;  %v4039_v20 = vld [vmem:[#allocation5 + $0x278] sm:$0xf0] }
  0x99   :  { %1279 = vmatpush.bf16.msrb.mxu1 %v3874_v33  ;;  %v3782_v33 = vor.u32 %v5331_v25, %v3781_v24  ;;  %v5383_v24 = vld [vmem:[#allocation5 + $0x214] sm:$0xf0]  ;;  %v4117_v25 = vld [vmem:[#allocation5 + $0x308] sm:$0xf] }
  0x9d   :  { %1280 = vmatpush.bf16.msrb.mxu1 %v3858_v36  ;;  %v5327_v36 = vld [vmem:[#allocation5 + $0x54] sm:$0xf0] }
  0xc5   :  { %v371_v38 = vpop.f32.mrf.mxu1 }
  0xc6   :  { %v372_v39 = vadd.f32 %v371_v38, %v230_v37  ;;  %v4054_v37 = vor.u32 %v5399_v29, %v4053_v28  ;;  %v3973_v38 = vld [vmem:[#allocation5 + $0x1e8] sm:$0xf]  ;;  %v4103_v28 = vld [vmem:[#allocation5 + $0x2f8] sm:$0xf0] }
  0xc8   :  { %vm414_vm6 = vcmp.ge.f32.partialorder %v372_v39, 0.0  ;;  %v418_v42 = vmul.f32 0.1, %v372_v39 }
  0xca   :  { %v422_v45 = vsel %vm414_vm6, %v372_v39, %v418_v42  ;;  %v5379_v39 = vld [vmem:[#allocation5 + $0x1f4] sm:$0xf0] }
  0xcb   :  { %v6168_v47 = vpack.c.bf16 %v422_v45, %v422_v45  ;;  %v5395_v42 = vld [vmem:[#allocation5 + $0x274] sm:$0xf0]  ;;  %v3974_v48 = vor.u32 %v5379_v39, %v3973_v38 }
  0xcc   :  { %v397_v50 = vpop.f32.mrf.mxu2  ;;  %v5427_v45 = vld [vmem:[#allocation5 + $0x374] sm:$0xf0] }
  0xcd   :  { %v410_v51 = vpop.f32.mrf.mxu3  ;;  %v398_v52 = vadd.f32 %v397_v50, %v232_v43  ;;  %v373_v54 = vpop.f32.mrf.mxu1  ;;  %1216 = vmatmul.bf16.vlgmr.msra.gmra.mxu0 %v6168_v47  ;;  %v3766_v43 = vor.u32 %v5327_v36, %v3765_v35  ;;  %v5323_v50 = vld [vmem:[#allocation5 + $0x34] sm:$0xf0]  ;;  %v5337_v36 = vld [vmem:[#allocation5 + $0xac] sm:$0xf] }
  0xce   :  { %v411_v53 = vadd.f32 %v410_v51, %v233_v44  ;;  %1312 = vmatpush.bf16.msra.mxu0 %v3846_v46  ;;  %v4165_v44 = vld [vmem:[#allocation5 + $0x368] sm:$0xf]  ;;  %v5375_v54 = vld [vmem:[#allocation5 + $0x1d4] sm:$0xf0]  ;;  %v3750_v59 = vor.u32 %v5323_v50, %v3749_v49  ;;  %v5333_v49 = vld [vmem:[#allocation5 + $0x8c] sm:$0xf] }
  0xcf   :  { %vm416_vm7 = vcmp.ge.f32.partialorder %v398_v52, 0.0  ;;  %v420_v62 = vmul.f32 0.1, %v398_v52  ;;  %v4166_v55 = vor.u32 %v5427_v45, %v4165_v44  ;;  %v5363_v35 = vld [vmem:[#allocation5 + $0x174] sm:$0xf0] }
  0xd0   :  { %vm417_vm8 = vcmp.ge.f32.partialorder %v411_v53, 0.0  ;;  %v421_v63 = vmul.f32 0.1, %v411_v53  ;;  %v5437_v44 = vld [vmem:[#allocation5 + $0x3cc] sm:$0xf] }
  0xd1   :  { %v424_v0 = vsel %vm416_vm7, %v398_v52, %v420_v62  ;;  %v4038_v52 = vor.u32 %v5395_v42, %v4037_v40  ;;  %v5405_v40 = vld [vmem:[#allocation5 + $0x2cc] sm:$0xf]  ;;  %v4215_v45 = vld [vmem:[#allocation5 + $0x3d8] sm:$0xf0] }
  0xd2   :  { %v425_v1 = vsel %vm417_vm8, %v411_v53, %v421_v63  ;;  %v6171_v5 = vpack.c.bf16 %v424_v0, %v424_v0  ;;  %1313 = vmatpush.bf16.msra.mxu0 %v3830_v58  ;;  %v3957_v53 = vld [vmem:[#allocation5 + $0x1c8] sm:$0xf]  ;;  %v5319_v0 = vld [vmem:[#allocation5 + $0x14] sm:$0xf0]  ;;  %v3799_v50 = vld [vmem:[#allocation5 + $0x98] sm:$0xf0] }
  0xd3   :  { %v6173_v6 = vpack.c.bf16 %v425_v1, %v425_v1  ;;  %v3958_v62 = vor.u32 %v5375_v54, %v3957_v53  ;;  %v3733_v63 = vld [vmem:[#allocation5 + $0x8] sm:$0xf]  ;;  %v4218_v53 = vor.u32 %v5437_v44, %v4215_v45  ;;  %v5401_v54 = vld [vmem:[#allocation5 + $0x2ac] sm:$0xf]  ;;  %v4007_v44 = vld [vmem:[#allocation5 + $0x238] sm:$0xf0] }
  0xd4   :  { %1242 = vmatmul.bf16.vlgmr.msrb.gmra.mxu2 %v6171_v5  ;;  %v399_v14 = vpop.f32.mrf.mxu2  ;;  %v3941_v1 = vld [vmem:[#allocation5 + $0x1a8] sm:$0xf]  ;;  %v3734_v12 = vor.u32 %v5319_v0, %v3733_v63  ;;  %v3783_v63 = vld [vmem:[#allocation5 + $0x78] sm:$0xf0] }
  0xd5   :  { %1255 = vmatmul.bf16.vlgmr.msrb.gmra.mxu3 %v6173_v6  ;;  %v412_v15 = vpop.f32.mrf.mxu3  ;;  %1338 = vmatpush.bf16.msrb.mxu2 %v4102_v2  ;;  %v4022_v2 = vor.u32 %v5391_v57, %v4021_v56  ;;  %v5419_v14 = vld [vmem:[#allocation5 + $0x334] sm:$0xf0]  ;;  %v3802_v57 = vor.u32 %v5333_v49, %v3799_v50  ;;  %v5451_v50 = vld [vmem:[#allocation11 + $0x38] sm:$0xff] }
  0xd6   :  { %1351 = vmatpush.bf16.msrb.mxu3 %v4230_v3  ;;  %1314 = vmatpush.bf16.msra.mxu0 %v3814_v7  ;;  %v5371_v3 = vld [vmem:[#allocation5 + $0x1b4] sm:$0xf0]  ;;  %v3847_v7 = vld [vmem:[#allocation5 + $0xf8] sm:$0xf0]  ;;  %v4134_v22 = vor.u32 %v5419_v14, %v4133_v13  ;;  %v5325_v13 = vld [vmem:[#allocation5 + $0x4c] sm:$0xf] }
  0xd7   :  { %v3942_v15 = vor.u32 %v5371_v3, %v3941_v1  ;;  %v4055_v3 = vld [vmem:[#allocation5 + $0x298] sm:$0xf0] }
  0xd8   :  { %v3767_v14 = vld [vmem:[#allocation5 + $0x58] sm:$0xf0] }
  0xd9   :  { %1339 = vmatpush.bf16.msrb.mxu2 %v4086_v16  ;;  %v3850_v16 = vor.u32 %v5345_v4, %v3847_v7  ;;  %v3878_v4 = vor.u32 %v5355_v61, %v3877_v60  ;;  %v5450_v61 = vld [vmem:[#allocation11 + $0x30] sm:$0xff] }
  0xda   :  { %1352 = vmatpush.bf16.msrb.mxu3 %v4214_v17  ;;  %1315 = vmatpush.bf16.msra.mxu0 %v3798_v19  ;;  %v3925_v17 = vld [vmem:[#allocation5 + $0x188] sm:$0xf]  ;;  %v5367_v19 = vld [vmem:[#allocation5 + $0x194] sm:$0xf0] }
  0xdb   :  { %v3926_v29 = vor.u32 %v5367_v19, %v3925_v17  ;;  %v3975_v17 = vld [vmem:[#allocation5 + $0x1f8] sm:$0xf0]  ;;  %v5393_v19 = vld [vmem:[#allocation5 + $0x26c] sm:$0xf] }
  0xdd   :  { %v384_v32 = vpop.f32.mrf.mxu1  ;;  %1340 = vmatpush.bf16.msrb.mxu2 %v4070_v26  ;;  %1268 = vmatmul.bf16.vlgmr.msrb.gmra.mxu0 %v6168_v47  ;;  %v5415_v26 = vld [vmem:[#allocation5 + $0x314] sm:$0xf0] }
  0xde   :  { %v385_v9 = vadd.f32 %v384_v32, %v231_v23  ;;  %1353 = vmatpush.bf16.msrb.mxu3 %v4198_v27  ;;  %1316 = vmatpush.bf16.msra.mxu0 %v3782_v33  ;;  %v3989_v23 = vld [vmem:[#allocation5 + $0x208] sm:$0xf]  ;;  %v5409_v27 = vld [vmem:[#allocation5 + $0x2ec] sm:$0xf]  ;;  %v4231_v32 = vld [vmem:[#allocation5 + $0x3f8] sm:$0xf0] }
  0xdf   :  { %v3909_v33 = vld [vmem:[#allocation5 + $0x168] sm:$0xf]  ;;  %v4106_v38 = vor.u32 %v5409_v27, %v4103_v28  ;;  %v4234_v39 = vor.u32 %v5441_v31, %v4231_v32  ;;  %v3751_v27 = vld [vmem:[#allocation5 + $0x38] sm:$0xf0]  ;;  %v4042_v28 = vor.u32 %v5393_v19, %v4039_v20  ;;  %v5389_v32 = vld [vmem:[#allocation5 + $0x24c] sm:$0xf] }
  0xe0   :  { %vm415_vm9 = vcmp.ge.f32.partialorder %v385_v9, 0.0  ;;  %v419_v41 = vmul.f32 0.1, %v385_v9  ;;  %v3910_v42 = vor.u32 %v5363_v35, %v3909_v33  ;;  %v4023_v33 = vld [vmem:[#allocation5 + $0x258] sm:$0xf0]  ;;  %v5447_v20 = vld [vmem:[#allocation11 + $0x18] sm:$0xff] }
  0xe1   :  { %1341 = vmatpush.bf16.msrb.mxu2 %v4054_v37  ;;  %v3815_v37 = vld [vmem:[#allocation5 + $0xb8] sm:$0xf0]  ;;  %v5421_v35 = vld [vmem:[#allocation5 + $0x34c] sm:$0xf] }
  0xe2   :  { %v423_v46 = vsel %vm415_vm9, %v385_v9, %v419_v41  ;;  %1354 = vmatpush.bf16.msrb.mxu3 %v4182_v34  ;;  %1317 = vmatpush.bf16.msra.mxu0 %v3766_v43  ;;  %v3990_v9 = vor.u32 %v5383_v24, %v3989_v23  ;;  %v4118_v34 = vor.u32 %v5415_v26, %v4117_v25  ;;  %v4087_v41 = vld [vmem:[#allocation5 + $0x2d8] sm:$0xf0]  ;;  %v5425_v23 = vld [vmem:[#allocation5 + $0x36c] sm:$0xf] }
  0xe3   :  { %v6179_v51 = vpack.c.bf16 %v423_v46, %v423_v46  ;;  %v3818_v43 = vor.u32 %v5337_v36, %v3815_v37  ;;  %v3893_v46 = vld [vmem:[#allocation5 + $0x148] sm:$0xf]  ;;  %v4167_v24 = vld [vmem:[#allocation5 + $0x378] sm:$0xf0]  ;;  %v5321_v26 = vld [vmem:[#allocation5 + $0x2c] sm:$0xf] }
  0xe4   :  { %1294 = vmatmul.bf16.vlgmr.msra.gmra.mxu2 %v6171_v5  ;;  %v4170_v31 = vor.u32 %v5425_v23, %v4167_v24  ;;  %v4151_v36 = vld [vmem:[#allocation5 + $0x358] sm:$0xf0] }
  0xe5   :  { %v386_v58 = vpop.f32.mrf.mxu1  ;;  %1229 = vmatmul.bf16.vlgmr.msra.gmra.mxu1 %v6179_v51  ;;  %1307 = vmatmul.bf16.vlgmr.msra.gmra.mxu3 %v6173_v6  ;;  %v3863_v23 = vld [vmem:[#allocation5 + $0x118] sm:$0xf0] }
  0xe6   :  { %1325 = vmatpush.bf16.msra.mxu1 %v3974_v48  ;;  %1342 = vmatpush.bf16.msrb.mxu2 %v4038_v52  ;;  %v5359_v48 = vld [vmem:[#allocation5 + $0x154] sm:$0xf0]  ;;  %v4090_v52 = vor.u32 %v5405_v40, %v4087_v41  ;;  %v5433_v58 = vld [vmem:[#allocation5 + $0x3ac] sm:$0xf]  ;;  %v3943_v41 = vld [vmem:[#allocation5 + $0x1b8] sm:$0xf0] }
  0xe7   :  { %1355 = vmatpush.bf16.msrb.mxu3 %v4166_v55  ;;  %1318 = vmatpush.bf16.msra.mxu0 %v3750_v59  ;;  %v4071_v55 = vld [vmem:[#allocation5 + $0x2b8] sm:$0xf0]  ;;  %v3894_v56 = vor.u32 %v5359_v48, %v3893_v46  ;;  %v5369_v40 = vld [vmem:[#allocation5 + $0x1ac] sm:$0xf] }
  0xe8   :  { %v4199_v59 = vld [vmem:[#allocation5 + $0x3b8] sm:$0xf0]  ;;  %v4074_v0 = vor.u32 %v5401_v54, %v4071_v55  ;;  %v5417_v46 = vld [vmem:[#allocation5 + $0x32c] sm:$0xf]  ;;  %v3946_v49 = vor.u32 %v5369_v40, %v3943_v41 }
  0xe9   :  { %v4202_v1 = vor.u32 %v5433_v58, %v4199_v59  ;;  %v4135_v48 = vld [vmem:[#allocation5 + $0x338] sm:$0xf0]  ;;  %v5413_v58 = vld [vmem:[#allocation5 + $0x30c] sm:$0xf] }
  0xea   :  { %1326 = vmatpush.bf16.msra.mxu1 %v3958_v62  ;;  %1343 = vmatpush.bf16.msrb.mxu2 %v4022_v2  ;;  %v5329_v62 = vld [vmem:[#allocation5 + $0x6c] sm:$0xf]  ;;  %v3927_v54 = vld [vmem:[#allocation5 + $0x198] sm:$0xf0]  ;;  %v4138_v55 = vor.u32 %v5417_v46, %v4135_v48 }
  0xeb   :  { %1356 = vmatpush.bf16.msrb.mxu3 %v4150_v8  ;;  %1319 = vmatpush.bf16.msra.mxu0 %v3734_v12  ;;  %v5397_v2 = vld [vmem:[#allocation5 + $0x28c] sm:$0xf]  ;;  %v3786_v7 = vor.u32 %v5329_v62, %v3783_v63  ;;  %v5351_v12 = vld [vmem:[#allocation5 + $0x114] sm:$0xf0]  ;;  %v4119_v59 = vld [vmem:[#allocation5 + $0x318] sm:$0xf0] }
  0xec   :  { %v5429_v8 = vld [vmem:[#allocation5 + $0x38c] sm:$0xf]  ;;  %v3862_v21 = vor.u32 %v5351_v12, %v3861_v11  ;;  %v5506_v24 = vld [vmem:[#allocation14 + $0x1ac] sm:$0xf0] }
  0xed   :  { %v5361_v63 = vld [vmem:[#allocation5 + $0x16c] sm:$0xf]  ;;  %v5466_v48 = vld [vmem:[#allocation14 + $0x6c] sm:$0xf0] }
  0xee   :  { %1327 = vmatpush.bf16.msra.mxu1 %v3942_v15  ;;  %1344 = vmatpush.bf16.msrb.mxu2 %v4006_v18  ;;  %v4058_v15 = vor.u32 %v5397_v2, %v4055_v3  ;;  %v4186_v18 = vor.u32 %v5429_v8, %v4183_v10  ;;  %v5449_v3 = vld [vmem:[#allocation11 + $0x28] sm:$0xff]  ;;  %v4510_v8 = vld [vmem:[#allocation14 + $0x1e0] sm:$0xf]  ;;  %v5514_v10 = vld [vmem:[#allocation14 + $0x1ec] sm:$0xf0] }
  0xef   :  { %1364 = vmatpush.bf16.msrb.mxu0 %v3850_v16  ;;  %1357 = vmatpush.bf16.msrb.mxu3 %v4134_v22  ;;  %v5377_v16 = vld [vmem:[#allocation5 + $0x1ec] sm:$0xf]  ;;  %v3770_v22 = vor.u32 %v5325_v13, %v3767_v14  ;;  %v4511_v11 = vor.u32 %v5514_v10, %v4510_v8  ;;  %v5542_v8 = vld [vmem:[#allocation14 + $0x2cc] sm:$0xf0] }
  0xf0   :  { %1320 = vmatmul.bf16.vlgmr.msra.gmra.mxu0 %v6168_v47  ;;  %v3978_v25 = vor.u32 %v5377_v16, %v3975_v17  ;;  %v5448_v13 = vld [vmem:[#allocation11 + $0x20] sm:$0xff]  ;;  %v5510_v16 = vld [vmem:[#allocation14 + $0x1cc] sm:$0xf0] }
  0xf1   :  { %v5353_v14 = vld [vmem:[#allocation5 + $0x12c] sm:$0xf] }
  0xf2   :  { %1328 = vmatpush.bf16.msra.mxu1 %v3926_v29  ;;  %1345 = vmatpush.bf16.msrb.mxu2 %v3990_v9  ;;  %v5373_v29 = vld [vmem:[#allocation5 + $0x1cc] sm:$0xf]  ;;  %v3754_v9 = vor.u32 %v5321_v26, %v3751_v27  ;;  %v5482_v26 = vld [vmem:[#allocation14 + $0xec] sm:$0xf0]  ;;  %v5726_v27 = vld [vmem:[#allocation10] ss:$0 sm:$0xff] }
  0xf3   :  { %1365 = vmatpush.bf16.msrb.mxu0 %v3834_v30  ;;  %1358 = vmatpush.bf16.msrb.mxu3 %v4118_v34  ;;  %v3959_v30 = vld [vmem:[#allocation5 + $0x1d8] sm:$0xf0]  ;;  %v5317_v34 = vld [vmem:[#allocation5 + $0xc] sm:$0xf] }
  0xf4   :  { %v3962_v37 = vor.u32 %v5373_v29, %v3959_v30  ;;  %v5446_v30 = vld [vmem:[#allocation11 + $0x10] sm:$0xff]  ;;  %v4334_v41 = vld [vmem:[#allocation14 + $0x80] sm:$0xf]  ;;  %v5480_v10 = vld [vmem:[#allocation14 + $0xe4] sm:$0xf] }
  0xf5   :  { %1281 = vmatmul.bf16.vlgmr.msrb.gmra.mxu1 %v6179_v51  ;;  %1346 = vmatmul.bf16.vlgmr.msrb.gmra.mxu2 %v6171_v5  ;;  %v4318_v46 = vld [vmem:[#allocation14 + $0x60] sm:$0xf] }
  0xf6   :  { %1390 = vmatpush.bf16.msra.mxu2 %v4106_v38  ;;  %1329 = vmatpush.bf16.msra.mxu1 %v3910_v42  ;;  %v3735_v38 = vld [vmem:[#allocation5 + $0x18] sm:$0xf0]  ;;  %v4154_v42 = vor.u32 %v5421_v35, %v4151_v36  ;;  %v5445_v35 = vld [vmem:[#allocation11 + $0x8] sm:$0xff] }
  0xf7   :  { %1403 = vmatpush.bf16.msra.mxu3 %v4234_v39  ;;  %1366 = vmatpush.bf16.msrb.mxu0 %v3818_v43  ;;  %v4026_v39 = vor.u32 %v5389_v32, %v4023_v33  ;;  %v5385_v43 = vld [vmem:[#allocation5 + $0x22c] sm:$0xf]  ;;  %v3738_v45 = vor.u32 %v5317_v34, %v3735_v38  ;;  %v5478_v33 = vld [vmem:[#allocation14 + $0xcc] sm:$0xf0] }
  0xf8   :  { %1359 = vmatmul.bf16.vlgmr.msrb.gmra.mxu3 %v6173_v6  ;;  %v4366_v32 = vld [vmem:[#allocation14 + $0xc0] sm:$0xf]  ;;  %v5474_v34 = vld [vmem:[#allocation14 + $0xac] sm:$0xf0] }
  0xf9   :  { %v4367_v36 = vor.u32 %v5478_v33, %v4366_v32  ;;  %v4512_v32 = vld [vmem:[#allocation14 + $0x1f0] sm:$0xf0]  ;;  %v5468_v33 = vld [vmem:[#allocation14 + $0x84] sm:$0xf] }
  0xfa   :  { %1391 = vmatpush.bf16.msra.mxu2 %v4090_v52  ;;  %1330 = vmatpush.bf16.msra.mxu1 %v3894_v56  ;;  %v4010_v52 = vor.u32 %v5385_v43, %v4007_v44  ;;  %v5381_v56 = vld [vmem:[#allocation5 + $0x20c] sm:$0xf] }
  0xfb   :  { %1404 = vmatpush.bf16.msra.mxu3 %v4218_v53  ;;  %1367 = vmatpush.bf16.msrb.mxu0 %v3802_v57  ;;  %v5365_v53 = vld [vmem:[#allocation5 + $0x18c] sm:$0xf]  ;;  %v3991_v57 = vld [vmem:[#allocation5 + $0x218] sm:$0xf0] }
  0xfc   :  { %v3930_v60 = vor.u32 %v5365_v53, %v3927_v54  ;;  %v3994_v62 = vor.u32 %v5381_v56, %v3991_v57  ;;  %v5502_v53 = vld [vmem:[#allocation14 + $0x18c] sm:$0xf0]  ;;  %v4638_v57 = vld [vmem:[#allocation14 + $0x2e0] sm:$0xf] }
  0xfd   :  { %v5498_v56 = vld [vmem:[#allocation14 + $0x16c] sm:$0xf0] }
  0xfe   :  { %1392 = vmatpush.bf16.msra.mxu2 %v4074_v0  ;;  %1331 = vmatpush.bf16.msra.mxu1 %v3878_v4  ;;  %v3911_v0 = vld [vmem:[#allocation5 + $0x178] sm:$0xf0]  ;;  %v5357_v4 = vld [vmem:[#allocation5 + $0x14c] sm:$0xf] }
  0xff   :  { %1405 = vmatpush.bf16.msra.mxu3 %v4202_v1  ;;  %1368 = vmatpush.bf16.msrb.mxu0 %v3786_v7  ;;  %v4122_v1 = vor.u32 %v5413_v58, %v4119_v59  ;;  %v3914_v2 = vor.u32 %v5361_v63, %v3911_v0  ;;  %v3895_v7 = vld [vmem:[#allocation5 + $0x158] sm:$0xf0] }
 0x100   :  { %v3898_v12 = vor.u32 %v5357_v4, %v3895_v7  ;;  %v5546_v59 = vld [vmem:[#allocation14 + $0x2ec] sm:$0xf0]  ;;  %v4622_v7 = vld [vmem:[#allocation14 + $0x2c0] sm:$0xf] }
 0x101   :  { %v4639_v63 = vor.u32 %v5546_v59, %v4638_v57  ;;  %v5494_v4 = vld [vmem:[#allocation14 + $0x14c] sm:$0xf0] }
 0x102   :  { %1393 = vmatpush.bf16.msra.mxu2 %v4058_v15  ;;  %1332 = vmatpush.bf16.msra.mxu1 %v3862_v21  ;;  %v4494_v15 = vld [vmem:[#allocation14 + $0x1c0] sm:$0xf]  ;;  %v1461_v21 = vpop.permute.xlu0 %1460 }
 0x103   :  { %1406 = vmatpush.bf16.msra.mxu3 %v4186_v18  ;;  %1369 = vmatpush.bf16.msrb.mxu0 %v3770_v22  ;;  %v4495_v17 = vor.u32 %v5510_v16, %v4494_v15  ;;  %v5725_v18 = vld [vmem:[#allocation8] ss:$0 sm:$0xff]  ;;  %v5349_v22 = vld [vmem:[#allocation5 + $0x10c] sm:$0xf]  ;;  %v5490_v16 = vld [vmem:[#allocation14 + $0x12c] sm:$0xf0] }
 0x104   :  { %v3866_v29 = vor.u32 %v5349_v22, %v3863_v23  ;;  %v4414_v15 = vld [vmem:[#allocation14 + $0x120] sm:$0xf] }
 0x105   :  { %1333 = vmatmul.bf16.vlgmr.msra.gmra.mxu1 %v6179_v51 }
 0x106   :  { %1377 = vmatpush.bf16.msrb.mxu1 %v3978_v25  ;;  %1394 = vmatpush.bf16.msra.mxu2 %v4042_v28  ;;  %v4382_v25 = vld [vmem:[#allocation14 + $0xe0] sm:$0xf]  ;;  %v1466_v28 = vmul.f32 %v5725_v18, %v1461_v21  ;;  %v5476_v18 = vld [vmem:[#allocation14 + $0xc4] sm:$0xf]  ;;  %v5538_v21 = vld [vmem:[#allocation14 + $0x2ac] sm:$0xf0] }
 0x107   :  { %1407 = vmatpush.bf16.msra.mxu3 %v4170_v31  ;;  %1370 = vmatpush.bf16.msrb.mxu0 %v3754_v9  ;;  %v4383_v31 = vor.u32 %v5482_v26, %v4382_v25  ;;  %v4398_v25 = vld [vmem:[#allocation14 + $0x100] sm:$0xf]  ;;  %v5486_v26 = vld [vmem:[#allocation14 + $0x10c] sm:$0xf0] }
 0x108   :  { %v1471_v9 = vadd.f32 %v5726_v27, %v1466_v28  ;;  %v4399_v27 = vor.u32 %v5486_v26, %v4398_v25  ;;  %v5534_v28 = vld [vmem:[#allocation14 + $0x28c] sm:$0xf0]  ;;  %v4416_v25 = vld [vmem:[#allocation14 + $0x130] sm:$0xf0]  ;;  %v5536_v26 = vld [vmem:[#allocation14 + $0x2a4] sm:$0xf] }
 0x10a   :  { %1378 = vmatpush.bf16.msrb.mxu1 %v3962_v37  ;;  %1395 = vmatpush.bf16.msra.mxu2 %v4026_v39  ;;  %v4350_v37 = vld [vmem:[#allocation14 + $0xa0] sm:$0xf]  ;;  %v1473_v38 = vmul.f32 0.1, %v1471_v9  ;;  %vm1472_vm10 = vcmp.ge.f32.partialorder %v1471_v9, 0.0 }
 0x10b   :  { %1408 = vmatpush.bf16.msra.mxu3 %v4154_v42  ;;  %1371 = vmatpush.bf16.msrb.mxu0 %v3738_v45  ;;  %v5444_v39 = vld [vmem:[#allocation11] sm:$0xff]  ;;  %v4351_v40 = vor.u32 %v5474_v34, %v4350_v37  ;;  %v5470_v42 = vld [vmem:[#allocation14 + $0x8c] sm:$0xf0] }
 0x10c   :  { %v1474_v43 = vsel %vm1472_vm10, %v1471_v9, %v1473_v38  ;;  %v4335_v44 = vor.u32 %v5470_v42, %v4334_v41  ;;  %v4336_v9 = vld [vmem:[#allocation14 + $0x90] sm:$0xf0]  ;;  %v5530_v37 = vld [vmem:[#allocation14 + $0x26c] sm:$0xf0]  ;;  %v5508_v38 = vld [vmem:[#allocation14 + $0x1c4] sm:$0xf] }
 0x10d   :  { %v1475_v45 = vpack.c.bf16 %v1474_v43, %v1474_v43  ;;  %v5464_v41 = vld [vmem:[#allocation14 + $0x64] sm:$0xf]  ;;  %v4320_v42 = vld [vmem:[#allocation14 + $0x70] sm:$0xf0]  ;;  %vm3611_vm10 = vcmask 7168  }
 0x10e   :  { %1379 = vmatpush.bf16.msrb.mxu1 %v3946_v49  ;;  %1396 = vmatpush.bf16.msra.mxu2 %v4010_v52  ;;  %v4319_v49 = vor.u32 %v5466_v48, %v4318_v46  ;;  %v5462_v52 = vld [vmem:[#allocation14 + $0x4c] sm:$0xf0]  ;;  %v5504_v48 = vld [vmem:[#allocation14 + $0x1a4] sm:$0xf] }
 0x10f   :  { %1544 = vmatpush.bf16.msra.mxu0 %v5451_v50  ;;  %1409 = vmatpush.bf16.msra.mxu3 %v4138_v55  ;;  %v4302_v50 = vld [vmem:[#allocation14 + $0x40] sm:$0xf] }
 0x110   :  { %1372 = vmatmul.bf16.vlgmr.msrb.gmra.mxu0 %v6168_v47  ;;  %v3879_v47 = vld [vmem:[#allocation5 + $0x138] sm:$0xf0]  ;;  %v4446_v55 = vld [vmem:[#allocation14 + $0x160] sm:$0xf]  ;;  %v4303_v58 = vor.u32 %v5462_v52, %v4302_v50  ;;  %v5460_v50 = vld [vmem:[#allocation14 + $0x44] sm:$0xf] }
 0x111   :  { %v3882_v19 = vor.u32 %v5353_v14, %v3879_v47  ;;  %v4480_v52 = vld [vmem:[#allocation14 + $0x1b0] sm:$0xf0] }
 0x112   :  { %1380 = vmatpush.bf16.msrb.mxu1 %v3930_v60  ;;  %1397 = vmatpush.bf16.msra.mxu2 %v3994_v62  ;;  %v4286_v60 = vld [vmem:[#allocation14 + $0x20] sm:$0xf]  ;;  %v4447_v62 = vor.u32 %v5498_v56, %v4446_v55  ;;  %v5522_v55 = vld [vmem:[#allocation14 + $0x22c] sm:$0xf0] }
 0x113   :  { %1545 = vmatpush.bf16.msra.mxu0 %v5450_v61  ;;  %1410 = vmatpush.bf16.msra.mxu3 %v4122_v1  ;;  %v5458_v61 = vld [vmem:[#allocation14 + $0x2c] sm:$0xf0]  ;;  %v4270_v1 = vld [vmem:[#allocation14] sm:$0xf] }
 0x114   :  { %v4287_v0 = vor.u32 %v5458_v61, %v4286_v60  ;;  %v4464_v60 = vld [vmem:[#allocation14 + $0x190] sm:$0xf0]  ;;  %v5456_v61 = vld [vmem:[#allocation14 + $0x24] sm:$0xf] }
 0x115   :  { %1398 = vmatmul.bf16.vlgmr.msra.gmra.mxu2 %v6171_v5  ;;  %v4478_v5 = vld [vmem:[#allocation14 + $0x1a0] sm:$0xf] }
 0x116   :  { %1381 = vmatpush.bf16.msrb.mxu1 %v3914_v2  ;;  %1411 = vmatmul.bf16.vlgmr.msra.gmra.mxu3 %v6173_v6  ;;  %v4479_v6 = vor.u32 %v5506_v24, %v4478_v5  ;;  %v5454_v2 = vld [vmem:[#allocation14 + $0xc] sm:$0xf0]  ;;  %v5472_v5 = vld [vmem:[#allocation14 + $0xa4] sm:$0xf]  ;;  %v4352_v24 = vld [vmem:[#allocation14 + $0xb0] sm:$0xf0] }
 0x117   :  { %1546 = vmatpush.bf16.msra.mxu0 %v5449_v3  ;;  %2359 = vmatpush.bf16.msrb.mxu2 %v4511_v11  ;;  %v4430_v3 = vld [vmem:[#allocation14 + $0x140] sm:$0xf]  ;;  %v4384_v11 = vld [vmem:[#allocation14 + $0xf0] sm:$0xf0]  ;;  %v4271_v14 = vor.u32 %v5454_v2, %v4270_v1  ;;  %v5518_v1 = vld [vmem:[#allocation14 + $0x20c] sm:$0xf0] }
 0x118   :  { %2372 = vmatpush.bf16.msrb.mxu3 %v4639_v63  ;;  %v4387_v47 = vor.u32 %v5480_v10, %v4384_v11  ;;  %v4640_v11 = vld [vmem:[#allocation14 + $0x2f0] sm:$0xf0] }
 0x11a   :  { %1382 = vmatpush.bf16.msrb.mxu1 %v3898_v12  ;;  %v4431_v12 = vor.u32 %v5494_v4, %v4430_v3  ;;  %v5496_v3 = vld [vmem:[#allocation14 + $0x164] sm:$0xf]  ;;  %v4448_v4 = vld [vmem:[#allocation14 + $0x170] sm:$0xf0] }
 0x11b   :  { %1547 = vmatpush.bf16.msra.mxu0 %v5448_v13  ;;  %2360 = vmatpush.bf16.msrb.mxu2 %v4495_v17  ;;  %v4623_v13 = vor.u32 %v5542_v8, %v4622_v7  ;;  %v4606_v17 = vld [vmem:[#allocation14 + $0x2a0] sm:$0xf]  ;;  %v5544_v7 = vld [vmem:[#allocation14 + $0x2e4] sm:$0xf]  ;;  %v4451_v10 = vor.u32 %v5496_v3, %v4448_v4  ;;  %v5483_v3 = vld [vmem:[#allocation14 + $0xf4] sm:$0xf0] }
 0x11c   :  { %v4607_v22 = vor.u32 %v5538_v21, %v4606_v17  ;;  %v5540_v17 = vld [vmem:[#allocation14 + $0x2c4] sm:$0xf]  ;;  %v4766_v21 = vld [vmem:[#allocation14 + $0x3e0] sm:$0xf] }
 0x11d   :  { %2373 = vmatpush.bf16.msrb.mxu3 %v4623_v13  ;;  %v4272_v13 = vld [vmem:[#allocation14 + $0x10] sm:$0xf0]  ;;  %v5520_v4 = vld [vmem:[#allocation14 + $0x224] sm:$0xf] }
 0x11e   :  { %1383 = vmatpush.bf16.msrb.mxu1 %v3882_v19  ;;  %v4368_v19 = vld [vmem:[#allocation14 + $0xd0] sm:$0xf0] }
 0x11f   :  { %1548 = vmatpush.bf16.msra.mxu0 %v5447_v20  ;;  %2361 = vmatpush.bf16.msrb.mxu2 %v4479_v6  ;;  %v4415_v20 = vor.u32 %v5490_v16, %v4414_v15  ;;  %v4371_v23 = vor.u32 %v5476_v18, %v4368_v19  ;;  %v4590_v6 = vld [vmem:[#allocation14 + $0x280] sm:$0xf]  ;;  %v5492_v15 = vld [vmem:[#allocation14 + $0x144] sm:$0xf]  ;;  %v4432_v16 = vld [vmem:[#allocation14 + $0x150] sm:$0xf0] }
 0x120   :  { %v4435_v19 = vor.u32 %v5492_v15, %v4432_v16 }
 0x121   :  { %2374 = vmatpush.bf16.msrb.mxu3 %v4607_v22  ;;  %v5578_v22 = vld [vmem:[#allocation14 + $0x3ec] sm:$0xf0] }
 0x122   :  { %1384 = vmatpush.bf16.msrb.mxu1 %v3866_v29  ;;  %v4591_v29 = vor.u32 %v5534_v28, %v4590_v6 }
 0x123   :  { %1549 = vmatpush.bf16.msra.mxu0 %v5446_v30  ;;  %v5512_v30 = vld [vmem:[#allocation14 + $0x1e4] sm:$0xf] }
 0x125   :  { %1385 = vmatmul.bf16.vlgmr.msrb.gmra.mxu1 %v6179_v51  ;;  %v4462_v51 = vld [vmem:[#allocation14 + $0x180] sm:$0xf]  ;;  %2375 = vmatpush.bf16.msrb.mxu3 %v4591_v29  ;;  %v4608_v29 = vld [vmem:[#allocation14 + $0x2b0] sm:$0xf0] }
 0x126   :  { %2346 = vmatpush.bf16.msra.mxu1 %v4383_v31  ;;  %v4463_v54 = vor.u32 %v5502_v53, %v4462_v51  ;;  %v4355_v31 = vor.u32 %v5472_v5, %v4352_v24  ;;  %v4304_v51 = vld [vmem:[#allocation14 + $0x50] sm:$0xf0]  ;;  %v4483_v53 = vor.u32 %v5504_v48, %v4480_v52  ;;  %v4767_v5 = vor.u32 %v5578_v22, %v4766_v21  ;;  %v5488_v24 = vld [vmem:[#allocation14 + $0x124] sm:$0xf]  ;;  %v5479_v21 = vld [vmem:[#allocation14 + $0xd4] sm:$0xf0] }
 0x127   :  { %1550 = vmatpush.bf16.msra.mxu0 %v5445_v35  ;;  %v4515_v35 = vor.u32 %v5512_v30, %v4512_v32  ;;  %v4307_v59 = vor.u32 %v5460_v50, %v4304_v51  ;;  %v4419_v28 = vor.u32 %v5488_v24, %v4416_v25  ;;  %v4750_v30 = vld [vmem:[#allocation14 + $0x3c0] sm:$0xf]  ;;  %v6195_v32 = vld [vmem:[#allocation7] sm:$0xf]  ;;  %v5516_v22 = vld [vmem:[#allocation14 + $0x204] sm:$0xf] }
 0x128   :  { %2362 = vmatpush.bf16.msrb.mxu2 %v4463_v54  ;;  %v4542_v54 = vld [vmem:[#allocation14 + $0x220] sm:$0xf]  ;;  %v561_v15 = vperm.slane %v6195_v32, 1  ;;  %v5554_v25 = vld [vmem:[#allocation14 + $0x32c] sm:$0xf0] }
 0x129   :  { %v4543_v56 = vor.u32 %v5522_v55, %v4542_v54  ;;  %v4718_v51 = vld [vmem:[#allocation14 + $0x380] sm:$0xf] }
 0x12a   :  { %2347 = vmatpush.bf16.msra.mxu1 %v4367_v36  ;;  %v4574_v36 = vld [vmem:[#allocation14 + $0x260] sm:$0xf] }
 0x12b   :  { %1551 = vmatpush.bf16.msra.mxu0 %v5444_v39  ;;  %v4575_v34 = vor.u32 %v5530_v37, %v4574_v36  ;;  %v4339_v39 = vor.u32 %v5468_v33, %v4336_v9  ;;  %v4611_v33 = vor.u32 %v5536_v26, %v4608_v29  ;;  %v4400_v36 = vld [vmem:[#allocation14 + $0x110] sm:$0xf0]  ;;  %v5532_v37 = vld [vmem:[#allocation14 + $0x284] sm:$0xf]  ;;  %v4670_v24 = vld [vmem:[#allocation14 + $0x320] sm:$0xf] }
 0x12c   :  { %2363 = vmatpush.bf16.msrb.mxu2 %v4447_v62  ;;  %v4288_v62 = vld [vmem:[#allocation14 + $0x30] sm:$0xf0]  ;;  %v5475_v29 = vld [vmem:[#allocation14 + $0xb4] sm:$0xf0] }
 0x12d   :  { %2376 = vmatpush.bf16.msrb.mxu3 %v4575_v34  ;;  %v4291_v8 = vor.u32 %v5456_v61, %v4288_v62 }
 0x12e   :  { %2348 = vmatpush.bf16.msra.mxu1 %v4351_v40  ;;  %1552 = vmatmul.bf16.vlgmr.msra.gmra.mxu0 %v1475_v45  ;;  %v4496_v40 = vld [vmem:[#allocation14 + $0x1d0] sm:$0xf0]  ;;  %v5526_v45 = vld [vmem:[#allocation14 + $0x24c] sm:$0xf0] }
 0x12f   :  { %v4499_v43 = vor.u32 %v5508_v38, %v4496_v40  ;;  %2385 = vmatpush.bf16.msrb.mxu0 %v4767_v5  ;;  %v4592_v38 = vld [vmem:[#allocation14 + $0x290] sm:$0xf0] }
 0x130   :  { %2364 = vmatpush.bf16.msrb.mxu2 %v4431_v12  ;;  %v5452_v12 = vld [vmem:[#allocation14 + $0x4] sm:$0xf]  ;;  %v4528_v5 = vld [vmem:[#allocation14 + $0x210] sm:$0xf0] }
 0x131   :  { %v4275_v18 = vor.u32 %v5452_v12, %v4272_v13  ;;  %v4686_v12 = vld [vmem:[#allocation14 + $0x340] sm:$0xf]  ;;  %v4531_v26 = vor.u32 %v5516_v22, %v4528_v5  ;;  %v5560_v5 = vld [vmem:[#allocation14 + $0x364] sm:$0xf] }
 0x132   :  { %2349 = vmatpush.bf16.msra.mxu1 %v4335_v44  ;;  %v4558_v44 = vld [vmem:[#allocation14 + $0x240] sm:$0xf] }
 0x133   :  { %v4559_v46 = vor.u32 %v5526_v45, %v4558_v44  ;;  %v5528_v45 = vld [vmem:[#allocation14 + $0x264] sm:$0xf] }
 0x134   :  { %2365 = vmatpush.bf16.msrb.mxu2 %v4415_v20  ;;  %v4624_v20 = vld [vmem:[#allocation14 + $0x2d0] sm:$0xf0] }
 0x135   :  { %2377 = vmatpush.bf16.msrb.mxu3 %v4559_v46  ;;  %v4576_v46 = vld [vmem:[#allocation14 + $0x270] sm:$0xf0] }
 0x136   :  { %2350 = vmatpush.bf16.msra.mxu1 %v4319_v49  ;;  %v4323_v49 = vor.u32 %v5464_v41, %v4320_v42  ;;  %v4595_v41 = vor.u32 %v5532_v37, %v4592_v38  ;;  %v4734_v42 = vld [vmem:[#allocation14 + $0x3a0] sm:$0xf]  ;;  %v4579_v52 = vor.u32 %v5528_v45, %v4576_v46 }
 0x138   :  { %2366 = vmatpush.bf16.msrb.mxu2 %v4399_v27 }
 0x139   :  { %2378 = vmatpush.bf16.msrb.mxu3 %v4543_v56 }
 0x13a   :  { %2351 = vmatpush.bf16.msra.mxu1 %v4303_v58  ;;  %v5500_v58 = vld [vmem:[#allocation14 + $0x184] sm:$0xf] }
 0x13b   :  { %v4467_v63 = vor.u32 %v5500_v58, %v4464_v60  ;;  %v5524_v58 = vld [vmem:[#allocation14 + $0x244] sm:$0xf] }
 0x13c   :  { %2411 = vmatpush.bf16.msra.mxu2 %v4515_v35  ;;  %v5484_v35 = vld [vmem:[#allocation14 + $0x104] sm:$0xf] }
 0x13d   :  { %v4403_v34 = vor.u32 %v5484_v35, %v4400_v36 }
 0x13e   :  { %2352 = vmatpush.bf16.msra.mxu1 %v4287_v0  ;;  %v4526_v0 = vld [vmem:[#allocation14 + $0x200] sm:$0xf] }
 0x13f   :  { %v4527_v2 = vor.u32 %v5518_v1, %v4526_v0  ;;  %v5562_v0 = vld [vmem:[#allocation14 + $0x36c] sm:$0xf0] }
 0x140   :  { %2412 = vmatpush.bf16.msra.mxu2 %v4499_v43  ;;  %v5570_v43 = vld [vmem:[#allocation14 + $0x3ac] sm:$0xf0] }
 0x141   :  { %2379 = vmatpush.bf16.msrb.mxu3 %v4527_v2  ;;  %v4735_v44 = vor.u32 %v5570_v43, %v4734_v42  ;;  %v4390_v2 = vld [vmem:[#allocation14 + $0xe8] sm:$0xf]  ;;  %v5471_v43 = vld [vmem:[#allocation14 + $0x94] sm:$0xf0] }
 0x142   :  { %2353 = vmatpush.bf16.msra.mxu1 %v4271_v14  ;;  %v4643_v14 = vor.u32 %v5544_v7, %v4640_v11  ;;  %v4544_v7 = vld [vmem:[#allocation14 + $0x230] sm:$0xf0]  ;;  %v4342_v42 = vld [vmem:[#allocation14 + $0x88] sm:$0xf] }
 0x143   :  { %v4547_v11 = vor.u32 %v5520_v4, %v4544_v7  ;;  %v4502_v4 = vld [vmem:[#allocation14 + $0x1c8] sm:$0xf]  ;;  %v5511_v7 = vld [vmem:[#allocation14 + $0x1d4] sm:$0xf0] }
 0x144   :  { %2413 = vmatpush.bf16.msra.mxu2 %v4483_v53  ;;  %v5566_v53 = vld [vmem:[#allocation14 + $0x38c] sm:$0xf0] }
 0x145   :  { %2424 = vmatpush.bf16.msra.mxu3 %v4643_v14  ;;  %v4719_v55 = vor.u32 %v5566_v53, %v4718_v51  ;;  %v5467_v53 = vld [vmem:[#allocation14 + $0x74] sm:$0xf0] }
 0x146   :  { %2398 = vmatpush.bf16.msrb.mxu1 %v4387_v47 }
 0x148   :  { %2414 = vmatpush.bf16.msra.mxu2 %v4467_v63  ;;  %v4702_v63 = vld [vmem:[#allocation14 + $0x360] sm:$0xf] }
 0x149   :  { %v4703_v1 = vor.u32 %v5562_v0, %v4702_v63 }
 0x14a   :  { %2399 = vmatpush.bf16.msrb.mxu1 %v4371_v23  ;;  %v6193_v57 = vpop.f32.mrf.mxu0  ;;  %v4627_v23 = vor.u32 %v5540_v17, %v4624_v20  ;;  %v4391_v17 = vor.u32 %v5483_v3, %v4390_v2  ;;  %v4374_v20 = vld [vmem:[#allocation14 + $0xc8] sm:$0xf]  ;;  %v5463_v3 = vld [vmem:[#allocation14 + $0x54] sm:$0xf0] }
 0x14c   :  { %2415 = vmatpush.bf16.msra.mxu2 %v4451_v10  ;;  %2425 = vmatpush.bf16.msra.mxu3 %v4627_v23 }
 0x14e   :  { %2400 = vmatpush.bf16.msrb.mxu1 %v4355_v31  ;;  %v5574_v31 = vld [vmem:[#allocation14 + $0x3cc] sm:$0xf0] }
 0x14f   :  { %v4751_v9 = vor.u32 %v5574_v31, %v4750_v30 }
 0x150   :  { %2416 = vmatpush.bf16.msra.mxu2 %v4435_v19  ;;  %2426 = vmatpush.bf16.msra.mxu3 %v4611_v33  ;;  %v4654_v33 = vld [vmem:[#allocation14 + $0x300] sm:$0xf] }
 0x151   :  { %2386 = vmatpush.bf16.msrb.mxu0 %v4751_v9  ;;  %v5550_v9 = vld [vmem:[#allocation14 + $0x30c] sm:$0xf0] }
 0x152   :  { %2401 = vmatpush.bf16.msrb.mxu1 %v4339_v39  ;;  %v1219_v47 = vpop.f32.mrf.mxu0  ;;  %v560_v39 = vperm.slane %v6195_v32, 0  ;;  %v4655_v37 = vor.u32 %v5550_v9, %v4654_v33  ;;  %v5481_v9 = vld [vmem:[#allocation14 + $0xec] sm:$0xf] }
 0x153   :  { %v5558_v47 = vld [vmem:[#allocation14 + $0x34c] sm:$0xf0] }
 0x154   :  { %2417 = vmatpush.bf16.msra.mxu2 %v4419_v28  ;;  %2427 = vmatpush.bf16.msra.mxu3 %v4595_v41  ;;  %v1218_v48 = vadd.f32 %v6193_v57, %v560_v39  ;;  %v4358_v28 = vld [vmem:[#allocation14 + $0xa8] sm:$0xf]  ;;  %v5576_v39 = vld [vmem:[#allocation14 + $0x3e4] sm:$0xf]  ;;  %v4768_v41 = vld [vmem:[#allocation14 + $0x3f0] sm:$0xf0] }
 0x155   :  { %2387 = vmatpush.bf16.msrb.mxu0 %v4735_v44  ;;  %v4359_v38 = vor.u32 %v5475_v29, %v4358_v28  ;;  %v4771_v44 = vor.u32 %v5576_v39, %v4768_v41  ;;  %v5455_v29 = vld [vmem:[#allocation14 + $0x14] sm:$0xf0] }
 0x156   :  { %2402 = vmatpush.bf16.msrb.mxu1 %v4323_v49 }
 0x157   :  { %v1243_v6 = vpop.f32.mrf.mxu2 }
 0x158   :  { %v1256_v27 = vpop.f32.mrf.mxu3  ;;  %2418 = vmatpush.bf16.msra.mxu2 %v4403_v34  ;;  %2428 = vmatpush.bf16.msra.mxu3 %v4579_v52  ;;  %v4326_v52 = vld [vmem:[#allocation14 + $0x68] sm:$0xf] }
 0x159   :  { %2388 = vmatpush.bf16.msrb.mxu0 %v4719_v55  ;;  %v5515_v55 = vld [vmem:[#allocation14 + $0x1f4] sm:$0xf0]  ;;  %v4327_v0 = vor.u32 %v5467_v53, %v4326_v52  ;;  %v5552_v52 = vld [vmem:[#allocation14 + $0x324] sm:$0xf] }
 0x15a   :  { %2403 = vmatpush.bf16.msrb.mxu1 %v4307_v59  ;;  %v6198_v40 = vpop.f32.mrf.mxu0  ;;  %v4560_v59 = vld [vmem:[#allocation14 + $0x250] sm:$0xf0] }
 0x15b   :  { %v4563_v62 = vor.u32 %v5524_v58, %v4560_v59  ;;  %v1270_v30 = vadd.f32 %v6198_v40, %v561_v15  ;;  %v5572_v40 = vld [vmem:[#allocation14 + $0x3c4] sm:$0xf]  ;;  %v5459_v15 = vld [vmem:[#allocation14 + $0x34] sm:$0xf0] }
 0x15d   :  { %2429 = vmatpush.bf16.msra.mxu3 %v4563_v62  ;;  %2389 = vmatpush.bf16.msrb.mxu0 %v4703_v1 }
 0x15e   :  { %2404 = vmatpush.bf16.msrb.mxu1 %v4291_v8 }
 0x15f   :  { %v1245_v49 = vpop.f32.mrf.mxu2 }
 0x160   :  { %v1258_v50 = vpop.f32.mrf.mxu3 }
 0x161   :  { %2430 = vmatpush.bf16.msra.mxu3 %v4547_v11  ;;  %v4343_v50 = vor.u32 %v5471_v43, %v4342_v42  ;;  %v5564_v11 = vld [vmem:[#allocation14 + $0x384] sm:$0xf]  ;;  %v4454_v42 = vld [vmem:[#allocation14 + $0x168] sm:$0xf]  ;;  %v5499_v43 = vld [vmem:[#allocation14 + $0x174] sm:$0xf0] }
 0x162   :  { %2405 = vmatpush.bf16.msrb.mxu1 %v4275_v18  ;;  %v1230_v54 = vpop.f32.mrf.mxu1  ;;  %v1271_v61 = vpop.f32.mrf.mxu0  ;;  %v4687_v18 = vor.u32 %v5558_v47, %v4686_v12  ;;  %v4720_v12 = vld [vmem:[#allocation14 + $0x390] sm:$0xf0]  ;;  %v4294_v47 = vld [vmem:[#allocation14 + $0x28] sm:$0xf]  ;;  %v4455_v53 = vor.u32 %v5499_v43, %v4454_v42 }
 0x163   :  { %v1231_v56 = vadd.f32 %v1230_v54, %v1218_v48  ;;  %v4752_v48 = vld [vmem:[#allocation14 + $0x3d0] sm:$0xf0]  ;;  %v4518_v54 = vld [vmem:[#allocation14 + $0x1e8] sm:$0xf] }
 0x164   :  { %2390 = vmatpush.bf16.msrb.mxu0 %v4687_v18  ;;  %v4755_v51 = vor.u32 %v5572_v40, %v4752_v48  ;;  %v4736_v61 = vld [vmem:[#allocation14 + $0x3b0] sm:$0xf0]  ;;  %v4519_v1 = vor.u32 %v5515_v55, %v4518_v54  ;;  %v4723_v18 = vor.u32 %v5564_v11, %v4720_v12  ;;  %v5477_v40 = vld [vmem:[#allocation14 + $0xcc] sm:$0xf]  ;;  %v4376_v48 = vld [vmem:[#allocation14 + $0xd8] sm:$0xf0] }
 0x165   :  { %v1244_v60 = vadd.f32 %v1243_v6, %v1231_v56  ;;  %v4671_v6 = vor.u32 %v5554_v25, %v4670_v24  ;;  %2431 = vmatpush.bf16.msra.mxu3 %v4531_v26  ;;  %v4704_v24 = vld [vmem:[#allocation14 + $0x370] sm:$0xf0]  ;;  %v4295_v26 = vor.u32 %v5459_v15, %v4294_v47  ;;  %v4422_v11 = vld [vmem:[#allocation14 + $0x128] sm:$0xf]  ;;  %v5491_v12 = vld [vmem:[#allocation14 + $0x134] sm:$0xf0] }
 0x166   :  { %v4707_v33 = vor.u32 %v5560_v5, %v4704_v24  ;;  %v4672_v54 = vld [vmem:[#allocation14 + $0x330] sm:$0xf0]  ;;  %v5469_v47 = vld [vmem:[#allocation14 + $0x8c] sm:$0xf]  ;;  %v4344_v15 = vld [vmem:[#allocation14 + $0x98] sm:$0xf0] }
 0x167   :  { %v1257_v57 = vadd.f32 %v1256_v27, %v1244_v60  ;;  %v1295_v10 = vpop.f32.mrf.mxu2  ;;  %v4375_v27 = vor.u32 %v5479_v21, %v4374_v20  ;;  %v5568_v60 = vld [vmem:[#allocation14 + $0x3a4] sm:$0xf]  ;;  %v5487_v5 = vld [vmem:[#allocation14 + $0x114] sm:$0xf0]  ;;  %v4598_v24 = vld [vmem:[#allocation14 + $0x288] sm:$0xf] }
 0x168   :  { %v1308_v13 = vpop.f32.mrf.mxu3  ;;  %2391 = vmatpush.bf16.msrb.mxu0 %v4671_v6 }
 0x169   :  { %vm1416_vm11 = vcmp.ge.f32.partialorder %v1257_v57, 0.0  ;;  %v1420_v8 = vmul.f32 0.1, %v1257_v57 }
 0x16a   :  { %v1232_v14 = vpop.f32.mrf.mxu1 }
 0x16b   :  { %v1424_v16 = vsel %vm1416_vm11, %v1257_v57, %v1420_v8  ;;  %v4310_v57 = vld [vmem:[#allocation14 + $0x48] sm:$0xf]  ;;  %v4739_v8 = vor.u32 %v5568_v60, %v4736_v61  ;;  %v4503_v14 = vor.u32 %v5511_v7, %v4502_v4  ;;  %v5495_v60 = vld [vmem:[#allocation14 + $0x154] sm:$0xf0]  ;;  %v4656_v4 = vld [vmem:[#allocation14 + $0x310] sm:$0xf0] }
 0x16c   :  { %v6202_v19 = vpack.c.bf16 %v1424_v16, %v1424_v16  ;;  %2392 = vmatpush.bf16.msrb.mxu0 %v4655_v37  ;;  %v4486_v16 = vld [vmem:[#allocation14 + $0x1a8] sm:$0xf]  ;;  %v4688_v37 = vld [vmem:[#allocation14 + $0x350] sm:$0xf0] }
 0x16d   :  { %v6204_v23 = vpop.f32.mrf.mxu0  ;;  %v4630_v61 = vld [vmem:[#allocation14 + $0x2c8] sm:$0xf] }
 0x16e   :  { %2354 = vmatmul.bf16.vlgmr.msra.gmra.mxu1 %v6202_v19 }
 0x16f   :  { %2450 = vmatpush.bf16.msra.mxu1 %v4391_v17  ;;  %v1297_v31 = vpop.f32.mrf.mxu2  ;;  %v5507_v17 = vld [vmem:[#allocation14 + $0x1b4] sm:$0xf0] }
 0x170   :  { %v1310_v35 = vpop.f32.mrf.mxu3  ;;  %2437 = vmatpush.bf16.msra.mxu0 %v4771_v44  ;;  %v4487_v6 = vor.u32 %v5507_v17, %v4486_v16  ;;  %v5503_v31 = vld [vmem:[#allocation14 + $0x194] sm:$0xf0]  ;;  %v4646_v44 = vld [vmem:[#allocation14 + $0x2e8] sm:$0xf] }
 0x171   :  { %v4392_v35 = vld [vmem:[#allocation14 + $0xf8] sm:$0xf0] }
 0x172   :  { %v1282_v36 = vpop.f32.mrf.mxu1  ;;  %v4395_v41 = vor.u32 %v5481_v9, %v4392_v35  ;;  %v4582_v35 = vld [vmem:[#allocation14 + $0x268] sm:$0xf] }
 0x173   :  { %v1283_v34 = vadd.f32 %v1282_v36, %v1270_v30  ;;  %2451 = vmatpush.bf16.msra.mxu1 %v4375_v27  ;;  %v4278_v27 = vld [vmem:[#allocation14 + $0x8] sm:$0xf] }
 0x174   :  { %2438 = vmatpush.bf16.msra.mxu0 %v4755_v51  ;;  %v4470_v30 = vld [vmem:[#allocation14 + $0x188] sm:$0xf] }
 0x175   :  { %v1296_v45 = vadd.f32 %v1295_v10, %v1283_v34  ;;  %v1323_v46 = vpop.f32.mrf.mxu0  ;;  %v562_v10 = vperm.slane %v6195_v32, 2  ;;  %v4279_v34 = vor.u32 %v5455_v29, %v4278_v27  ;;  %v4520_v29 = vld [vmem:[#allocation14 + $0x1f8] sm:$0xf0] }
 0x176   :  { %v5547_v46 = vld [vmem:[#allocation14 + $0x2f4] sm:$0xf0] }
 0x177   :  { %v1309_v49 = vadd.f32 %v1308_v13, %v1296_v45  ;;  %2452 = vmatpush.bf16.msra.mxu1 %v4359_v38  ;;  %v4311_v13 = vor.u32 %v5463_v3, %v4310_v57  ;;  %v1322_v20 = vadd.f32 %v6204_v23, %v562_v10  ;;  %v5556_v23 = vld [vmem:[#allocation14 + $0x344] sm:$0xf]  ;;  %v4471_v38 = vor.u32 %v5503_v31, %v4470_v30 }
 0x178   :  { %v1347_v58 = vpop.f32.mrf.mxu2  ;;  %2439 = vmatpush.bf16.msra.mxu0 %v4739_v8  ;;  %v4691_v45 = vor.u32 %v5556_v23, %v4688_v37  ;;  %v4675_v57 = vor.u32 %v5552_v52, %v4672_v54  ;;  %v5548_v3 = vld [vmem:[#allocation14 + $0x304] sm:$0xf]  ;;  %v5531_v23 = vld [vmem:[#allocation14 + $0x274] sm:$0xf0]  ;;  %v5461_v37 = vld [vmem:[#allocation14 + $0x4c] sm:$0xf] }
 0x179   :  { %vm1417_vm12 = vcmp.ge.f32.partialorder %v1309_v49, 0.0  ;;  %v1421_v56 = vmul.f32 0.1, %v1309_v49  ;;  %v4659_v16 = vor.u32 %v5548_v3, %v4656_v4  ;;  %v4583_v42 = vor.u32 %v5531_v23, %v4582_v35  ;;  %v5727_v3 = vld [vmem:[#allocation13] ss:$0 sm:$0xff] }
 0x17a   :  { %v1284_v62 = vpop.f32.mrf.mxu1  ;;  %v5489_v35 = vld [vmem:[#allocation14 + $0x12c] sm:$0xf]  ;;  %v4424_v23 = vld [vmem:[#allocation14 + $0x138] sm:$0xf0] }
 0x17b   :  { %v1360_v59 = vpop.f32.mrf.mxu3  ;;  %2453 = vmatpush.bf16.msra.mxu1 %v4343_v50  ;;  %v1425_v63 = vsel %vm1417_vm12, %v1309_v49, %v1421_v56  ;;  %v4647_v56 = vor.u32 %v5547_v46, %v4646_v44  ;;  %v4566_v44 = vld [vmem:[#allocation14 + $0x248] sm:$0xf]  ;;  %v5527_v46 = vld [vmem:[#allocation14 + $0x254] sm:$0xf0] }
 0x17c   :  { %v6208_v2 = vpack.c.bf16 %v1425_v63, %v1425_v63  ;;  %2440 = vmatpush.bf16.msra.mxu0 %v4723_v18  ;;  %v5543_v63 = vld [vmem:[#allocation14 + $0x2d4] sm:$0xf0]  ;;  %v4423_v18 = vor.u32 %v5491_v12, %v4422_v11  ;;  %v4534_v11 = vld [vmem:[#allocation14 + $0x208] sm:$0xf] }
 0x17d   :  { %v4631_v8 = vor.u32 %v5543_v63, %v4630_v61  ;;  %v5523_v61 = vld [vmem:[#allocation14 + $0x234] sm:$0xf0]  ;;  %v5453_v63 = vld [vmem:[#allocation14 + $0xc] sm:$0xf] }
 0x17e   :  { %2367 = vmatmul.bf16.vlgmr.msrb.gmra.mxu2 %v6208_v2  ;;  %2406 = vmatmul.bf16.vlgmr.msrb.gmra.mxu1 %v6202_v19  ;;  %v5519_v12 = vld [vmem:[#allocation14 + $0x214] sm:$0xf0] }
 0x17f   :  { %2454 = vmatpush.bf16.msra.mxu1 %v4327_v0  ;;  %2463 = vmatpush.bf16.msrb.mxu2 %v4519_v1  ;;  %v5473_v0 = vld [vmem:[#allocation14 + $0xac] sm:$0xf]  ;;  %v4360_v1 = vld [vmem:[#allocation14 + $0xb8] sm:$0xf0] }
 0x180   :  { %v1349_v21 = vpop.f32.mrf.mxu2  ;;  %2441 = vmatpush.bf16.msra.mxu0 %v4707_v33  ;;  %v4363_v10 = vor.u32 %v5473_v0, %v4360_v1  ;;  %v5501_v1 = vld [vmem:[#allocation14 + $0x18c] sm:$0xf] }
 0x181   :  { %v4347_v21 = vor.u32 %v5469_v47, %v4344_v15  ;;  %v5545_v47 = vld [vmem:[#allocation14 + $0x2ec] sm:$0xf]  ;;  %v4648_v15 = vld [vmem:[#allocation14 + $0x2f8] sm:$0xf0] }
 0x182   :  { %v1334_v25 = vpop.f32.mrf.mxu1 }
 0x183   :  { %v1362_v22 = vpop.f32.mrf.mxu3  ;;  %2455 = vmatpush.bf16.msra.mxu1 %v4311_v13  ;;  %2464 = vmatpush.bf16.msrb.mxu2 %v4503_v14  ;;  %v1335_v28 = vadd.f32 %v1334_v25, %v1322_v20  ;;  %v4614_v13 = vld [vmem:[#allocation14 + $0x2a8] sm:$0xf]  ;;  %v5539_v14 = vld [vmem:[#allocation14 + $0x2b4] sm:$0xf0] }
 0x184   :  { %2442 = vmatpush.bf16.msra.mxu0 %v4691_v45  ;;  %v4615_v20 = vor.u32 %v5539_v14, %v4614_v13  ;;  %v4406_v22 = vld [vmem:[#allocation14 + $0x108] sm:$0xf]  ;;  %v5535_v25 = vld [vmem:[#allocation14 + $0x294] sm:$0xf0]  ;;  %v5497_v13 = vld [vmem:[#allocation14 + $0x16c] sm:$0xf] }
 0x185   :  { %v1348_v36 = vadd.f32 %v1347_v58, %v1335_v28  ;;  %v4379_v58 = vor.u32 %v5477_v40, %v4376_v48  ;;  %v5513_v28 = vld [vmem:[#allocation14 + $0x1ec] sm:$0xf]  ;;  %v4407_v31 = vor.u32 %v5487_v5, %v4406_v22  ;;  %v4599_v33 = vor.u32 %v5535_v25, %v4598_v24  ;;  %v4296_v48 = vld [vmem:[#allocation14 + $0x38] sm:$0xf0] }
 0x186   :  { %v5457_v40 = vld [vmem:[#allocation14 + $0x2c] sm:$0xf]  ;;  %v4456_v14 = vld [vmem:[#allocation14 + $0x178] sm:$0xf0]  ;;  %v4651_v5 = vor.u32 %v5545_v47, %v4648_v15  ;;  %v4678_v47 = vld [vmem:[#allocation14 + $0x328] sm:$0xf] }
 0x187   :  { %2456 = vmatpush.bf16.msra.mxu1 %v4295_v26  ;;  %2465 = vmatpush.bf16.msrb.mxu2 %v4487_v6  ;;  %v1361_v39 = vadd.f32 %v1360_v59, %v1348_v36  ;;  %v4438_v59 = vld [vmem:[#allocation14 + $0x148] sm:$0xf]  ;;  %v5465_v26 = vld [vmem:[#allocation14 + $0x6c] sm:$0xf]  ;;  %v4328_v6 = vld [vmem:[#allocation14 + $0x78] sm:$0xf0]  ;;  %v4523_v36 = vor.u32 %v5513_v28, %v4520_v29  ;;  %v4459_v22 = vor.u32 %v5497_v13, %v4456_v14 }
 0x188   :  { %v4439_v7 = vor.u32 %v5495_v60, %v4438_v59  ;;  %2443 = vmatpush.bf16.msra.mxu0 %v4675_v57  ;;  %v4331_v9 = vor.u32 %v5465_v26, %v4328_v6  ;;  %v4550_v59 = vld [vmem:[#allocation14 + $0x228] sm:$0xf]  ;;  %v4472_v57 = vld [vmem:[#allocation14 + $0x198] sm:$0xf0]  ;;  %v5493_v24 = vld [vmem:[#allocation14 + $0x14c] sm:$0xf] }
 0x189   :  { %vm1418_vm13 = vcmp.ge.f32.partialorder %v1361_v39, 0.0  ;;  %v1422_v49 = vmul.f32 0.1, %v1361_v39  ;;  %v4551_v4 = vor.u32 %v5523_v61, %v4550_v59  ;;  %v4440_v25 = vld [vmem:[#allocation14 + $0x158] sm:$0xf0] }
 0x18a   :  { %v1336_v51 = vpop.f32.mrf.mxu1  ;;  %v5541_v26 = vld [vmem:[#allocation14 + $0x2cc] sm:$0xf]  ;;  %v4632_v6 = vld [vmem:[#allocation14 + $0x2d8] sm:$0xf0]  ;;  %v4443_v28 = vor.u32 %v5493_v24, %v4440_v25  ;;  %v4774_v29 = vld [vmem:[#allocation14 + $0x3e8] sm:$0xf] }
 0x18b   :  { %2457 = vmatpush.bf16.msra.mxu1 %v4279_v34  ;;  %2466 = vmatpush.bf16.msrb.mxu2 %v4471_v38  ;;  %v1426_v55 = vsel %vm1418_vm13, %v1361_v39, %v1422_v49  ;;  %v4312_v34 = vld [vmem:[#allocation14 + $0x58] sm:$0xf0]  ;;  %v563_v38 = vperm.slane %v6195_v32, 3  ;;  %v5509_v39 = vld [vmem:[#allocation14 + $0x1cc] sm:$0xf] }
 0x18c   :  { %v6216_v62 = vpack.c.bf16 %v1426_v55, %v1426_v55  ;;  %2444 = vmatpush.bf16.msra.mxu0 %v4659_v16  ;;  %v4315_v43 = vor.u32 %v5461_v37, %v4312_v34  ;;  %v5505_v51 = vld [vmem:[#allocation14 + $0x1ac] sm:$0xf]  ;;  %v4488_v32 = vld [vmem:[#allocation14 + $0x1b8] sm:$0xf0]  ;;  %v5567_v59 = vld [vmem:[#allocation14 + $0x394] sm:$0xf0] }
 0x18d   :  { %v6214_v50 = vpop.f32.mrf.mxu0  ;;  %v4491_v60 = vor.u32 %v5505_v51, %v4488_v32  ;;  %v5537_v37 = vld [vmem:[#allocation14 + $0x2ac] sm:$0xf]  ;;  %v4616_v34 = vld [vmem:[#allocation14 + $0x2b8] sm:$0xf0]  ;;  %v5571_v51 = vld [vmem:[#allocation14 + $0x3b4] sm:$0xf0] }
 0x18e   :  { %2419 = vmatmul.bf16.vlgmr.msra.gmra.mxu2 %v6208_v2  ;;  %2458 = vmatmul.bf16.vlgmr.msra.gmra.mxu1 %v6202_v19  ;;  %v1374_v49 = vadd.f32 %v6214_v50, %v563_v38  ;;  %v4280_v50 = vld [vmem:[#allocation14 + $0x18] sm:$0xf0]  ;;  %v5525_v61 = vld [vmem:[#allocation14 + $0x24c] sm:$0xf] }
 0x18f   :  { %2502 = vmatpush.bf16.msrb.mxu1 %v4395_v41  ;;  %2380 = vmatmul.bf16.vlgmr.msrb.gmra.mxu3 %v6216_v62  ;;  %v4504_v41 = vld [vmem:[#allocation14 + $0x1d8] sm:$0xf0]  ;;  %v5573_v24 = vld [vmem:[#allocation14 + $0x3cc] sm:$0xf] }
 0x190   :  { %2467 = vmatpush.bf16.msrb.mxu2 %v4455_v53  ;;  %2476 = vmatpush.bf16.msrb.mxu3 %v4647_v56  ;;  %v4507_v45 = vor.u32 %v5509_v39, %v4504_v41  ;;  %v4567_v56 = vor.u32 %v5527_v46, %v4566_v44  ;;  %v4758_v41 = vld [vmem:[#allocation14 + $0x3c8] sm:$0xf]  ;;  %v4619_v44 = vor.u32 %v5537_v37, %v4616_v34  ;;  %v4408_v46 = vld [vmem:[#allocation14 + $0x118] sm:$0xf0]  ;;  %v4878_v37 = vld [vmem:[#allocation16 + $0xc0] sm:$0xf] }
 0x191   :  { %v4536_v13 = vld [vmem:[#allocation14 + $0x218] sm:$0xf0]  ;;  %v5606_v34 = vld [vmem:[#allocation16 + $0xcc] sm:$0xf0] }
 0x192   :  { %v4760_v25 = vld [vmem:[#allocation14 + $0x3d8] sm:$0xf0] }
 0x193   :  { %2503 = vmatpush.bf16.msrb.mxu1 %v4379_v58  ;;  %v4299_v58 = vor.u32 %v5457_v40, %v4296_v48  ;;  %v5533_v40 = vld [vmem:[#allocation14 + $0x28c] sm:$0xf]  ;;  %v4600_v48 = vld [vmem:[#allocation14 + $0x298] sm:$0xf0] }
 0x194   :  { %2468 = vmatpush.bf16.msrb.mxu2 %v4439_v7  ;;  %2477 = vmatpush.bf16.msrb.mxu3 %v4631_v8  ;;  %v4283_v7 = vor.u32 %v5453_v63, %v4280_v50  ;;  %v4568_v63 = vld [vmem:[#allocation14 + $0x258] sm:$0xf0] }
 0x195   :  { %v1375_v17 = vpop.f32.mrf.mxu0 }
 0x197   :  { %2504 = vmatpush.bf16.msrb.mxu1 %v4363_v10  ;;  %v4475_v10 = vor.u32 %v5501_v1, %v4472_v57  ;;  %v5563_v1 = vld [vmem:[#allocation14 + $0x374] sm:$0xf0]  ;;  %v4571_v57 = vor.u32 %v5525_v61, %v4568_v63  ;;  %v5642_v61 = vld [vmem:[#allocation16 + $0x1ec] sm:$0xf0]  ;;  %v4814_v63 = vld [vmem:[#allocation16 + $0x40] sm:$0xf] }
 0x198   :  { %v1399_v27 = vpop.f32.mrf.mxu2  ;;  %2469 = vmatpush.bf16.msrb.mxu2 %v4423_v18  ;;  %2478 = vmatpush.bf16.msrb.mxu3 %v4615_v20  ;;  %v4535_v18 = vor.u32 %v5519_v12, %v4534_v11  ;;  %v5517_v12 = vld [vmem:[#allocation14 + $0x20c] sm:$0xf] }
 0x199   :  { %v1412_v30 = vpop.f32.mrf.mxu3  ;;  %v4539_v15 = vor.u32 %v5517_v12, %v4536_v13  ;;  %v5634_v13 = vld [vmem:[#allocation16 + $0x1ac] sm:$0xf0] }
 0x19b   :  { %2505 = vmatpush.bf16.msrb.mxu1 %v4347_v21 }
 0x19c   :  { %2470 = vmatpush.bf16.msrb.mxu2 %v4407_v31  ;;  %2479 = vmatpush.bf16.msrb.mxu3 %v4599_v33 }
 0x19f   :  { %2506 = vmatpush.bf16.msrb.mxu1 %v4331_v9  ;;  %2471 = vmatmul.bf16.vlgmr.msrb.gmra.mxu2 %v6208_v2  ;;  %v4635_v9 = vor.u32 %v5541_v26, %v4632_v6  ;;  %v4763_v26 = vor.u32 %v5573_v24, %v4760_v25  ;;  %v5569_v6 = vld [vmem:[#allocation14 + $0x3ac] sm:$0xf]  ;;  %v5150_v24 = vld [vmem:[#allocation16 + $0x2e0] sm:$0xf] }
 0x1a0   :  { %2515 = vmatpush.bf16.msra.mxu2 %v4523_v36  ;;  %v1401_v52 = vpop.f32.mrf.mxu2  ;;  %2432 = vmatmul.bf16.vlgmr.msra.gmra.mxu3 %v6216_v62 }
 0x1a1   :  { %v1414_v53 = vpop.f32.mrf.mxu3  ;;  %2480 = vmatpush.bf16.msrb.mxu3 %v4583_v42  ;;  %v5575_v42 = vld [vmem:[#allocation14 + $0x3d4] sm:$0xf0]  ;;  %v4742_v52 = vld [vmem:[#allocation14 + $0x3a8] sm:$0xf] }
 0x1a2   :  { %v1386_v54 = vpop.f32.mrf.mxu1  ;;  %v4603_v53 = vor.u32 %v5533_v40, %v4600_v48  ;;  %v4846_v40 = vld [vmem:[#allocation16 + $0x80] sm:$0xf] }
 0x1a3   :  { %v1387_v55 = vadd.f32 %v1386_v54, %v1374_v49  ;;  %2507 = vmatpush.bf16.msrb.mxu1 %v4315_v43  ;;  %v4427_v43 = vor.u32 %v5489_v35, %v4424_v23  ;;  %v4759_v49 = vor.u32 %v5575_v42, %v4758_v41  ;;  %v5529_v54 = vld [vmem:[#allocation14 + $0x26c] sm:$0xf]  ;;  %v4894_v35 = vld [vmem:[#allocation16 + $0xe0] sm:$0xf]  ;;  %v4879_v41 = vor.u32 %v5606_v34, %v4878_v37 }
 0x1a4   :  { %2516 = vmatpush.bf16.msra.mxu2 %v4507_v45  ;;  %v5485_v45 = vld [vmem:[#allocation14 + $0x10c] sm:$0xf] }
 0x1a5   :  { %v1400_v0 = vadd.f32 %v1399_v27, %v1387_v55  ;;  %2481 = vmatpush.bf16.msrb.mxu3 %v4567_v56  ;;  %v4411_v32 = vor.u32 %v5485_v45, %v4408_v46  ;;  %v4584_v55 = vld [vmem:[#allocation14 + $0x278] sm:$0xf0]  ;;  %v4743_v56 = vor.u32 %v5571_v51, %v4742_v52  ;;  %v4862_v45 = vld [vmem:[#allocation16 + $0xa0] sm:$0xf]  ;;  %v5602_v46 = vld [vmem:[#allocation16 + $0xac] sm:$0xf0] }
 0x1a6   :  { %v5598_v52 = vld [vmem:[#allocation16 + $0x8c] sm:$0xf0]  ;;  %v5549_v51 = vld [vmem:[#allocation14 + $0x30c] sm:$0xf] }
 0x1a7   :  { %2508 = vmatpush.bf16.msrb.mxu1 %v4299_v58  ;;  %v1413_v8 = vadd.f32 %v1412_v30, %v1400_v0  ;;  %v5579_v30 = vld [vmem:[#allocation14 + $0x3f4] sm:$0xf0]  ;;  %v4726_v58 = vld [vmem:[#allocation14 + $0x388] sm:$0xf] }
 0x1a8   :  { %2517 = vmatpush.bf16.msra.mxu2 %v4491_v60  ;;  %v4775_v38 = vor.u32 %v5579_v30, %v4774_v29  ;;  %v4587_v60 = vor.u32 %v5529_v54, %v4584_v55  ;;  %v4727_v50 = vor.u32 %v5567_v59, %v4726_v58  ;;  %v4710_v0 = vld [vmem:[#allocation14 + $0x368] sm:$0xf]  ;;  %v5565_v29 = vld [vmem:[#allocation14 + $0x38c] sm:$0xf]  ;;  %v4728_v30 = vld [vmem:[#allocation14 + $0x398] sm:$0xf0] }
 0x1a9   :  { %2482 = vmatpush.bf16.msrb.mxu3 %v4551_v4  ;;  %v1423_v20 = vmul.f32 0.1, %v1413_v8  ;;  %vm1419_vm14 = vcmp.ge.f32.partialorder %v1413_v8, 0.0  ;;  %v4552_v4 = vld [vmem:[#allocation14 + $0x238] sm:$0xf0] }
 0x1aa   :  { %v1388_v16 = vpop.f32.mrf.mxu1  ;;  %v5594_v58 = vld [vmem:[#allocation16 + $0x6c] sm:$0xf0]  ;;  %v5022_v59 = vld [vmem:[#allocation16 + $0x1e0] sm:$0xf] }
 0x1ab   :  { %v1553_v17 = vpop.f32.mrf.mxu0  ;;  %2509 = vmatpush.bf16.msrb.mxu1 %v4283_v7  ;;  %v1427_v31 = vsel %vm1419_vm14, %v1413_v8, %v1423_v20  ;;  %v4711_v7 = vor.u32 %v5563_v1, %v4710_v0  ;;  %v4694_v8 = vld [vmem:[#allocation14 + $0x348] sm:$0xf]  ;;  %v5577_v20 = vld [vmem:[#allocation14 + $0x3ec] sm:$0xf]  ;;  %v5023_v0 = vor.u32 %v5642_v61, %v5022_v59  ;;  %v5006_v1 = vld [vmem:[#allocation16 + $0x1c0] sm:$0xf] }
 0x1ac   :  { %v1554_v21 = vadd.f32 %v5727_v3, %v1553_v17  ;;  %2518 = vmatpush.bf16.msra.mxu2 %v4475_v10  ;;  %v5521_v3 = vld [vmem:[#allocation14 + $0x22c] sm:$0xf]  ;;  %v5559_v10 = vld [vmem:[#allocation14 + $0x354] sm:$0xf0]  ;;  %v4662_v17 = vld [vmem:[#allocation14 + $0x308] sm:$0xf] }
 0x1ad   :  { %2483 = vmatpush.bf16.msrb.mxu3 %v4535_v18  ;;  %v4555_v11 = vor.u32 %v5521_v3, %v4552_v4  ;;  %v4695_v14 = vor.u32 %v5559_v10, %v4694_v8  ;;  %v5551_v18 = vld [vmem:[#allocation14 + $0x314] sm:$0xf0]  ;;  %v4798_v8 = vld [vmem:[#allocation16 + $0x20] sm:$0xf]  ;;  %v5586_v10 = vld [vmem:[#allocation16 + $0x2c] sm:$0xf0] }
 0x1ae   :  { %vm1557_vm15 = vcmp.ge.f32.partialorder %v1554_v21, 0.0  ;;  %v1558_v27 = vmul.f32 0.1, %v1554_v21  ;;  %2510 = vmatmul.bf16.vlgmr.msrb.gmra.mxu1 %v6202_v19  ;;  %v4799_v12 = vor.u32 %v5586_v10, %v4798_v8  ;;  %v4816_v8 = vld [vmem:[#allocation16 + $0x50] sm:$0xf0] }
 0x1af   :  { %v5636_v10 = vld [vmem:[#allocation16 + $0x1c4] sm:$0xf] }
 0x1b0   :  { %v1559_v33 = vsel %vm1557_vm15, %v1554_v21, %v1558_v27  ;;  %2519 = vmatpush.bf16.msra.mxu2 %v4459_v22  ;;  %2484 = vmatmul.bf16.vlgmr.msrb.gmra.mxu3 %v6216_v62  ;;  %v4776_v21 = vld [vmem:[#allocation14 + $0x3f8] sm:$0xf0]  ;;  %v4663_v22 = vor.u32 %v5551_v18, %v4662_v17  ;;  %v5608_v17 = vld [vmem:[#allocation16 + $0xe4] sm:$0xf] }
 0x1b1   :  { %2528 = vmatpush.bf16.msra.mxu3 %v4651_v5  ;;  %v1563_v36 = vadd.f32 %v1559_v33, %v1427_v31  ;;  %v4779_v5 = vor.u32 %v5577_v20, %v4776_v21  ;;  %v4744_v27 = vld [vmem:[#allocation14 + $0x3b8] sm:$0xf0]  ;;  %v4731_v31 = vor.u32 %v5565_v29, %v4728_v30  ;;  %v5561_v33 = vld [vmem:[#allocation14 + $0x36c] sm:$0xf]  ;;  %v4896_v20 = vld [vmem:[#allocation16 + $0xf0] sm:$0xf0] }
 0x1b2   :  { %v4899_v21 = vor.u32 %v5608_v17, %v4896_v20  ;;  %v5632_v17 = vld [vmem:[#allocation16 + $0x1a4] sm:$0xf] }
 0x1b3   :  { %v6227_v39 = vpack.c.bf16 %v1563_v36, %v1563_v36  ;;  %v1555_v19 = vpop.f32.mrf.mxu0 }
 0x1b4   :  { %2520 = vmatpush.bf16.msra.mxu2 %v4443_v28  ;;  %v4747_v28 = vor.u32 %v5569_v6, %v4744_v27  ;;  %v4696_v19 = vld [vmem:[#allocation14 + $0x358] sm:$0xf0]  ;;  %v5674_v6 = vld [vmem:[#allocation16 + $0x2ec] sm:$0xf0]  ;;  %v5604_v27 = vld [vmem:[#allocation16 + $0xc4] sm:$0xf] }
 0x1b5   :  { %2529 = vmatpush.bf16.msra.mxu3 %v4635_v9  ;;  %2393 = vmatmul.bf16.vlgmr.msrb.gmra.mxu0 %v6227_v39  ;;  %v4712_v9 = vld [vmem:[#allocation14 + $0x378] sm:$0xf0]  ;;  %v5151_v29 = vor.u32 %v5674_v6, %v5150_v24  ;;  %v5054_v24 = vld [vmem:[#allocation16 + $0x220] sm:$0xf] }
 0x1b6   :  { %2489 = vmatpush.bf16.msrb.mxu0 %v4775_v38  ;;  %v4715_v36 = vor.u32 %v5561_v33, %v4712_v9  ;;  %v5557_v38 = vld [vmem:[#allocation14 + $0x34c] sm:$0xf]  ;;  %v5622_v33 = vld [vmem:[#allocation16 + $0x14c] sm:$0xf0]  ;;  %v5134_v9 = vld [vmem:[#allocation16 + $0x2c0] sm:$0xf] }
 0x1b7   :  { %v4699_v42 = vor.u32 %v5557_v38, %v4696_v19 }
 0x1b8   :  { %2521 = vmatpush.bf16.msra.mxu2 %v4427_v43  ;;  %v5553_v43 = vld [vmem:[#allocation14 + $0x32c] sm:$0xf] }
 0x1b9   :  { %2530 = vmatpush.bf16.msra.mxu3 %v4619_v44  ;;  %v4680_v44 = vld [vmem:[#allocation14 + $0x338] sm:$0xf0] }
 0x1ba   :  { %2490 = vmatpush.bf16.msrb.mxu0 %v4759_v49  ;;  %v4683_v48 = vor.u32 %v5553_v43, %v4680_v44  ;;  %v4863_v49 = vor.u32 %v5602_v46, %v4862_v45  ;;  %v5118_v43 = vld [vmem:[#allocation16 + $0x2a0] sm:$0xf]  ;;  %v5666_v45 = vld [vmem:[#allocation16 + $0x2ac] sm:$0xf0]  ;;  %v5596_v46 = vld [vmem:[#allocation16 + $0x84] sm:$0xf] }
 0x1bc   :  { %2522 = vmatpush.bf16.msra.mxu2 %v4411_v32  ;;  %v4664_v32 = vld [vmem:[#allocation14 + $0x318] sm:$0xf0] }
 0x1bd   :  { %2531 = vmatpush.bf16.msra.mxu3 %v4603_v53  ;;  %v4847_v53 = vor.u32 %v5598_v52, %v4846_v40  ;;  %v4667_v54 = vor.u32 %v5549_v51, %v4664_v32  ;;  %v4848_v40 = vld [vmem:[#allocation16 + $0x90] sm:$0xf0]  ;;  %v4910_v52 = vld [vmem:[#allocation16 + $0x100] sm:$0xf]  ;;  %v5614_v51 = vld [vmem:[#allocation16 + $0x10c] sm:$0xf0] }
 0x1be   :  { %2491 = vmatpush.bf16.msrb.mxu0 %v4743_v56  ;;  %v4830_v56 = vld [vmem:[#allocation16 + $0x60] sm:$0xf] }
 0x1bf   :  { %2523 = vmatmul.bf16.vlgmr.msra.gmra.mxu2 %v6208_v2  ;;  %v5555_v2 = vld [vmem:[#allocation14 + $0x334] sm:$0xf0]  ;;  %v5102_v32 = vld [vmem:[#allocation16 + $0x280] sm:$0xf] }
 0x1c0   :  { %v4679_v16 = vor.u32 %v5555_v2, %v4678_v47  ;;  %3361 = vmatpush.bf16.msrb.mxu2 %v5023_v0  ;;  %v5582_v47 = vld [vmem:[#allocation16 + $0xc] sm:$0xf0] }
 0x1c1   :  { %2532 = vmatpush.bf16.msra.mxu3 %v4587_v60  ;;  %v4831_v60 = vor.u32 %v5594_v58, %v4830_v56  ;;  %v5592_v56 = vld [vmem:[#allocation16 + $0x64] sm:$0xf]  ;;  %v4832_v58 = vld [vmem:[#allocation16 + $0x70] sm:$0xf0] }
 0x1c2   :  { %2492 = vmatpush.bf16.msrb.mxu0 %v4727_v50  ;;  %v5590_v50 = vld [vmem:[#allocation16 + $0x4c] sm:$0xf0]  ;;  %v4835_v61 = vor.u32 %v5592_v56, %v4832_v58  ;;  %v5246_v58 = vld [vmem:[#allocation16 + $0x3a0] sm:$0xf] }
 0x1c3   :  { %v4815_v3 = vor.u32 %v5590_v50, %v4814_v63  ;;  %v5640_v63 = vld [vmem:[#allocation16 + $0x1e4] sm:$0xf]  ;;  %v5024_v50 = vld [vmem:[#allocation16 + $0x1f0] sm:$0xf0] }
 0x1c4   :  { %v5027_v0 = vor.u32 %v5640_v63, %v5024_v50  ;;  %v4928_v63 = vld [vmem:[#allocation16 + $0x130] sm:$0xf0]  ;;  %v5664_v50 = vld [vmem:[#allocation16 + $0x2a4] sm:$0xf] }
 0x1c5   :  { %2533 = vmatpush.bf16.msra.mxu3 %v4571_v57  ;;  %2445 = vmatmul.bf16.vlgmr.msra.gmra.mxu0 %v6227_v39  ;;  %v5638_v57 = vld [vmem:[#allocation16 + $0x1cc] sm:$0xf0] }
 0x1c6   :  { %2493 = vmatpush.bf16.msrb.mxu0 %v4711_v7  ;;  %v5007_v4 = vor.u32 %v5638_v57, %v5006_v1  ;;  %v5086_v1 = vld [vmem:[#allocation16 + $0x260] sm:$0xf]  ;;  %v5658_v57 = vld [vmem:[#allocation16 + $0x26c] sm:$0xf0] }
 0x1c8   :  { %3362 = vmatpush.bf16.msrb.mxu2 %v5007_v4 }
 0x1c9   :  { %2534 = vmatpush.bf16.msra.mxu3 %v4555_v11  ;;  %v4990_v11 = vld [vmem:[#allocation16 + $0x1a0] sm:$0xf] }
 0x1ca   :  { %2494 = vmatpush.bf16.msrb.mxu0 %v4695_v14  ;;  %v4782_v14 = vld [vmem:[#allocation16] sm:$0xf]  ;;  %v4991_v2 = vor.u32 %v5634_v13, %v4990_v11  ;;  %v5008_v11 = vld [vmem:[#allocation16 + $0x1d0] sm:$0xf0] }
 0x1cb   :  { %v4783_v18 = vor.u32 %v5582_v47, %v4782_v14  ;;  %v5011_v13 = vor.u32 %v5636_v10, %v5008_v11  ;;  %v5070_v14 = vld [vmem:[#allocation16 + $0x240] sm:$0xf]  ;;  %v5654_v47 = vld [vmem:[#allocation16 + $0x24c] sm:$0xf0] }
 0x1cc   :  { %3363 = vmatpush.bf16.msrb.mxu2 %v4991_v2  ;;  %v5071_v2 = vor.u32 %v5654_v47, %v5070_v14  ;;  %v5230_v10 = vld [vmem:[#allocation16 + $0x380] sm:$0xf]  ;;  %v5694_v11 = vld [vmem:[#allocation16 + $0x38c] sm:$0xf0]  ;;  %v4912_v14 = vld [vmem:[#allocation16 + $0x110] sm:$0xf0] }
 0x1cd   :  { %2535 = vmatpush.bf16.msra.mxu3 %v4539_v15  ;;  %v4974_v15 = vld [vmem:[#allocation16 + $0x180] sm:$0xf]  ;;  %v5660_v47 = vld [vmem:[#allocation16 + $0x284] sm:$0xf] }
 0x1ce   :  { %2495 = vmatpush.bf16.msrb.mxu0 %v4679_v16  ;;  %v5630_v16 = vld [vmem:[#allocation16 + $0x18c] sm:$0xf0] }
 0x1d0   :  { %2536 = vmatmul.bf16.vlgmr.msra.gmra.mxu3 %v6216_v62  ;;  %v5610_v62 = vld [vmem:[#allocation16 + $0xec] sm:$0xf0] }
 0x1d1   :  { %v4895_v23 = vor.u32 %v5610_v62, %v4894_v35  ;;  %v5670_v35 = vld [vmem:[#allocation16 + $0x2cc] sm:$0xf0]  ;;  %v5600_v62 = vld [vmem:[#allocation16 + $0xa4] sm:$0xf]  ;;  %3374 = vmatpush.bf16.msrb.mxu3 %v5151_v29 }
 0x1d2   :  { %2496 = vmatpush.bf16.msrb.mxu0 %v4663_v22  ;;  %v4958_v22 = vld [vmem:[#allocation16 + $0x160] sm:$0xf]  ;;  %v5628_v29 = vld [vmem:[#allocation16 + $0x184] sm:$0xf] }
 0x1d3   :  { %3348 = vmatpush.bf16.msra.mxu1 %v4895_v23  ;;  %v5135_v23 = vor.u32 %v5670_v35, %v5134_v9  ;;  %v5038_v9 = vld [vmem:[#allocation16 + $0x200] sm:$0xf]  ;;  %v5646_v35 = vld [vmem:[#allocation16 + $0x20c] sm:$0xf0] }
 0x1d5   :  { %2497 = vmatmul.bf16.vlgmr.msrb.gmra.mxu0 %v6227_v39  ;;  %3375 = vmatpush.bf16.msrb.mxu3 %v5135_v23  ;;  %v5706_v23 = vld [vmem:[#allocation16 + $0x3ec] sm:$0xf0] }
 0x1d6   :  { %2541 = vmatpush.bf16.msra.mxu0 %v4779_v5  ;;  %v5626_v5 = vld [vmem:[#allocation16 + $0x16c] sm:$0xf0] }
 0x1d7   :  { %3349 = vmatpush.bf16.msra.mxu1 %v4879_v41  ;;  %v4926_v41 = vld [vmem:[#allocation16 + $0x120] sm:$0xf] }
 0x1da   :  { %2542 = vmatpush.bf16.msra.mxu0 %v4763_v26  ;;  %v4959_v26 = vor.u32 %v5626_v5, %v4958_v22 }
 0x1db   :  { %3350 = vmatpush.bf16.msra.mxu1 %v4863_v49  ;;  %v4851_v49 = vor.u32 %v5596_v46, %v4848_v40  ;;  %v5262_v40 = vld [vmem:[#allocation16 + $0x3c0] sm:$0xf] }
 0x1de   :  { %2543 = vmatpush.bf16.msra.mxu0 %v4747_v28  ;;  %v4880_v28 = vld [vmem:[#allocation16 + $0xd0] sm:$0xf0] }
 0x1df   :  { %3351 = vmatpush.bf16.msra.mxu1 %v4847_v53  ;;  %v4883_v30 = vor.u32 %v5604_v27, %v4880_v28  ;;  %v4911_v53 = vor.u32 %v5614_v51, %v4910_v52  ;;  %v5580_v27 = vld [vmem:[#allocation16 + $0x4] sm:$0xf]  ;;  %v4784_v28 = vld [vmem:[#allocation16 + $0x10] sm:$0xf0] }
 0x1e0   :  { %v5620_v52 = vld [vmem:[#allocation16 + $0x144] sm:$0xf]  ;;  %v4944_v51 = vld [vmem:[#allocation16 + $0x150] sm:$0xf0] }
 0x1e2   :  { %2544 = vmatpush.bf16.msra.mxu0 %v4731_v31  ;;  %v4942_v31 = vld [vmem:[#allocation16 + $0x140] sm:$0xf] }
 0x1e3   :  { %3352 = vmatpush.bf16.msra.mxu1 %v4831_v60  ;;  %v4943_v37 = vor.u32 %v5622_v33, %v4942_v31  ;;  %v4976_v31 = vld [vmem:[#allocation16 + $0x190] sm:$0xf0] }
 0x1e4   :  { %v4979_v33 = vor.u32 %v5628_v29, %v4976_v31  ;;  %v5686_v31 = vld [vmem:[#allocation16 + $0x34c] sm:$0xf0] }
 0x1e6   :  { %2545 = vmatpush.bf16.msra.mxu0 %v4715_v36  ;;  %v4864_v36 = vld [vmem:[#allocation16 + $0xb0] sm:$0xf0] }
 0x1e7   :  { %3353 = vmatpush.bf16.msra.mxu1 %v4815_v3  ;;  %v4867_v34 = vor.u32 %v5600_v62, %v4864_v36  ;;  %v5588_v3 = vld [vmem:[#allocation16 + $0x44] sm:$0xf]  ;;  %v5278_v62 = vld [vmem:[#allocation16 + $0x3e0] sm:$0xf]  ;;  %v5039_v36 = vor.u32 %v5646_v35, %v5038_v9 }
 0x1e8   :  { %v5652_v35 = vld [vmem:[#allocation16 + $0x244] sm:$0xf] }
 0x1ea   :  { %2546 = vmatpush.bf16.msra.mxu0 %v4699_v42  ;;  %v5618_v42 = vld [vmem:[#allocation16 + $0x12c] sm:$0xf0] }
 0x1eb   :  { %v6234_v55 = vpop.f32.mrf.mxu1  ;;  %3354 = vmatpush.bf16.msra.mxu1 %v4799_v12  ;;  %v4927_v44 = vor.u32 %v5618_v42, %v4926_v41  ;;  %v4819_v12 = vor.u32 %v5588_v3, %v4816_v8  ;;  %v5279_v41 = vor.u32 %v5706_v23, %v5278_v62  ;;  %v6254_v8 = vld [vmem:[%s6327_s11] sm:$0xf] }
 0x1ec   :  { %v5072_v62 = vld [vmem:[#allocation16 + $0x250] sm:$0xf0] }
 0x1ee   :  { %2547 = vmatpush.bf16.msra.mxu0 %v4683_v48  ;;  %v5119_v48 = vor.u32 %v5666_v45, %v5118_v43  ;;  %v5672_v43 = vld [vmem:[#allocation16 + $0x2e4] sm:$0xf] }
 0x1ef   :  { %3355 = vmatpush.bf16.msra.mxu1 %v4783_v18 }
 0x1f0   :  { %3376 = vmatpush.bf16.msrb.mxu3 %v5119_v48  ;;  %v5702_v48 = vld [vmem:[#allocation16 + $0x3cc] sm:$0xf0] }
 0x1f2   :  { %2548 = vmatpush.bf16.msra.mxu0 %v4667_v54  ;;  %v5662_v54 = vld [vmem:[#allocation16 + $0x28c] sm:$0xf0] }
 0x1f3   :  { %v2357_v7 = vpop.f32.mrf.mxu1  ;;  %3400 = vmatpush.bf16.msrb.mxu1 %v4899_v21  ;;  %v5103_v60 = vor.u32 %v5662_v54, %v5102_v32  ;;  %v5668_v32 = vld [vmem:[#allocation16 + $0x2c4] sm:$0xf]  ;;  %v5136_v54 = vld [vmem:[#allocation16 + $0x2d0] sm:$0xf0] }
 0x1f4   :  { %v5087_v7 = vor.u32 %v5658_v57, %v5086_v1  ;;  %v5139_v56 = vor.u32 %v5668_v32, %v5136_v54  ;;  %v5120_v57 = vld [vmem:[#allocation16 + $0x2b0] sm:$0xf0]  ;;  %v5678_v32 = vld [vmem:[#allocation16 + $0x30c] sm:$0xf0] }
 0x1f5   :  { %2549 = vmatmul.bf16.vlgmr.msra.gmra.mxu0 %v6227_v39  ;;  %v4975_v39 = vor.u32 %v5630_v16, %v4974_v15  ;;  %3377 = vmatpush.bf16.msrb.mxu3 %v5103_v60  ;;  %v5584_v15 = vld [vmem:[#allocation16 + $0x24] sm:$0xf]  ;;  %v4800_v16 = vld [vmem:[#allocation16 + $0x30] sm:$0xf0] }
 0x1f6   :  { %v4803_v20 = vor.u32 %v5584_v15, %v4800_v16  ;;  %3387 = vmatpush.bf16.msrb.mxu0 %v5279_v41  ;;  %v5104_v15 = vld [vmem:[#allocation16 + $0x290] sm:$0xf0]  ;;  %v1698_v16 = vperm.slane %v6254_v8, 0 }
 0x1f7   :  { %3364 = vmatpush.bf16.msrb.mxu2 %v4975_v39  ;;  %3401 = vmatpush.bf16.msrb.mxu1 %v4883_v30  ;;  %v4992_v39 = vld [vmem:[#allocation16 + $0x1b0] sm:$0xf0]  ;;  %v4787_v30 = vor.u32 %v5580_v27, %v4784_v28 }
 0x1f8   :  { %v4995_v22 = vor.u32 %v5632_v17, %v4992_v39  ;;  %v5107_v17 = vor.u32 %v5660_v47, %v5104_v15  ;;  %v5690_v39 = vld [vmem:[#allocation16 + $0x36c] sm:$0xf0]  ;;  %v2356_v28 = vadd.f32 %v6234_v55, %v1698_v16  ;;  %v5040_v54 = vld [vmem:[#allocation16 + $0x210] sm:$0xf0] }
 0x1f9   :  { %3378 = vmatpush.bf16.msrb.mxu3 %v5087_v7  ;;  %v5123_v7 = vor.u32 %v5664_v50, %v5120_v57  ;;  %v1699_v50 = vperm.slane %v6254_v8, 1 }
 0x1fb   :  { %v6237_v25 = vpop.f32.mrf.mxu1  ;;  %3365 = vmatpush.bf16.msrb.mxu2 %v4959_v26  ;;  %3402 = vmatpush.bf16.msrb.mxu1 %v4867_v34  ;;  %v5650_v26 = vld [vmem:[#allocation16 + $0x22c] sm:$0xf0]  ;;  %v4960_v34 = vld [vmem:[#allocation16 + $0x170] sm:$0xf0] }
 0x1fc   :  { %v5055_v6 = vor.u32 %v5650_v26, %v5054_v24  ;;  %v5656_v24 = vld [vmem:[#allocation16 + $0x264] sm:$0xf]  ;;  %v5088_v26 = vld [vmem:[#allocation16 + $0x270] sm:$0xf0] }
 0x1fd   :  { %3379 = vmatpush.bf16.msrb.mxu3 %v5071_v2  ;;  %v5091_v27 = vor.u32 %v5656_v24, %v5088_v26 }
 0x1ff   :  { %3366 = vmatpush.bf16.msrb.mxu2 %v4943_v37  ;;  %3403 = vmatpush.bf16.msrb.mxu1 %v4851_v49  ;;  %v5624_v37 = vld [vmem:[#allocation16 + $0x164] sm:$0xf]  ;;  %v5263_v49 = vor.u32 %v5702_v48, %v5262_v40 }
 0x200   :  { %v4963_v42 = vor.u32 %v5624_v37, %v4960_v34  ;;  %v5182_v34 = vld [vmem:[#allocation16 + $0x320] sm:$0xf] }
 0x201   :  { %v6239_v38 = vpop.f32.mrf.mxu2  ;;  %3380 = vmatpush.bf16.msrb.mxu3 %v5055_v6  ;;  %3388 = vmatpush.bf16.msrb.mxu0 %v5263_v49  ;;  %v4886_v49 = vld [vmem:[#allocation16 + $0xc8] sm:$0xf] }
 0x203   :  { %v2409_v19 = vpop.f32.mrf.mxu1  ;;  %3367 = vmatpush.bf16.msrb.mxu2 %v4927_v44  ;;  %3404 = vmatpush.bf16.msrb.mxu1 %v4835_v61  ;;  %v5152_v44 = vld [vmem:[#allocation16 + $0x2f0] sm:$0xf0]  ;;  %v5616_v61 = vld [vmem:[#allocation16 + $0x124] sm:$0xf] }
 0x204   :  { %v5155_v46 = vor.u32 %v5672_v43, %v5152_v44  ;;  %v4931_v1 = vor.u32 %v5616_v61, %v4928_v63  ;;  %v5648_v43 = vld [vmem:[#allocation16 + $0x224] sm:$0xf]  ;;  %v5056_v44 = vld [vmem:[#allocation16 + $0x230] sm:$0xf0] }
 0x205   :  { %3381 = vmatpush.bf16.msrb.mxu3 %v5039_v36  ;;  %v5075_v36 = vor.u32 %v5652_v35, %v5072_v62  ;;  %v5704_v61 = vld [vmem:[#allocation16 + $0x3e4] sm:$0xf]  ;;  %v5280_v63 = vld [vmem:[#allocation16 + $0x3f0] sm:$0xf0] }
 0x207   :  { %3368 = vmatpush.bf16.msrb.mxu2 %v4911_v53  ;;  %3405 = vmatpush.bf16.msrb.mxu1 %v4819_v12  ;;  %v4947_v53 = vor.u32 %v5620_v52, %v4944_v51  ;;  %v5231_v12 = vor.u32 %v5694_v11, %v5230_v10  ;;  %v4870_v10 = vld [vmem:[#allocation16 + $0xa8] sm:$0xf]  ;;  %v5603_v11 = vld [vmem:[#allocation16 + $0xb4] sm:$0xf0] }
 0x208   :  { %v4871_v16 = vor.u32 %v5603_v11, %v4870_v10  ;;  %v5680_v10 = vld [vmem:[#allocation16 + $0x324] sm:$0xf]  ;;  %v5184_v11 = vld [vmem:[#allocation16 + $0x330] sm:$0xf0] }
 0x209   :  { %v2370_v59 = vpop.f32.mrf.mxu2  ;;  %3426 = vmatpush.bf16.msra.mxu3 %v5155_v46  ;;  %v5611_v46 = vld [vmem:[#allocation16 + $0xf4] sm:$0xf0] }
 0x20a   :  { %v5698_v59 = vld [vmem:[#allocation16 + $0x3ac] sm:$0xf0] }
 0x20b   :  { %v6241_v4 = vpop.f32.mrf.mxu1  ;;  %3413 = vmatpush.bf16.msra.mxu2 %v5027_v0  ;;  %3406 = vmatpush.bf16.msrb.mxu1 %v4803_v20  ;;  %v5247_v60 = vor.u32 %v5698_v59, %v5246_v58  ;;  %v5214_v20 = vld [vmem:[#allocation16 + $0x360] sm:$0xf]  ;;  %v5607_v58 = vld [vmem:[#allocation16 + $0xd4] sm:$0xf0] }
 0x20d   :  { %3427 = vmatpush.bf16.msra.mxu3 %v5139_v56  ;;  %3389 = vmatpush.bf16.msrb.mxu0 %v5247_v60 }
 0x20f   :  { %3414 = vmatpush.bf16.msra.mxu2 %v5011_v13  ;;  %3407 = vmatpush.bf16.msrb.mxu1 %v4787_v30  ;;  %v5612_v13 = vld [vmem:[#allocation16 + $0x104] sm:$0xf]  ;;  %v5198_v30 = vld [vmem:[#allocation16 + $0x340] sm:$0xf] }
 0x210   :  { %v4915_v2 = vor.u32 %v5612_v13, %v4912_v14  ;;  %v5199_v9 = vor.u32 %v5686_v31, %v5198_v30  ;;  %v5264_v13 = vld [vmem:[#allocation16 + $0x3d0] sm:$0xf0]  ;;  %v2408_v14 = vadd.f32 %v6237_v25, %v1699_v50  ;;  %v5595_v30 = vld [vmem:[#allocation16 + $0x74] sm:$0xf0]  ;;  %v5030_v31 = vld [vmem:[#allocation16 + $0x1e8] sm:$0xf] }
 0x211   :  { %v6243_v18 = vpop.f32.mrf.mxu2  ;;  %3428 = vmatpush.bf16.msra.mxu3 %v5123_v7  ;;  %3390 = vmatpush.bf16.msrb.mxu0 %v5231_v12  ;;  %v4887_v7 = vor.u32 %v5607_v58, %v4886_v49  ;;  %v5700_v12 = vld [vmem:[#allocation16 + $0x3c4] sm:$0xf]  ;;  %v4790_v50 = vld [vmem:[#allocation16 + $0x8] sm:$0xf] }
 0x212   :  { %v6245_v21 = vpop.f32.mrf.mxu3  ;;  %v2421_v15 = vadd.f32 %v6243_v18, %v2408_v14  ;;  %v5643_v18 = vld [vmem:[#allocation16 + $0x1f4] sm:$0xf0]  ;;  %v4904_v14 = vld [vmem:[#allocation16 + $0xf8] sm:$0xf0] }
 0x213   :  { %v2461_v5 = vpop.f32.mrf.mxu1  ;;  %3415 = vmatpush.bf16.msra.mxu2 %v4995_v22 }
 0x214   :  { %v5215_v5 = vor.u32 %v5690_v39, %v5214_v20  ;;  %v5599_v20 = vld [vmem:[#allocation16 + $0x94] sm:$0xf0]  ;;  %v5696_v39 = vld [vmem:[#allocation16 + $0x3a4] sm:$0xf] }
 0x215   :  { %3429 = vmatpush.bf16.msra.mxu3 %v5107_v17  ;;  %v4854_v17 = vld [vmem:[#allocation16 + $0x88] sm:$0xf] }
 0x216   :  { %3391 = vmatpush.bf16.msrb.mxu0 %v5215_v5  ;;  %v5248_v5 = vld [vmem:[#allocation16 + $0x3b0] sm:$0xf0]  ;;  %v4855_v25 = vor.u32 %v5599_v20, %v4854_v17  ;;  %v5627_v20 = vld [vmem:[#allocation16 + $0x174] sm:$0xf0] }
 0x217   :  { %3416 = vmatpush.bf16.msra.mxu2 %v4979_v33  ;;  %v2369_v33 = vadd.f32 %v6239_v38, %v2356_v28  ;;  %v5059_v38 = vor.u32 %v5648_v43, %v5056_v44  ;;  %v5251_v26 = vor.u32 %v5696_v39, %v5248_v5  ;;  %v5216_v43 = vld [vmem:[#allocation16 + $0x370] sm:$0xf0]  ;;  %v1700_v44 = vperm.slane %v6254_v8, 2  ;;  %v5158_v39 = vld [vmem:[#allocation16 + $0x2e8] sm:$0xf] }
 0x218   :  { %v5675_v5 = vld [vmem:[#allocation16 + $0x2f4] sm:$0xf0] }
 0x219   :  { %v2422_v19 = vpop.f32.mrf.mxu2  ;;  %3430 = vmatpush.bf16.msra.mxu3 %v5091_v27  ;;  %v2382_v23 = vadd.f32 %v6245_v21, %v2369_v33  ;;  %v5166_v21 = vld [vmem:[#allocation16 + $0x300] sm:$0xf]  ;;  %v5692_v33 = vld [vmem:[#allocation16 + $0x384] sm:$0xf]  ;;  %v2460_v58 = vadd.f32 %v6241_v4, %v1700_v44  ;;  %v4934_v44 = vld [vmem:[#allocation16 + $0x128] sm:$0xf] }
 0x21a   :  { %v2383_v45 = vpop.f32.mrf.mxu3  ;;  %3392 = vmatpush.bf16.msrb.mxu0 %v5199_v9  ;;  %v5682_v19 = vld [vmem:[#allocation16 + $0x32c] sm:$0xf0]  ;;  %v5167_v59 = vor.u32 %v5678_v32, %v5166_v21  ;;  %v5232_v9 = vld [vmem:[#allocation16 + $0x390] sm:$0xf0]  ;;  %v4806_v21 = vld [vmem:[#allocation16 + $0x28] sm:$0xf] }
 0x21b   :  { %3417 = vmatpush.bf16.msra.mxu2 %v4963_v42  ;;  %v5183_v55 = vor.u32 %v5682_v19, %v5182_v34  ;;  %v4902_v45 = vld [vmem:[#allocation16 + $0xe8] sm:$0xf]  ;;  %v5235_v62 = vor.u32 %v5692_v33, %v5232_v9  ;;  %v5591_v34 = vld [vmem:[#allocation16 + $0x54] sm:$0xf0]  ;;  %v5159_v33 = vor.u32 %v5675_v5, %v5158_v39  ;;  %v5585_v39 = vld [vmem:[#allocation16 + $0x2c] sm:$0xf] }
 0x21c   :  { %v4903_v51 = vor.u32 %v5611_v46, %v4902_v45  ;;  %v5014_v19 = vld [vmem:[#allocation16 + $0x1c8] sm:$0xf]  ;;  %v5635_v32 = vld [vmem:[#allocation16 + $0x1b4] sm:$0xf0]  ;;  %v4808_v5 = vld [vmem:[#allocation16 + $0x38] sm:$0xf0] }
 0x21d   :  { %3431 = vmatpush.bf16.msra.mxu3 %v5075_v36 }
 0x21e   :  { %3393 = vmatpush.bf16.msrb.mxu0 %v5183_v55  ;;  %v5688_v55 = vld [vmem:[#allocation16 + $0x364] sm:$0xf] }
 0x21f   :  { %3418 = vmatpush.bf16.msra.mxu2 %v4947_v53  ;;  %v5644_v53 = vld [vmem:[#allocation16 + $0x204] sm:$0xf]  ;;  %v5219_v45 = vor.u32 %v5688_v55, %v5216_v43 }
 0x220   :  { %v5043_v60 = vor.u32 %v5644_v53, %v5040_v54  ;;  %v5684_v53 = vld [vmem:[#allocation16 + $0x344] sm:$0xf]  ;;  %v5200_v54 = vld [vmem:[#allocation16 + $0x350] sm:$0xf0] }
 0x221   :  { %3432 = vmatpush.bf16.msra.mxu3 %v5059_v38 }
 0x222   :  { %v6247_v0 = vpop.f32.mrf.mxu2  ;;  %3394 = vmatpush.bf16.msrb.mxu0 %v5167_v59  ;;  %v5203_v59 = vor.u32 %v5684_v53, %v5200_v54  ;;  %v5615_v53 = vld [vmem:[#allocation16 + $0x114] sm:$0xf0]  ;;  %v5110_v54 = vld [vmem:[#allocation16 + $0x288] sm:$0xf] }
 0x223   :  { %v6249_v3 = vpop.f32.mrf.mxu3  ;;  %3419 = vmatpush.bf16.msra.mxu2 %v4931_v1  ;;  %v5283_v1 = vor.u32 %v5704_v61, %v5280_v63 }
 0x224   :  { %v2434_v24 = vadd.f32 %v6249_v3, %v2421_v15 }
 0x225   :  { %3433 = vmatpush.bf16.msra.mxu3 %v5043_v60  ;;  %v2473_v60 = vadd.f32 %v6247_v0, %v2460_v58  ;;  %v4966_v0 = vld [vmem:[#allocation16 + $0x168] sm:$0xf]  ;;  %v5663_v58 = vld [vmem:[#allocation16 + $0x294] sm:$0xf0] }
 0x226   :  { %3439 = vmatpush.bf16.msra.mxu0 %v5283_v1  ;;  %v5583_v1 = vld [vmem:[#allocation16 + $0x14] sm:$0xf0] }
 0x227   :  { %3420 = vmatpush.bf16.msra.mxu2 %v4915_v2  ;;  %v5267_v2 = vor.u32 %v5700_v12, %v5264_v13  ;;  %v5609_v13 = vld [vmem:[#allocation16 + $0xec] sm:$0xf] }
 0x22a   :  { %v2474_v6 = vpop.f32.mrf.mxu2  ;;  %3440 = vmatpush.bf16.msra.mxu0 %v5267_v2 }
 0x22b   :  { %v6257_v22 = vpop.f32.mrf.mxu1  ;;  %v2435_v29 = vpop.f32.mrf.mxu3 }
 0x22c   :  { %v4838_v29 = vld [vmem:[#allocation16 + $0x68] sm:$0xf] }
 0x22d   :  { %v4839_v3 = vor.u32 %v5595_v30, %v4838_v29 }
 0x22e   :  { %3441 = vmatpush.bf16.msra.mxu0 %v5251_v26  ;;  %v5605_v26 = vld [vmem:[#allocation16 + $0xcc] sm:$0xf] }
 0x232   :  { %v2394_v37 = vpop.f32.mrf.mxu0  ;;  %3442 = vmatpush.bf16.msra.mxu0 %v5235_v62  ;;  %v5623_v62 = vld [vmem:[#allocation16 + $0x154] sm:$0xf0] }
 0x233   :  { %v2395_v41 = vadd.f32 %v2394_v37, %v2382_v23  ;;  %v2513_v42 = vpop.f32.mrf.mxu1  ;;  %v6262_v48 = vpop.f32.mrf.mxu3  ;;  %v5031_v23 = vor.u32 %v5643_v18, %v5030_v31  ;;  %v4822_v37 = vld [vmem:[#allocation16 + $0x48] sm:$0xf]  ;;  %v4967_v31 = vor.u32 %v5627_v20, %v4966_v0  ;;  %v5655_v20 = vld [vmem:[#allocation16 + $0x254] sm:$0xf0] }
 0x234   :  { %v5639_v42 = vld [vmem:[#allocation16 + $0x1d4] sm:$0xf0]  ;;  %v2486_v12 = vadd.f32 %v6262_v48, %v2473_v60  ;;  %v5168_v48 = vld [vmem:[#allocation16 + $0x310] sm:$0xf0]  ;;  %v4840_v60 = vld [vmem:[#allocation16 + $0x78] sm:$0xf0] }
 0x235   :  { %vm2554_vm0 = vcmp.ge.f32.partialorder %v2395_v41, 0.0  ;;  %v2558_v40 = vmul.f32 0.1, %v2395_v41  ;;  %v5015_v49 = vor.u32 %v5639_v42, %v5014_v19 }
 0x236   :  { %3443 = vmatpush.bf16.msra.mxu0 %v5219_v45  ;;  %v5619_v45 = vld [vmem:[#allocation16 + $0x134] sm:$0xf0] }
 0x237   :  { %v2562_v52 = vsel %vm2554_vm0, %v2395_v41, %v2558_v40  ;;  %v4823_v40 = vor.u32 %v5591_v34, %v4822_v37  ;;  %v4872_v37 = vld [vmem:[#allocation16 + $0xb8] sm:$0xf0] }
 0x238   :  { %v6264_v56 = vpack.c.bf16 %v2562_v52, %v2562_v52  ;;  %v5587_v52 = vld [vmem:[#allocation16 + $0x34] sm:$0xf0] }
 0x239   :  { %v4807_v61 = vor.u32 %v5587_v52, %v4806_v21  ;;  %v4935_v21 = vor.u32 %v5619_v45, %v4934_v44  ;;  %v5673_v44 = vld [vmem:[#allocation16 + $0x2ec] sm:$0xf] }
 0x23a   :  { %v2396_v57 = vpop.f32.mrf.mxu0  ;;  %3356 = vmatmul.bf16.vlgmr.msra.gmra.mxu1 %v6264_v56  ;;  %3444 = vmatpush.bf16.msra.mxu0 %v5203_v59  ;;  %v5593_v59 = vld [vmem:[#allocation16 + $0x6c] sm:$0xf] }
 0x23b   :  { %3452 = vmatpush.bf16.msra.mxu1 %v4903_v51  ;;  %v2487_v47 = vpop.f32.mrf.mxu3  ;;  %v4998_v51 = vld [vmem:[#allocation16 + $0x1a8] sm:$0xf] }
 0x23c   :  { %v4999_v63 = vor.u32 %v5635_v32, %v4998_v51  ;;  %v4982_v57 = vld [vmem:[#allocation16 + $0x188] sm:$0xf]  ;;  %v5187_v47 = vor.u32 %v5680_v10, %v5184_v11  ;;  %v5659_v11 = vld [vmem:[#allocation16 + $0x274] sm:$0xf0] }
 0x23d   :  { %v4918_v32 = vld [vmem:[#allocation16 + $0x108] sm:$0xf] }
 0x23e   :  { %3445 = vmatpush.bf16.msra.mxu0 %v5187_v47  ;;  %v5637_v47 = vld [vmem:[#allocation16 + $0x1cc] sm:$0xf] }
 0x23f   :  { %3453 = vmatpush.bf16.msra.mxu1 %v4887_v7  ;;  %v5631_v7 = vld [vmem:[#allocation16 + $0x194] sm:$0xf0] }
 0x240   :  { %v4983_v17 = vor.u32 %v5631_v7, %v4982_v57  ;;  %v4843_v57 = vor.u32 %v5593_v59, %v4840_v60  ;;  %v5094_v7 = vld [vmem:[#allocation16 + $0x268] sm:$0xf]  ;;  %v5144_v59 = vld [vmem:[#allocation16 + $0x2d8] sm:$0xf0] }
 0x241   :  { %v5095_v0 = vor.u32 %v5659_v11, %v5094_v7  ;;  %v5617_v7 = vld [vmem:[#allocation16 + $0x12c] sm:$0xf] }
 0x242   :  { %v2446_v6 = vpop.f32.mrf.mxu0  ;;  %v6271_v27 = vpop.f32.mrf.mxu2  ;;  %v5665_v11 = vld [vmem:[#allocation16 + $0x2ac] sm:$0xf] }
 0x243   :  { %v2447_v28 = vadd.f32 %v2446_v6, %v2434_v24  ;;  %3454 = vmatpush.bf16.msra.mxu1 %v4871_v16  ;;  %v4791_v16 = vor.u32 %v5583_v1, %v4790_v50  ;;  %v4907_v24 = vor.u32 %v5609_v13, %v4904_v14  ;;  %v5676_v6 = vld [vmem:[#allocation16 + $0x304] sm:$0xf]  ;;  %v4919_v50 = vor.u32 %v5615_v53, %v4918_v32  ;;  %v4824_v13 = vld [vmem:[#allocation16 + $0x58] sm:$0xf0]  ;;  %v5703_v32 = vld [vmem:[#allocation16 + $0x3d4] sm:$0xf0] }
 0x244   :  { %v5171_v29 = vor.u32 %v5676_v6, %v5168_v48  ;;  %v5111_v1 = vor.u32 %v5663_v58, %v5110_v54  ;;  %v1701_v14 = vperm.slane %v6254_v8, 3  ;;  %v5633_v8 = vld [vmem:[#allocation16 + $0x1ac] sm:$0xf]  ;;  %v4952_v54 = vld [vmem:[#allocation16 + $0x158] sm:$0xf0] }
 0x245   :  { %vm2555_vm1 = vcmp.ge.f32.partialorder %v2447_v28, 0.0  ;;  %v2559_v35 = vmul.f32 0.1, %v2447_v28  ;;  %v5621_v53 = vld [vmem:[#allocation16 + $0x14c] sm:$0xf] }
 0x246   :  { %3446 = vmatpush.bf16.msra.mxu0 %v5171_v29  ;;  %v5669_v58 = vld [vmem:[#allocation16 + $0x2cc] sm:$0xf] }
 0x247   :  { %v2563_v36 = vsel %vm2555_vm1, %v2447_v28, %v2559_v35  ;;  %3455 = vmatpush.bf16.msra.mxu1 %v4855_v25  ;;  %v4888_v25 = vld [vmem:[#allocation16 + $0xd8] sm:$0xf0]  ;;  %v4950_v35 = vld [vmem:[#allocation16 + $0x148] sm:$0xf] }
 0x248   :  { %v6273_v41 = vpack.c.bf16 %v2563_v36, %v2563_v36  ;;  %v4891_v9 = vor.u32 %v5605_v26, %v4888_v25  ;;  %v5142_v36 = vld [vmem:[#allocation16 + $0x2c8] sm:$0xf]  ;;  %v4951_v42 = vor.u32 %v5623_v62, %v4950_v35  ;;  %v5000_v26 = vld [vmem:[#allocation16 + $0x1b8] sm:$0xf0] }
 0x249   :  { %v5062_v25 = vld [vmem:[#allocation16 + $0x228] sm:$0xf]  ;;  %v5003_v29 = vor.u32 %v5633_v8, %v5000_v26  ;;  %v4984_v35 = vld [vmem:[#allocation16 + $0x198] sm:$0xf0]  ;;  %v5691_v8 = vld [vmem:[#allocation16 + $0x374] sm:$0xf0] }
 0x24a   :  { %v2448_v46 = vpop.f32.mrf.mxu0  ;;  %v2526_v38 = vpop.f32.mrf.mxu2  ;;  %3369 = vmatmul.bf16.vlgmr.msrb.gmra.mxu2 %v6273_v41  ;;  %3408 = vmatmul.bf16.vlgmr.msrb.gmra.mxu1 %v6264_v56  ;;  %v5657_v26 = vld [vmem:[#allocation16 + $0x26c] sm:$0xf] }
 0x24b   :  { %3456 = vmatpush.bf16.msra.mxu1 %v4839_v3  ;;  %3465 = vmatpush.bf16.msrb.mxu2 %v5031_v23  ;;  %v5671_v3 = vld [vmem:[#allocation16 + $0x2d4] sm:$0xf0]  ;;  %v5601_v23 = vld [vmem:[#allocation16 + $0xac] sm:$0xf]  ;;  %v5126_v46 = vld [vmem:[#allocation16 + $0x2a8] sm:$0xf] }
 0x24c   :  { %v5143_v55 = vor.u32 %v5671_v3, %v5142_v36  ;;  %v4875_v43 = vor.u32 %v5601_v23, %v4872_v37  ;;  %v5667_v38 = vld [vmem:[#allocation16 + $0x2b4] sm:$0xf0]  ;;  %v5046_v36 = vld [vmem:[#allocation16 + $0x208] sm:$0xf] }
 0x24d   :  { %v5127_v52 = vor.u32 %v5667_v38, %v5126_v46  ;;  %v5647_v37 = vld [vmem:[#allocation16 + $0x214] sm:$0xf0] }
 0x24e   :  { %v5047_v38 = vor.u32 %v5647_v37, %v5046_v36  ;;  %v5064_v36 = vld [vmem:[#allocation16 + $0x238] sm:$0xf0]  ;;  %v5679_v37 = vld [vmem:[#allocation16 + $0x314] sm:$0xf0] }
 0x24f   :  { %3457 = vmatpush.bf16.msra.mxu1 %v4823_v40  ;;  %3466 = vmatpush.bf16.msrb.mxu2 %v5015_v49  ;;  %v5597_v40 = vld [vmem:[#allocation16 + $0x8c] sm:$0xf]  ;;  %v4856_v49 = vld [vmem:[#allocation16 + $0x98] sm:$0xf0] }
 0x250   :  { %v4859_v51 = vor.u32 %v5597_v40, %v4856_v49 }
 0x252   :  { %v2498_v4 = vpop.f32.mrf.mxu0 }
 0x253   :  { %v6281_v2 = vpop.f32.mrf.mxu3  ;;  %v2499_v15 = vadd.f32 %v2498_v4, %v2486_v12  ;;  %3458 = vmatpush.bf16.msra.mxu1 %v4807_v61  ;;  %3467 = vmatpush.bf16.msrb.mxu2 %v4999_v63  ;;  %v5641_v61 = vld [vmem:[#allocation16 + $0x1ec] sm:$0xf]  ;;  %v5032_v63 = vld [vmem:[#allocation16 + $0x1f8] sm:$0xf0] }
 0x254   :  { %v5035_v10 = vor.u32 %v5641_v61, %v5032_v63  ;;  %v5589_v12 = vld [vmem:[#allocation16 + $0x4c] sm:$0xf]  ;;  %v5016_v4 = vld [vmem:[#allocation16 + $0x1d8] sm:$0xf0]  ;;  %v4955_v63 = vor.u32 %v5621_v53, %v4952_v54 }
 0x255   :  { %vm2556_vm2 = vcmp.ge.f32.partialorder %v2499_v15, 0.0  ;;  %v2560_v28 = vmul.f32 0.1, %v2499_v15  ;;  %v5689_v53 = vld [vmem:[#allocation16 + $0x36c] sm:$0xf] }
 0x256   :  { %v5224_v54 = vld [vmem:[#allocation16 + $0x378] sm:$0xf0] }
 0x257   :  { %v2564_v30 = vsel %vm2556_vm2, %v2499_v15, %v2560_v28  ;;  %3459 = vmatpush.bf16.msra.mxu1 %v4791_v16  ;;  %3468 = vmatpush.bf16.msrb.mxu2 %v4983_v17  ;;  %v4827_v15 = vor.u32 %v5589_v12, %v4824_v13  ;;  %v5078_v16 = vld [vmem:[#allocation16 + $0x248] sm:$0xf]  ;;  %v5019_v17 = vor.u32 %v5637_v47, %v5016_v4  ;;  %v5128_v12 = vld [vmem:[#allocation16 + $0x2b8] sm:$0xf0]  ;;  %v5695_v4 = vld [vmem:[#allocation16 + $0x394] sm:$0xf0] }
 0x258   :  { %v6283_v18 = vpack.c.bf16 %v2564_v30, %v2564_v30  ;;  %v5079_v48 = vor.u32 %v5655_v20, %v5078_v16  ;;  %v4811_v28 = vor.u32 %v5585_v39, %v4808_v5  ;;  %v5651_v30 = vld [vmem:[#allocation16 + $0x234] sm:$0xf0]  ;;  %v5238_v47 = vld [vmem:[#allocation16 + $0x388] sm:$0xf]  ;;  %v5661_v16 = vld [vmem:[#allocation16 + $0x28c] sm:$0xf] }
 0x259   :  { %v5239_v20 = vor.u32 %v5695_v4, %v5238_v47 }
 0x25a   :  { %v2500_v34 = vpop.f32.mrf.mxu0  ;;  %3382 = vmatmul.bf16.vlgmr.msrb.gmra.mxu3 %v6283_v18  ;;  %3421 = vmatmul.bf16.vlgmr.msra.gmra.mxu2 %v6273_v41 }
 0x25b   :  { %3504 = vmatpush.bf16.msrb.mxu1 %v4907_v24  ;;  %v2539_v19 = vpop.f32.mrf.mxu3  ;;  %3469 = vmatpush.bf16.msrb.mxu2 %v4967_v31  ;;  %v2512_v24 = vadd.f32 %v6257_v22, %v1701_v14  ;;  %v5581_v31 = vld [vmem:[#allocation16 + $0xc] sm:$0xf]  ;;  %v5286_v34 = vld [vmem:[#allocation16 + $0x3e8] sm:$0xf]  ;;  %v5131_v14 = vor.u32 %v5665_v11, %v5128_v12  ;;  %v6304_v12 = vld [vmem:[#allocation17] sm:$0xf] }
 0x25c   :  { %3460 = vmatmul.bf16.vlgmr.msra.gmra.mxu1 %v6264_v56  ;;  %3478 = vmatpush.bf16.msrb.mxu3 %v5159_v33  ;;  %v4792_v33 = vld [vmem:[#allocation16 + $0x18] sm:$0xf0]  ;;  %v5707_v19 = vld [vmem:[#allocation16 + $0x3f4] sm:$0xf0] }
 0x25d   :  { %v2525_v6 = vadd.f32 %v6271_v27, %v2512_v24  ;;  %v5063_v27 = vor.u32 %v5651_v30, %v5062_v25  ;;  %v4795_v23 = vor.u32 %v5581_v31, %v4792_v33  ;;  %v5287_v40 = vor.u32 %v5707_v19, %v5286_v34  ;;  %v5222_v24 = vld [vmem:[#allocation16 + $0x368] sm:$0xf]  ;;  %v5653_v30 = vld [vmem:[#allocation16 + $0x24c] sm:$0xf]  ;;  %v5080_v31 = vld [vmem:[#allocation16 + $0x258] sm:$0xf0] }
 0x25e   :  { %v5206_v25 = vld [vmem:[#allocation16 + $0x348] sm:$0xf]  ;;  %v5645_v34 = vld [vmem:[#allocation16 + $0x20c] sm:$0xf]  ;;  %v5048_v19 = vld [vmem:[#allocation16 + $0x218] sm:$0xf0] }
 0x25f   :  { %3505 = vmatpush.bf16.msrb.mxu1 %v4891_v9  ;;  %3470 = vmatpush.bf16.msrb.mxu2 %v4951_v42  ;;  %v2538_v22 = vadd.f32 %v6281_v2, %v2525_v6  ;;  %v5629_v9 = vld [vmem:[#allocation16 + $0x18c] sm:$0xf]  ;;  %v5160_v2 = vld [vmem:[#allocation16 + $0x2f8] sm:$0xf0] }
 0x260   :  { %3479 = vmatpush.bf16.msrb.mxu3 %v5143_v55  ;;  %v4987_v42 = vor.u32 %v5629_v9, %v4984_v35  ;;  %v5625_v55 = vld [vmem:[#allocation16 + $0x16c] sm:$0xf]  ;;  %v5096_v6 = vld [vmem:[#allocation16 + $0x278] sm:$0xf0]  ;;  %v5190_v9 = vld [vmem:[#allocation16 + $0x328] sm:$0xf] }
 0x261   :  { %v5683_v35 = vld [vmem:[#allocation16 + $0x334] sm:$0xf0] }
 0x263   :  { %3506 = vmatpush.bf16.msrb.mxu1 %v4875_v43  ;;  %3471 = vmatpush.bf16.msrb.mxu2 %v4935_v21  ;;  %v4968_v43 = vld [vmem:[#allocation16 + $0x178] sm:$0xf0] }
 0x264   :  { %3480 = vmatpush.bf16.msrb.mxu3 %v5127_v52  ;;  %v4971_v21 = vor.u32 %v5625_v55, %v4968_v43  ;;  %v5163_v52 = vor.u32 %v5673_v44, %v5160_v2  ;;  %v5288_v55 = vld [vmem:[#allocation16 + $0x3f8] sm:$0xf0] }
 0x265   :  { %v5272_v2 = vld [vmem:[#allocation16 + $0x3d8] sm:$0xf0] }
 0x267   :  { %3507 = vmatpush.bf16.msrb.mxu1 %v4859_v51  ;;  %3472 = vmatpush.bf16.msrb.mxu2 %v4919_v50  ;;  %v5270_v51 = vld [vmem:[#allocation16 + $0x3c8] sm:$0xf]  ;;  %v5147_v50 = vor.u32 %v5669_v58, %v5144_v59  ;;  %v5227_v58 = vor.u32 %v5689_v53, %v5224_v54  ;;  %v5685_v59 = vld [vmem:[#allocation16 + $0x34c] sm:$0xf] }
 0x268   :  { %3481 = vmatpush.bf16.msrb.mxu3 %v5111_v1  ;;  %v5271_v61 = vor.u32 %v5703_v32, %v5270_v51  ;;  %v5254_v1 = vld [vmem:[#allocation16 + $0x3a8] sm:$0xf]  ;;  %v5240_v51 = vld [vmem:[#allocation16 + $0x398] sm:$0xf0] }
 0x26a   :  { %3434 = vmatmul.bf16.vlgmr.msra.gmra.mxu3 %v6283_v18  ;;  %3473 = vmatmul.bf16.vlgmr.msrb.gmra.mxu2 %v6273_v41 }
 0x26b   :  { %3508 = vmatpush.bf16.msrb.mxu1 %v4843_v57  ;;  %3517 = vmatpush.bf16.msra.mxu2 %v5035_v10  ;;  %v5699_v57 = vld [vmem:[#allocation16 + $0x3b4] sm:$0xf0]  ;;  %v4936_v10 = vld [vmem:[#allocation16 + $0x138] sm:$0xf0] }
 0x26c   :  { %3482 = vmatpush.bf16.msrb.mxu3 %v5095_v0  ;;  %v5255_v13 = vor.u32 %v5699_v57, %v5254_v1  ;;  %v5613_v0 = vld [vmem:[#allocation16 + $0x10c] sm:$0xf] }
 0x26d   :  { %v5677_v57 = vld [vmem:[#allocation16 + $0x30c] sm:$0xf] }
 0x26f   :  { %3509 = vmatpush.bf16.msrb.mxu1 %v4827_v15  ;;  %3518 = vmatpush.bf16.msra.mxu2 %v5019_v17  ;;  %v4920_v15 = vld [vmem:[#allocation16 + $0x118] sm:$0xf0] }
 0x270   :  { %3483 = vmatpush.bf16.msrb.mxu3 %v5079_v48  ;;  %v5112_v17 = vld [vmem:[#allocation16 + $0x298] sm:$0xf0]  ;;  %v4923_v39 = vor.u32 %v5613_v0, %v4920_v15  ;;  %v5223_v48 = vor.u32 %v5691_v8, %v5222_v24 }
 0x271   :  { %v5115_v5 = vor.u32 %v5661_v16, %v5112_v17  ;;  %v2701_v16 = vperm.slane %v6304_v12, 1 }
 0x272   :  { %v2550_v62 = vpop.f32.mrf.mxu0 }
 0x273   :  { %v2551_v3 = vadd.f32 %v2550_v62, %v2538_v22  ;;  %3510 = vmatpush.bf16.msrb.mxu1 %v4811_v28  ;;  %3519 = vmatpush.bf16.msra.mxu2 %v5003_v29  ;;  %v5099_v28 = vor.u32 %v5657_v26, %v5096_v6  ;;  %v5687_v29 = vld [vmem:[#allocation16 + $0x354] sm:$0xf0]  ;;  %v5083_v22 = vor.u32 %v5653_v30, %v5080_v31  ;;  %v5649_v62 = vld [vmem:[#allocation16 + $0x22c] sm:$0xf] }
 0x274   :  { %3484 = vmatpush.bf16.msrb.mxu3 %v5063_v27  ;;  %v5207_v33 = vor.u32 %v5687_v29, %v5206_v25  ;;  %v5067_v27 = vor.u32 %v5649_v62, %v5064_v36 }
 0x275   :  { %vm2557_vm3 = vcmp.ge.f32.partialorder %v2551_v3, 0.0  ;;  %v2561_v45 = vmul.f32 0.1, %v2551_v3 }
 0x277   :  { %v2565_v46 = vsel %vm2557_vm3, %v2551_v3, %v2561_v45  ;;  %3511 = vmatpush.bf16.msrb.mxu1 %v4795_v23  ;;  %3520 = vmatpush.bf16.msra.mxu2 %v4987_v42  ;;  %v5191_v3 = vor.u32 %v5683_v35, %v5190_v9  ;;  %v5174_v23 = vld [vmem:[#allocation16 + $0x308] sm:$0xf]  ;;  %v5705_v42 = vld [vmem:[#allocation16 + $0x3ec] sm:$0xf] }
 0x278   :  { %v6294_v49 = vpack.c.bf16 %v2565_v46, %v2565_v46  ;;  %3485 = vmatpush.bf16.msrb.mxu3 %v5047_v38  ;;  %v5175_v43 = vor.u32 %v5679_v37, %v5174_v23  ;;  %v5291_v44 = vor.u32 %v5705_v42, %v5288_v55  ;;  %v5701_v45 = vld [vmem:[#allocation16 + $0x3cc] sm:$0xf] }
 0x279   :  { %v5275_v46 = vor.u32 %v5701_v45, %v5272_v2  ;;  %v5697_v38 = vld [vmem:[#allocation16 + $0x3ac] sm:$0xf]  ;;  %v2702_v45 = vperm.slane %v6304_v12, 2 }
 0x27a   :  { %v2552_v60 = vpop.f32.mrf.mxu0  ;;  %3395 = vmatmul.bf16.vlgmr.msrb.gmra.mxu0 %v6294_v49  ;;  %3512 = vmatmul.bf16.vlgmr.msrb.gmra.mxu1 %v6264_v56  ;;  %v4939_v56 = vor.u32 %v5617_v7, %v4936_v10 }
 0x27b   :  { %3491 = vmatpush.bf16.msrb.mxu0 %v5287_v40  ;;  %3521 = vmatpush.bf16.msra.mxu2 %v4971_v21  ;;  %v5256_v40 = vld [vmem:[#allocation16 + $0x3b8] sm:$0xf0] }
 0x27c   :  { %3530 = vmatpush.bf16.msra.mxu3 %v5163_v52  ;;  %v5259_v21 = vor.u32 %v5697_v38, %v5256_v40  ;;  %v5693_v52 = vld [vmem:[#allocation16 + $0x38c] sm:$0xf]  ;;  %v5208_v60 = vld [vmem:[#allocation16 + $0x358] sm:$0xf0] }
 0x27d   :  { %3486 = vmatmul.bf16.vlgmr.msrb.gmra.mxu3 %v6283_v18  ;;  %v5243_v32 = vor.u32 %v5693_v52, %v5240_v51 }
 0x27f   :  { %3492 = vmatpush.bf16.msrb.mxu0 %v5271_v61  ;;  %3522 = vmatpush.bf16.msra.mxu2 %v4955_v63  ;;  %v5211_v61 = vor.u32 %v5685_v59, %v5208_v60  ;;  %v5681_v63 = vld [vmem:[#allocation16 + $0x32c] sm:$0xf] }
 0x280   :  { %3531 = vmatpush.bf16.msra.mxu3 %v5147_v50  ;;  %v5192_v50 = vld [vmem:[#allocation16 + $0x338] sm:$0xf0] }
 0x281   :  { %v5195_v1 = vor.u32 %v5681_v63, %v5192_v50 }
 0x283   :  { %3493 = vmatpush.bf16.msrb.mxu0 %v5255_v13  ;;  %3523 = vmatpush.bf16.msra.mxu2 %v4939_v56  ;;  %v2700_v56 = vperm.slane %v6304_v12, 0 }
 0x284   :  { %3532 = vmatpush.bf16.msra.mxu3 %v5131_v14 }
 0x287   :  { %3494 = vmatpush.bf16.msrb.mxu0 %v5239_v20  ;;  %3524 = vmatpush.bf16.msra.mxu2 %v4923_v39 }
 0x288   :  { %3533 = vmatpush.bf16.msra.mxu3 %v5115_v5 }
 0x28a   :  { %3447 = vmatmul.bf16.vlgmr.msra.gmra.mxu0 %v6294_v49  ;;  %3525 = vmatmul.bf16.vlgmr.msra.gmra.mxu2 %v6273_v41  ;;  %v5051_v41 = vor.u32 %v5645_v34, %v5048_v19 }
 0x28b   :  { %3495 = vmatpush.bf16.msrb.mxu0 %v5223_v48 }
 0x28c   :  { %3534 = vmatpush.bf16.msra.mxu3 %v5099_v28 }
 0x28f   :  { %3496 = vmatpush.bf16.msrb.mxu0 %v5207_v33 }
 0x290   :  { %3535 = vmatpush.bf16.msra.mxu3 %v5083_v22 }
 0x293   :  { %3497 = vmatpush.bf16.msrb.mxu0 %v5191_v3  ;;  %v3568_v3 = vld [vmem:[%s6330_s14] sm:$0xf] }
 0x294   :  { %3536 = vmatpush.bf16.msra.mxu3 %v5067_v27  ;;  %v3570_v37 = vperm.slane %v3568_v3, 0  ;;  %v3571_v34 = vperm.slane %v3568_v3, 1  ;;  %v3572_v54 = vperm.slane %v3568_v3, 2 }
 0x297   :  { %3498 = vmatpush.bf16.msrb.mxu0 %v5175_v43 }
 0x298   :  { %3537 = vmatpush.bf16.msra.mxu3 %v5051_v41 }
 0x29a   :  { %3499 = vmatmul.bf16.vlgmr.msrb.gmra.mxu0 %v6294_v49 }
 0x29b   :  { %3543 = vmatpush.bf16.msra.mxu0 %v5291_v44  ;;  %3538 = vmatmul.bf16.vlgmr.msra.gmra.mxu3 %v6283_v18  ;;  %v5176_v18 = vld [vmem:[#allocation16 + $0x318] sm:$0xf0] }
 0x29c   :  { %v5179_v7 = vor.u32 %v5677_v57, %v5176_v18  ;;  %v2703_v57 = vperm.slane %v6304_v12, 3 }
 0x29f   :  { %3544 = vmatpush.bf16.msra.mxu0 %v5275_v46 }
 0x2a3   :  { %3545 = vmatpush.bf16.msra.mxu0 %v5259_v21 }
 0x2a7   :  { %3546 = vmatpush.bf16.msra.mxu0 %v5243_v32 }
 0x2ab   :  { %3547 = vmatpush.bf16.msra.mxu0 %v5227_v58 }
 0x2af   :  { %3548 = vmatpush.bf16.msra.mxu0 %v5211_v61 }
 0x2b3   :  { %3549 = vmatpush.bf16.msra.mxu0 %v5195_v1 }
 0x2b7   :  { %3550 = vmatpush.bf16.msra.mxu0 %v5179_v7  ;;  %v3357_v10 = vpop.f32.mrf.mxu1 }
 0x2b8   :  { %v3358_v14 = vadd.f32 %v3357_v10, %v2700_v56  ;;  %v3573_v56 = vperm.slane %v3568_v3, 3 }
 0x2ba   :  { %3551 = vmatmul.bf16.vlgmr.msra.gmra.mxu0 %v6294_v49 }
 0x2bf   :  { %v3359_v11 = vpop.f32.mrf.mxu1 }
 0x2c7   :  { %v3409_v13 = vpop.f32.mrf.mxu1 }
 0x2c8   :  { %v3410_v20 = vadd.f32 %v3409_v13, %v2701_v16  ;;  %v5728_v16 = vld [vmem:[#allocation2] ss:$0 sm:$0xff] }
 0x2cd   :  { %v3370_v47 = vpop.f32.mrf.mxu2 }
 0x2ce   :  { %v3371_v4 = vadd.f32 %v3370_v47, %v3358_v14 }
 0x2cf   :  { %v3411_v0 = vpop.f32.mrf.mxu1 }
 0x2d5   :  { %v3372_v15 = vpop.f32.mrf.mxu2 }
 0x2d9   :  { %v3461_v17 = vpop.f32.mrf.mxu1 }
 0x2da   :  { %v3462_v40 = vadd.f32 %v3461_v17, %v2702_v45 }
 0x2dd   :  { %v3383_v39 = vpop.f32.mrf.mxu3  ;;  %v3422_v5 = vpop.f32.mrf.mxu2 }
 0x2de   :  { %v3384_v24 = vadd.f32 %v3383_v39, %v3371_v4  ;;  %v3423_v49 = vadd.f32 %v3422_v5, %v3410_v20 }
 0x2e1   :  { %v3463_v8 = vpop.f32.mrf.mxu1 }
 0x2e5   :  { %v3385_v26 = vpop.f32.mrf.mxu3  ;;  %v3424_v6 = vpop.f32.mrf.mxu2 }
 0x2ed   :  { %v3435_v48 = vpop.f32.mrf.mxu3  ;;  %v3474_v28 = vpop.f32.mrf.mxu2 }
 0x2ee   :  { %v3436_v62 = vadd.f32 %v3435_v48, %v3423_v49  ;;  %v3475_v21 = vadd.f32 %v3474_v28, %v3462_v40 }
 0x2f5   :  { %v3437_v30 = vpop.f32.mrf.mxu3  ;;  %v3476_v31 = vpop.f32.mrf.mxu2 }
 0x2f7   :  { %v3396_v25 = vpop.f32.mrf.mxu0  ;;  %v3513_v29 = vpop.f32.mrf.mxu1 }
 0x2f8   :  { %v3397_v35 = vadd.f32 %v3396_v25, %v3384_v24  ;;  %v3514_v18 = vadd.f32 %v3513_v29, %v2703_v57 }
 0x2fa   :  { %v3560_v36 = vmul.f32 0.1, %v3397_v35  ;;  %vm3556_vm4 = vcmp.ge.f32.partialorder %v3397_v35, 0.0 }
 0x2fc   :  { %v3564_v42 = vsel %vm3556_vm4, %v3397_v35, %v3560_v36 }
 0x2fd   :  { %v3578_v41 = vmul.f32 %v3570_v37, %v3564_v42 }
 0x2ff   :  { %v3398_v33 = vpop.f32.mrf.mxu0  ;;  %v3515_v22 = vpop.f32.mrf.mxu1 }
 0x300   :  { %v3487_v9 = vpop.f32.mrf.mxu3 }
 0x301   :  { %v3488_v52 = vadd.f32 %v3487_v9, %v3475_v21 }
 0x307   :  { %v3448_v27 = vpop.f32.mrf.mxu0 }
 0x308   :  { %v3449_v23 = vadd.f32 %v3448_v27, %v3436_v62  ;;  %v3489_v19 = vpop.f32.mrf.mxu3 }
 0x30a   :  { %vm3557_vm5 = vcmp.ge.f32.partialorder %v3449_v23, 0.0  ;;  %v3561_v55 = vmul.f32 0.1, %v3449_v23 }
 0x30c   :  { %v3565_v43 = vsel %vm3557_vm5, %v3449_v23, %v3561_v55 }
 0x30d   :  { %v3579_v44 = vmul.f32 %v3571_v34, %v3565_v43  ;;  %v3526_v2 = vpop.f32.mrf.mxu2 }
 0x30e   :  { %v3527_v7 = vadd.f32 %v3526_v2, %v3514_v18 }
 0x30f   :  { %v3450_v46 = vpop.f32.mrf.mxu0  ;;  %v3582_v38 = vadd.f32 %v3579_v44, %v3578_v41 }
 0x315   :  { %v3528_v51 = vpop.f32.mrf.mxu2 }
 0x317   :  { %v3500_v32 = vpop.f32.mrf.mxu0 }
 0x318   :  { %v3501_v53 = vadd.f32 %v3500_v32, %v3488_v52 }
 0x31a   :  { %vm3558_vm6 = vcmp.ge.f32.partialorder %v3501_v53, 0.0  ;;  %v3562_v58 = vmul.f32 0.1, %v3501_v53 }
 0x31c   :  { %v3566_v59 = vsel %vm3558_vm6, %v3501_v53, %v3562_v58 }
 0x31d   :  { %v3580_v60 = vmul.f32 %v3572_v54, %v3566_v59 }
 0x31e   :  { %v3539_v61 = vpop.f32.mrf.mxu3 }
 0x31f   :  { %v3502_v63 = vpop.f32.mrf.mxu0  ;;  %v3583_v50 = vadd.f32 %v3582_v38, %v3580_v60  ;;  %v3540_v10 = vadd.f32 %v3539_v61, %v3527_v7 }
 0x326   :  { %v3541_v1 = vpop.f32.mrf.mxu3 }
 0x337   :  { %v3552_v11 = vpop.f32.mrf.mxu0 }
 0x338   :  { %v3553_v13 = vadd.f32 %v3552_v11, %v3540_v10 }
 0x33a   :  { %vm3559_vm7 = vcmp.ge.f32.partialorder %v3553_v13, 0.0  ;;  %v3563_v14 = vmul.f32 0.1, %v3553_v13 }
 0x33c   :  { %v3567_v47 = vsel %vm3559_vm7, %v3553_v13, %v3563_v14 }
 0x33d   :  { %v3581_v4 = vmul.f32 %v3573_v56, %v3567_v47 }
 0x33f   :  { %v3554_v0 = vpop.f32.mrf.mxu0  ;;  %v3584_v15 = vadd.f32 %v3583_v50, %v3581_v4 }
 0x341   :  { %3585 = vadd.xlane.f32.xlu0 %v3584_v15 }
 0x3b4   :  { %v3586_v17 = vpop.xlane.xlu0 %3585 }
 0x3b5   :  { %v3591_v20 = vadd.f32 %v5728_v16, %v3586_v17 }
 0x3b7   :  { %v3592_v39 = vsub.f32 0.0, %v3591_v20 }
 0x3b9   :  { %v3593_v5 = vmul.f32 1.442695, %v3592_v39 }
 0x3bb   :  { %5735 = vpow2.f32 %v3593_v5 }
 0x3c1   :  { %v5736_v12 = vpop.eup %5735 }
 0x3c2   :  { %v3595_v24 = vadd.f32 1.0, %v5736_v12 }
 0x3c4   :  { %5737 = vrcp.f32 %v3595_v24  ;;  %v3607_v6 = vand.u32 2147483648, %v3595_v24  ;;  %v3605_v28 = vand.u32 2147483647, %v3595_v24  ;;  %vm3601_vm9 = vweird.f32 %v3595_v24 }
 0x3c6   :  { %v3608_v29 = vor.u32 1.1754944e-38, %v3607_v6  ;;  %vm3606_vm12 = vcmp.eq.f32.partialorder %v3605_v28, 8.507059e+37 }
 0x3ca   :  { %v5738_v49 = vpop.eup %5737 }
 0x3cb   :  { %v3597_v8 = vmul.f32 %v5738_v49, %v3595_v24  ;;  %vm3602_vm8 = vweird.f32 %v5738_v49 }
 0x3cc   :  { %vm3603_vm11 = vmor %vm3601_vm9, %vm3602_vm8 }
 0x3cd   :  { %v3598_v26 = vsub.f32 1.0, %v3597_v8 }
 0x3cf   :  { %v3599_v48 = vmul.f32 %v5738_v49, %v3598_v26 }
 0x3d1   :  { %v3600_v25 = vadd.f32 %v5738_v49, %v3599_v48 }
 0x3d3   :  { %v3604_v30 = vsel %vm3603_vm11, %v5738_v49, %v3600_v25 }
 0x3d4   :  { %v3609_v31 = vsel %vm3606_vm12, %v3608_v29, %v3604_v30 }
 0x3d5   :  { %3612 = vst.msk [vmem:[%s6332_s16] sm:$0xff] %vm3611_vm10, %v3609_v31 }
 0x3d6   :  { %3617 = vsyncpa [#allocation4], 1 }
 0x3d7   :  { %3618 = vsyncpa [#allocation6], 1 }
 0x3d8   :  { %3619 = vsyncpa [#allocation9], 1 }
 0x3d9   :  { %3620 = vsyncpa [#allocation12], 1 }
 0x3da   :  { %3621 = vsyncpa [#allocation15], 1 }
 0x3db   :  { %3622 = vsyncpa [#allocation18], 1 }

</bundles_post_ra>
